<compile_context>
chip_gen: v7x
topology: tpu7x:2x2x1
jax: 0.10.0
libtpu: 0.0.40
codegen_flags: <defaults>
</compile_context>

<pallas_src>
import functools

import jax
import jax.numpy as jnp
from jax import lax
from jax.experimental import pallas as pl
from jax.experimental.pallas import tpu as pltpu

LANE = 128
MAX_TILE = 256                       # native MXU width on v6e/v7x; fine on v5e
VMEM_LIMIT = 48 * 1024 * 1024        # explicit scoped-VMEM budget (< 64 MiB v7x physical)


# ----------------------------------------------------------------------------
# Padding / tiling helpers (lane-dense layout)
# ----------------------------------------------------------------------------
def _round_up(x: int, m: int) -> int:
    return ((x + m - 1) // m) * m


def _pad_cols(a, cols: int):
    pad = cols - a.shape[-1]
    if pad == 0:
        return a
    return jnp.pad(a, ((0, 0), (0, pad)))


def _pad_weight(w):
    din, dout = w.shape
    return jnp.pad(
        w, ((0, _round_up(din, LANE) - din), (0, _round_up(dout, LANE) - dout))
    )


def _pick_tile(n: int) -> int:
    for t in (MAX_TILE, LANE):
        if n % t == 0:
            return t
    return n  # small / odd n: single full-extent block


# ----------------------------------------------------------------------------
# Parameter prep: padding + bf16 cast done ONCE, outside the per-call forward
# ----------------------------------------------------------------------------
def prepare_mlp_params(params):
    """[(w,b), ...] -> flat [w0_bf16_pad, b0_f32_pad, w1_..., ...]."""
    flat = []
    for w, b in params:
        flat.append(_pad_weight(w).astype(jnp.bfloat16))              # bf16 MXU input
        flat.append(_pad_cols(b, _round_up(b.shape[-1], LANE))
                    .astype(jnp.float32))                              # f32 bias
    return flat


# ----------------------------------------------------------------------------
# Stage 1 kernel: generator MLP + encoder MLP on x and on x_gen (row tile)
# ----------------------------------------------------------------------------
def _mlp_stage_kernel(*refs, n_gen: int, n_enc: int):
    noise_ref, x_ref = refs[0], refs[1]
    n_param = 2 * (n_gen + n_enc)
    params = refs[2:2 + n_param]
    x_out_ref, z_ref, zg_ref = refs[2 + n_param:]
    gen_p = params[: 2 * n_gen]
    enc_p = params[2 * n_gen:]

    def mlp(h, layer_refs, n_layers):
        # Static unroll over layers; activations stay resident as VMEM values.
        for i in range(n_layers):
            acc = jnp.dot(h, layer_refs[2 * i][...],
                          preferred_element_type=jnp.float32)
            acc = acc + layer_refs[2 * i + 1][...]      # f32 bias add on accumulator
            if i != n_layers - 1:
                h = jnp.maximum(acc, 0.0).astype(jnp.bfloat16)   # ReLU (act)
            else:
                h = acc                                  # final layer stays f32
        return h

    # Generator: x_ = generator(noise)
    x_gen = mlp(noise_ref[...], gen_p, n_gen)            # (RT, Cpad) f32
    x_out_ref[...] = x_gen.astype(x_out_ref.dtype)       # lane-dense f32 store

    # Encoder run twice (weights already resident) -- no concat / slice copies.
    z_ref[...] = mlp(x_ref[...], enc_p, n_enc).astype(z_ref.dtype)           # bf16
    zg_ref[...] = mlp(x_gen.astype(jnp.bfloat16), enc_p, n_enc).astype(zg_ref.dtype)


# ----------------------------------------------------------------------------
# Stage 2 kernel: sigmoid(z @ z.T) and sigmoid(z_ @ z_.T), one (i, j) tile
# ----------------------------------------------------------------------------
def _gram_kernel(zr_ref, zc_ref, gr_ref, gc_ref, a_ref, ag_ref):
    dims = (((1,), (1,)), ((), ()))  # contract last dims: rows @ rows.T

    def sig_gram(r, c):
        s = lax.dot_general(r, c, dims, preferred_element_type=jnp.float32)
        # exp and approximate reciprocal both run on the EUP slot -> VALU stays free.
        return pl.reciprocal(1.0 + jnp.exp(-s), approx=True)

    a_ref[...] = sig_gram(zr_ref[...], zc_ref[...]).astype(a_ref.dtype)
    ag_ref[...] = sig_gram(gr_ref[...], gc_ref[...]).astype(ag_ref.dtype)


# ----------------------------------------------------------------------------
# Forward wrapper (expects pre-padded bf16 weights from prepare_mlp_params)
# ----------------------------------------------------------------------------
def gaan_forward(gen_flat, enc_flat, x, noise, *, n_input,
                 gram_dtype=jnp.float32):
    """Mirrors GAAN_MODEL.forward(x, noise) -> (x_, a, a_)."""
    n_nodes = x.shape[0]
    n_gen = len(gen_flat) // 2
    n_enc = len(enc_flat) // 2

    # bf16 activations into the kernels: halves HBM->VMEM DMA; f32 accumulation.
    noise_p = _pad_cols(noise, gen_flat[0].shape[0]).astype(jnp.bfloat16)
    x_p = _pad_cols(x, enc_flat[0].shape[0]).astype(jnp.bfloat16)

    gen_out_pad = gen_flat[-2].shape[1]   # padded generator output width
    enc_out_pad = enc_flat[-2].shape[1]   # padded encoder output width (Hpad)

    # ---------------- Stage 1: MLPs, gridded over node-row tiles -------------
    rt = _pick_tile(n_nodes)
    n_row_blocks = max(1, n_nodes // rt)

    def const_spec(shape):
        return pl.BlockSpec(shape, lambda i: (0, 0))

    param_specs = [const_spec(tuple(p.shape)) for p in (gen_flat + enc_flat)]

    mlp_flops = 0
    for k in range(n_gen):
        w = gen_flat[2 * k]
        mlp_flops += 2 * n_nodes * w.shape[0] * w.shape[1]
    for k in range(n_enc):
        w = enc_flat[2 * k]
        mlp_flops += 2 * 2 * n_nodes * w.shape[0] * w.shape[1]
    mlp_bytes = sum(int(p.size) * p.dtype.itemsize for p in (gen_flat + enc_flat))
    mlp_bytes += int(noise_p.size) * 2 + int(x_p.size) * 2
    mlp_bytes += n_nodes * gen_out_pad * 4 + 2 * n_nodes * enc_out_pad * 2

    x_gen_pad, z, z_ = pl.pallas_call(
        functools.partial(_mlp_stage_kernel, n_gen=n_gen, n_enc=n_enc),
        out_shape=(
            jax.ShapeDtypeStruct((n_nodes, gen_out_pad), jnp.float32),
            jax.ShapeDtypeStruct((n_nodes, enc_out_pad), jnp.bfloat16),
            jax.ShapeDtypeStruct((n_nodes, enc_out_pad), jnp.bfloat16),
        ),
        grid=(n_row_blocks,),
        in_specs=[
            pl.BlockSpec((rt, noise_p.shape[1]), lambda i: (i, 0)),
            pl.BlockSpec((rt, x_p.shape[1]), lambda i: (i, 0)),
            *param_specs,
        ],
        out_specs=(
            pl.BlockSpec((rt, gen_out_pad), lambda i: (i, 0)),
            pl.BlockSpec((rt, enc_out_pad), lambda i: (i, 0)),
            pl.BlockSpec((rt, enc_out_pad), lambda i: (i, 0)),
        ),
        compiler_params=pltpu.CompilerParams(
            dimension_semantics=("parallel",),
            vmem_limit_bytes=VMEM_LIMIT,
        ),
        cost_estimate=pl.CostEstimate(
            flops=int(mlp_flops), transcendentals=0,
            bytes_accessed=int(mlp_bytes)),
    )(noise_p, x_p, *gen_flat, *enc_flat)

    # ---------------- Stage 2: grams, gridded over (i, j) output tiles -------
    gt = _pick_tile(n_nodes)
    gb = max(1, n_nodes // gt)
    hpad = enc_out_pad

    row_spec = pl.BlockSpec((gt, hpad), lambda i, j: (i, 0))
    col_spec = pl.BlockSpec((gt, hpad), lambda i, j: (j, 0))
    out_spec = pl.BlockSpec((gt, gt), lambda i, j: (i, j))

    gram_item = jnp.dtype(gram_dtype).itemsize
    gram_flops = 2 * 2 * n_nodes * n_nodes * hpad
    gram_bytes = 4 * n_nodes * hpad * 2 + 2 * n_nodes * n_nodes * gram_item

    a, a_ = pl.pallas_call(
        _gram_kernel,
        out_shape=(
            jax.ShapeDtypeStruct((n_nodes, n_nodes), gram_dtype),
            jax.ShapeDtypeStruct((n_nodes, n_nodes), gram_dtype),
        ),
        grid=(gb, gb),
        in_specs=[row_spec, col_spec, row_spec, col_spec],
        out_specs=(out_spec, out_spec),
        compiler_params=pltpu.CompilerParams(
            dimension_semantics=("parallel", "parallel"),
            vmem_limit_bytes=VMEM_LIMIT,
        ),
        cost_estimate=pl.CostEstimate(
            flops=int(gram_flops),
            transcendentals=int(2 * n_nodes * n_nodes),
            bytes_accessed=int(gram_bytes)),
    )(z, z, z_, z_)

    return x_gen_pad[:, :n_input], a, a_


# ----------------------------------------------------------------------------
# Parameter construction (deterministic, torch nn.Linear-style init)
# ----------------------------------------------------------------------------
def init_mlp_params(key, n_layers, n_in, n_hidden, n_out):
    params = []
    for i in range(n_layers):
        d_in = n_in if i == 0 else n_hidden
        d_out = n_out if i == n_layers - 1 else n_hidden
        key, kw, kb = jax.random.split(key, 3)
        bound = 1.0 / jnp.sqrt(jnp.float32(d_in))
        w = jax.random.uniform(kw, (d_in, d_out), jnp.float32, -bound, bound)
        b = jax.random.uniform(kb, (1, d_out), jnp.float32, -bound, bound)
        params.append((w, b))
    return params, key


# ----------------------------------------------------------------------------
# Pure-JAX reference (f32) for correctness checking
# ----------------------------------------------------------------------------
def _mlp_reference(params, h):
    n = len(params)
    for i, (w, b) in enumerate(params):
        h = h @ w + b
        if i != n - 1:
            h = jnp.maximum(h, 0.0)
    return h


def _gaan_reference(gen_params, enc_params, x, noise):
    x_gen = _mlp_reference(gen_params, noise)
    z = _mlp_reference(enc_params, x)
    z_ = _mlp_reference(enc_params, x_gen)
    a = jax.nn.sigmoid(z @ z.T)
    a_ = jax.nn.sigmoid(z_ @ z_.T)
    return x_gen, a, a_


# ----------------------------------------------------------------------------
# Main
# ----------------------------------------------------------------------------
if __name__ == "__main__":
    N = 512            # nodes: 256-wide tiles -> MLP grid (2,), gram grid (2, 2)
    n_input = 16
    n_noise = 8
    n_hidden = 32
    n_gen_layers = 2   # original module uses n_gen_layers for the encoder depth too

    key = jax.random.PRNGKey(0)
    key, kx, kn = jax.random.split(key, 3)
    x = jax.random.normal(kx, (N, n_input), jnp.float32)
    noise = jax.random.normal(kn, (N, n_noise), jnp.float32)

    # generator: MLP(n_gen_layers, n_noise, n_hidden, n_input, act)
    gen_params, key = init_mlp_params(key, n_gen_layers, n_noise, n_hidden, n_input)
    # encoder:   MLP(n_gen_layers, n_input, n_hidden, n_hidden, act)
    enc_params, key = init_mlp_params(key, n_gen_layers, n_input, n_hidden, n_hidden)

    # Pad / cast weights ONCE (hoisted out of the per-call forward).
    gen_flat = prepare_mlp_params(gen_params)
    enc_flat = prepare_mlp_params(enc_params)

    fwd = jax.jit(functools.partial(gaan_forward, n_input=n_input))
    x_, a, a_ = fwd(gen_flat, enc_flat, x, noise)
    jax.block_until_ready((x_, a, a_))

    # Shape / range sanity.
    assert x_.shape == (N, n_input)
    assert a.shape == (N, N) and a_.shape == (N, N)
    assert bool(jnp.all(jnp.isfinite(x_)))
    assert bool(jnp.all((a >= 0.0) & (a <= 1.0)))
    assert bool(jnp.all((a_ >= 0.0) & (a_ <= 1.0)))

    # Numerical check vs f32 reference (loose tolerance for bf16 MXU inputs).
    x_ref, a_ref, a2_ref = _gaan_reference(gen_params, enc_params, x, noise)
    assert float(jnp.max(jnp.abs(x_ - x_ref))) < 5e-2
    assert float(jnp.max(jnp.abs(a - a_ref))) < 5e-2
    assert float(jnp.max(jnp.abs(a_ - a2_ref))) < 5e-2

    print("KERNEL_OK")
</pallas_src>

<mosaic_0001>
module attributes {stable_mosaic.version = 11 : i64} {
  func.func @_mlp_stage_kernel(%arg0: i32, %arg1: memref<256x128xbf16, #tpu.memory_space<vmem>>, %arg2: memref<256x128xbf16, #tpu.memory_space<vmem>>, %arg3: memref<128x128xbf16, #tpu.memory_space<vmem>>, %arg4: memref<1x128xf32, #tpu.memory_space<vmem>>, %arg5: memref<128x128xbf16, #tpu.memory_space<vmem>>, %arg6: memref<1x128xf32, #tpu.memory_space<vmem>>, %arg7: memref<128x128xbf16, #tpu.memory_space<vmem>>, %arg8: memref<1x128xf32, #tpu.memory_space<vmem>>, %arg9: memref<128x128xbf16, #tpu.memory_space<vmem>>, %arg10: memref<1x128xf32, #tpu.memory_space<vmem>>, %arg11: memref<256x128xf32, #tpu.memory_space<vmem>>, %arg12: memref<256x128xbf16, #tpu.memory_space<vmem>>, %arg13: memref<256x128xbf16, #tpu.memory_space<vmem>>) attributes {dimension_semantics = [#tpu.dimension_semantics<parallel>], iteration_bounds = array<i64: 2>, scalar_prefetch = 0 : i64, scratch_operands = 0 : i64, tpu.core_type = #tpu.core_type<tc>, window_params = [{transform_indices = @transform_0, window_bounds = array<i64: 256, 128>}, {transform_indices = @transform_1, window_bounds = array<i64: 256, 128>}, {pipeline_mode = #tpu.pipeline_mode<synchronous>, transform_indices = @transform_2, window_bounds = array<i64: 128, 128>}, {pipeline_mode = #tpu.pipeline_mode<synchronous>, transform_indices = @transform_3, window_bounds = array<i64: 1, 128>}, {pipeline_mode = #tpu.pipeline_mode<synchronous>, transform_indices = @transform_4, window_bounds = array<i64: 128, 128>}, {pipeline_mode = #tpu.pipeline_mode<synchronous>, transform_indices = @transform_5, window_bounds = array<i64: 1, 128>}, {pipeline_mode = #tpu.pipeline_mode<synchronous>, transform_indices = @transform_6, window_bounds = array<i64: 128, 128>}, {pipeline_mode = #tpu.pipeline_mode<synchronous>, transform_indices = @transform_7, window_bounds = array<i64: 1, 128>}, {pipeline_mode = #tpu.pipeline_mode<synchronous>, transform_indices = @transform_8, window_bounds = array<i64: 128, 128>}, {pipeline_mode = #tpu.pipeline_mode<synchronous>, transform_indices = @transform_9, window_bounds = array<i64: 1, 128>}, {transform_indices = @transform_10, window_bounds = array<i64: 256, 128>}, {transform_indices = @transform_11, window_bounds = array<i64: 256, 128>}, {transform_indices = @transform_12, window_bounds = array<i64: 256, 128>}]} {
    %c0 = arith.constant 0 : index
    %c0_0 = arith.constant 0 : index
    %0 = vector.load %arg1[%c0, %c0_0] : memref<256x128xbf16, #tpu.memory_space<vmem>>, vector<256x128xbf16>
    %c0_1 = arith.constant 0 : index
    %c0_2 = arith.constant 0 : index
    %1 = vector.load %arg3[%c0_1, %c0_2] : memref<128x128xbf16, #tpu.memory_space<vmem>>, vector<128x128xbf16>
    %cst = arith.constant dense<0.000000e+00> : vector<256x128xf32>
    %2 = tpu.matmul %0, %1, %cst {dimension_numbers = #tpu.dot_dimension_numbers<[1], [0], [0], [1], [0, 0, 1, 1], [], []>} : vector<256x128xbf16>, vector<128x128xbf16>, vector<256x128xf32> -> vector<256x128xf32>
    %c0_3 = arith.constant 0 : index
    %c0_4 = arith.constant 0 : index
    %3 = vector.load %arg4[%c0_3, %c0_4] : memref<1x128xf32, #tpu.memory_space<vmem>>, vector<1x128xf32>
    %4 = vector.broadcast %3 : vector<1x128xf32> to vector<256x128xf32>
    %5 = arith.addf %2, %4 : vector<256x128xf32>
    %cst_5 = arith.constant 0.000000e+00 : f32
    %6 = vector.broadcast %cst_5 : f32 to vector<256x128xf32>
    %7 = arith.maximumf %5, %6 : vector<256x128xf32>
    %8 = arith.truncf %7 : vector<256x128xf32> to vector<256x128xbf16>
    %c0_6 = arith.constant 0 : index
    %c0_7 = arith.constant 0 : index
    %9 = vector.load %arg5[%c0_6, %c0_7] : memref<128x128xbf16, #tpu.memory_space<vmem>>, vector<128x128xbf16>
    %cst_8 = arith.constant dense<0.000000e+00> : vector<256x128xf32>
    %10 = tpu.matmul %8, %9, %cst_8 {dimension_numbers = #tpu.dot_dimension_numbers<[1], [0], [0], [1], [0, 0, 1, 1], [], []>} : vector<256x128xbf16>, vector<128x128xbf16>, vector<256x128xf32> -> vector<256x128xf32>
    %c0_9 = arith.constant 0 : index
    %c0_10 = arith.constant 0 : index
    %11 = vector.load %arg6[%c0_9, %c0_10] : memref<1x128xf32, #tpu.memory_space<vmem>>, vector<1x128xf32>
    %12 = vector.broadcast %11 : vector<1x128xf32> to vector<256x128xf32>
    %13 = arith.addf %10, %12 : vector<256x128xf32>
    %c0_11 = arith.constant 0 : index
    %c0_12 = arith.constant 0 : index
    %14 = vector.load %arg11[%c0_11, %c0_12] : memref<256x128xf32, #tpu.memory_space<vmem>>, vector<256x128xf32>
    tpu.vector_store %arg11[%c0_11, %c0_12], %13 {strides = array<i32>} : memref<256x128xf32, #tpu.memory_space<vmem>>, vector<256x128xf32>,
    %c0_13 = arith.constant 0 : index
    %c0_14 = arith.constant 0 : index
    %15 = vector.load %arg2[%c0_13, %c0_14] : memref<256x128xbf16, #tpu.memory_space<vmem>>, vector<256x128xbf16>
    %c0_15 = arith.constant 0 : index
    %c0_16 = arith.constant 0 : index
    %16 = vector.load %arg7[%c0_15, %c0_16] : memref<128x128xbf16, #tpu.memory_space<vmem>>, vector<128x128xbf16>
    %cst_17 = arith.constant dense<0.000000e+00> : vector<256x128xf32>
    %17 = tpu.matmul %15, %16, %cst_17 {dimension_numbers = #tpu.dot_dimension_numbers<[1], [0], [0], [1], [0, 0, 1, 1], [], []>} : vector<256x128xbf16>, vector<128x128xbf16>, vector<256x128xf32> -> vector<256x128xf32>
    %c0_18 = arith.constant 0 : index
    %c0_19 = arith.constant 0 : index
    %18 = vector.load %arg8[%c0_18, %c0_19] : memref<1x128xf32, #tpu.memory_space<vmem>>, vector<1x128xf32>
    %19 = vector.broadcast %18 : vector<1x128xf32> to vector<256x128xf32>
    %20 = arith.addf %17, %19 : vector<256x128xf32>
    %cst_20 = arith.constant 0.000000e+00 : f32
    %21 = vector.broadcast %cst_20 : f32 to vector<256x128xf32>
    %22 = arith.maximumf %20, %21 : vector<256x128xf32>
    %23 = arith.truncf %22 : vector<256x128xf32> to vector<256x128xbf16>
    %c0_21 = arith.constant 0 : index
    %c0_22 = arith.constant 0 : index
    %24 = vector.load %arg9[%c0_21, %c0_22] : memref<128x128xbf16, #tpu.memory_space<vmem>>, vector<128x128xbf16>
    %cst_23 = arith.constant dense<0.000000e+00> : vector<256x128xf32>
    %25 = tpu.matmul %23, %24, %cst_23 {dimension_numbers = #tpu.dot_dimension_numbers<[1], [0], [0], [1], [0, 0, 1, 1], [], []>} : vector<256x128xbf16>, vector<128x128xbf16>, vector<256x128xf32> -> vector<256x128xf32>
    %c0_24 = arith.constant 0 : index
    %c0_25 = arith.constant 0 : index
    %26 = vector.load %arg10[%c0_24, %c0_25] : memref<1x128xf32, #tpu.memory_space<vmem>>, vector<1x128xf32>
    %27 = vector.broadcast %26 : vector<1x128xf32> to vector<256x128xf32>
    %28 = arith.addf %25, %27 : vector<256x128xf32>
    %29 = arith.truncf %28 : vector<256x128xf32> to vector<256x128xbf16>
    %c0_26 = arith.constant 0 : index
    %c0_27 = arith.constant 0 : index
    %30 = vector.load %arg12[%c0_26, %c0_27] : memref<256x128xbf16, #tpu.memory_space<vmem>>, vector<256x128xbf16>
    tpu.vector_store %arg12[%c0_26, %c0_27], %29 {strides = array<i32>} : memref<256x128xbf16, #tpu.memory_space<vmem>>, vector<256x128xbf16>,
    %31 = arith.truncf %13 : vector<256x128xf32> to vector<256x128xbf16>
    %c0_28 = arith.constant 0 : index
    %c0_29 = arith.constant 0 : index
    %32 = vector.load %arg7[%c0_28, %c0_29] : memref<128x128xbf16, #tpu.memory_space<vmem>>, vector<128x128xbf16>
    %cst_30 = arith.constant dense<0.000000e+00> : vector<256x128xf32>
    %33 = tpu.matmul %31, %32, %cst_30 {dimension_numbers = #tpu.dot_dimension_numbers<[1], [0], [0], [1], [0, 0, 1, 1], [], []>} : vector<256x128xbf16>, vector<128x128xbf16>, vector<256x128xf32> -> vector<256x128xf32>
    %c0_31 = arith.constant 0 : index
    %c0_32 = arith.constant 0 : index
    %34 = vector.load %arg8[%c0_31, %c0_32] : memref<1x128xf32, #tpu.memory_space<vmem>>, vector<1x128xf32>
    %35 = vector.broadcast %34 : vector<1x128xf32> to vector<256x128xf32>
    %36 = arith.addf %33, %35 : vector<256x128xf32>
    %cst_33 = arith.constant 0.000000e+00 : f32
    %37 = vector.broadcast %cst_33 : f32 to vector<256x128xf32>
    %38 = arith.maximumf %36, %37 : vector<256x128xf32>
    %39 = arith.truncf %38 : vector<256x128xf32> to vector<256x128xbf16>
    %c0_34 = arith.constant 0 : index
    %c0_35 = arith.constant 0 : index
    %40 = vector.load %arg9[%c0_34, %c0_35] : memref<128x128xbf16, #tpu.memory_space<vmem>>, vector<128x128xbf16>
    %cst_36 = arith.constant dense<0.000000e+00> : vector<256x128xf32>
    %41 = tpu.matmul %39, %40, %cst_36 {dimension_numbers = #tpu.dot_dimension_numbers<[1], [0], [0], [1], [0, 0, 1, 1], [], []>} : vector<256x128xbf16>, vector<128x128xbf16>, vector<256x128xf32> -> vector<256x128xf32>
    %c0_37 = arith.constant 0 : index
    %c0_38 = arith.constant 0 : index
    %42 = vector.load %arg10[%c0_37, %c0_38] : memref<1x128xf32, #tpu.memory_space<vmem>>, vector<1x128xf32>
    %43 = vector.broadcast %42 : vector<1x128xf32> to vector<256x128xf32>
    %44 = arith.addf %41, %43 : vector<256x128xf32>
    %45 = arith.truncf %44 : vector<256x128xf32> to vector<256x128xbf16>
    %c0_39 = arith.constant 0 : index
    %c0_40 = arith.constant 0 : index
    %46 = vector.load %arg13[%c0_39, %c0_40] : memref<256x128xbf16, #tpu.memory_space<vmem>>, vector<256x128xbf16>
    tpu.vector_store %arg13[%c0_39, %c0_40], %45 {strides = array<i32>} : memref<256x128xbf16, #tpu.memory_space<vmem>>, vector<256x128xbf16>,
    return
  }
  func.func @transform_0(%arg0: i32) -> (i32, i32) {
    %c0_i32 = arith.constant 0 : i32
    %c0_i32_0 = arith.constant 0 : i32
    return %arg0, %c0_i32 : i32, i32
  }
  func.func @transform_1(%arg0: i32) -> (i32, i32) {
    %c0_i32 = arith.constant 0 : i32
    %c0_i32_0 = arith.constant 0 : i32
    return %arg0, %c0_i32 : i32, i32
  }
  func.func @transform_2(%arg0: i32) -> (i32, i32) {
    %c0_i32 = arith.constant 0 : i32
    %c0_i32_0 = arith.constant 0 : i32
    %c0_i32_1 = arith.constant 0 : i32
    return %c0_i32, %c0_i32_0 : i32, i32
  }
  func.func @transform_3(%arg0: i32) -> (i32, i32) {
    %c0_i32 = arith.constant 0 : i32
    %c0_i32_0 = arith.constant 0 : i32
    %c0_i32_1 = arith.constant 0 : i32
    return %c0_i32, %c0_i32_0 : i32, i32
  }
  func.func @transform_4(%arg0: i32) -> (i32, i32) {
    %c0_i32 = arith.constant 0 : i32
    %c0_i32_0 = arith.constant 0 : i32
    %c0_i32_1 = arith.constant 0 : i32
    return %c0_i32, %c0_i32_0 : i32, i32
  }
  func.func @transform_5(%arg0: i32) -> (i32, i32) {
    %c0_i32 = arith.constant 0 : i32
    %c0_i32_0 = arith.constant 0 : i32
    %c0_i32_1 = arith.constant 0 : i32
    return %c0_i32, %c0_i32_0 : i32, i32
  }
  func.func @transform_6(%arg0: i32) -> (i32, i32) {
    %c0_i32 = arith.constant 0 : i32
    %c0_i32_0 = arith.constant 0 : i32
    %c0_i32_1 = arith.constant 0 : i32
    return %c0_i32, %c0_i32_0 : i32, i32
  }
  func.func @transform_7(%arg0: i32) -> (i32, i32) {
    %c0_i32 = arith.constant 0 : i32
    %c0_i32_0 = arith.constant 0 : i32
    %c0_i32_1 = arith.constant 0 : i32
    return %c0_i32, %c0_i32_0 : i32, i32
  }
  func.func @transform_8(%arg0: i32) -> (i32, i32) {
    %c0_i32 = arith.constant 0 : i32
    %c0_i32_0 = arith.constant 0 : i32
    %c0_i32_1 = arith.constant 0 : i32
    return %c0_i32, %c0_i32_0 : i32, i32
  }
  func.func @transform_9(%arg0: i32) -> (i32, i32) {
    %c0_i32 = arith.constant 0 : i32
    %c0_i32_0 = arith.constant 0 : i32
    %c0_i32_1 = arith.constant 0 : i32
    return %c0_i32, %c0_i32_0 : i32, i32
  }
  func.func @transform_10(%arg0: i32) -> (i32, i32) {
    %c0_i32 = arith.constant 0 : i32
    %c0_i32_0 = arith.constant 0 : i32
    return %arg0, %c0_i32 : i32, i32
  }
  func.func @transform_11(%arg0: i32) -> (i32, i32) {
    %c0_i32 = arith.constant 0 : i32
    %c0_i32_0 = arith.constant 0 : i32
    return %arg0, %c0_i32 : i32, i32
  }
  func.func @transform_12(%arg0: i32) -> (i32, i32) {
    %c0_i32 = arith.constant 0 : i32
    %c0_i32_0 = arith.constant 0 : i32
    return %arg0, %c0_i32 : i32, i32
  }
}

module attributes {stable_mosaic.version = 11 : i64} {
  func.func @_gram_kernel(%arg0: i32, %arg1: i32, %arg2: memref<256x128xbf16, #tpu.memory_space<vmem>>, %arg3: memref<256x128xbf16, #tpu.memory_space<vmem>>, %arg4: memref<256x128xbf16, #tpu.memory_space<vmem>>, %arg5: memref<256x128xbf16, #tpu.memory_space<vmem>>, %arg6: memref<256x256xf32, #tpu.memory_space<vmem>>, %arg7: memref<256x256xf32, #tpu.memory_space<vmem>>) attributes {dimension_semantics = [#tpu.dimension_semantics<parallel>, #tpu.dimension_semantics<parallel>], iteration_bounds = array<i64: 2, 2>, scalar_prefetch = 0 : i64, scratch_operands = 0 : i64, tpu.core_type = #tpu.core_type<tc>, window_params = [{transform_indices = @transform_0, window_bounds = array<i64: 256, 128>}, {transform_indices = @transform_1, window_bounds = array<i64: 256, 128>}, {transform_indices = @transform_2, window_bounds = array<i64: 256, 128>}, {transform_indices = @transform_3, window_bounds = array<i64: 256, 128>}, {transform_indices = @transform_4, window_bounds = array<i64: 256, 256>}, {transform_indices = @transform_5, window_bounds = array<i64: 256, 256>}]} {
    %c0 = arith.constant 0 : index
    %c0_0 = arith.constant 0 : index
    %0 = vector.load %arg2[%c0, %c0_0] : memref<256x128xbf16, #tpu.memory_space<vmem>>, vector<256x128xbf16>
    %c0_1 = arith.constant 0 : index
    %c0_2 = arith.constant 0 : index
    %1 = vector.load %arg3[%c0_1, %c0_2] : memref<256x128xbf16, #tpu.memory_space<vmem>>, vector<256x128xbf16>
    %cst = arith.constant dense<0.000000e+00> : vector<256x256xf32>
    %2 = tpu.matmul %0, %1, %cst {dimension_numbers = #tpu.dot_dimension_numbers<[1], [1], [0], [0], [0, 0, 1, 0], [], []>} : vector<256x128xbf16>, vector<256x128xbf16>, vector<256x256xf32> -> vector<256x256xf32>
    %cst_3 = arith.constant 0.000000e+00 : f32
    %3 = vector.broadcast %cst_3 : f32 to vector<256x256xf32>
    %4 = arith.subf %3, %2 : vector<256x256xf32>
    %5 = math.exp %4 : vector<256x256xf32>
    %cst_4 = arith.constant 1.000000e+00 : f32
    %6 = vector.broadcast %cst_4 : f32 to vector<256x256xf32>
    %7 = arith.addf %6, %5 : vector<256x256xf32>
    %8 = tpu.reciprocal %7 {approx = true} : vector<256x256xf32> -> vector<256x256xf32>
    %c0_5 = arith.constant 0 : index
    %c0_6 = arith.constant 0 : index
    %9 = vector.load %arg6[%c0_5, %c0_6] : memref<256x256xf32, #tpu.memory_space<vmem>>, vector<256x256xf32>
    tpu.vector_store %arg6[%c0_5, %c0_6], %8 {strides = array<i32>} : memref<256x256xf32, #tpu.memory_space<vmem>>, vector<256x256xf32>,
    %c0_7 = arith.constant 0 : index
    %c0_8 = arith.constant 0 : index
    %10 = vector.load %arg4[%c0_7, %c0_8] : memref<256x128xbf16, #tpu.memory_space<vmem>>, vector<256x128xbf16>
    %c0_9 = arith.constant 0 : index
    %c0_10 = arith.constant 0 : index
    %11 = vector.load %arg5[%c0_9, %c0_10] : memref<256x128xbf16, #tpu.memory_space<vmem>>, vector<256x128xbf16>
    %cst_11 = arith.constant dense<0.000000e+00> : vector<256x256xf32>
    %12 = tpu.matmul %10, %11, %cst_11 {dimension_numbers = #tpu.dot_dimension_numbers<[1], [1], [0], [0], [0, 0, 1, 0], [], []>} : vector<256x128xbf16>, vector<256x128xbf16>, vector<256x256xf32> -> vector<256x256xf32>
    %cst_12 = arith.constant 0.000000e+00 : f32
    %13 = vector.broadcast %cst_12 : f32 to vector<256x256xf32>
    %14 = arith.subf %13, %12 : vector<256x256xf32>
    %15 = math.exp %14 : vector<256x256xf32>
    %cst_13 = arith.constant 1.000000e+00 : f32
    %16 = vector.broadcast %cst_13 : f32 to vector<256x256xf32>
    %17 = arith.addf %16, %15 : vector<256x256xf32>
    %18 = tpu.reciprocal %17 {approx = true} : vector<256x256xf32> -> vector<256x256xf32>
    %c0_14 = arith.constant 0 : index
    %c0_15 = arith.constant 0 : index
    %19 = vector.load %arg7[%c0_14, %c0_15] : memref<256x256xf32, #tpu.memory_space<vmem>>, vector<256x256xf32>
    tpu.vector_store %arg7[%c0_14, %c0_15], %18 {strides = array<i32>} : memref<256x256xf32, #tpu.memory_space<vmem>>, vector<256x256xf32>,
    return
  }
  func.func @transform_0(%arg0: i32, %arg1: i32) -> (i32, i32) {
    %c0_i32 = arith.constant 0 : i32
    %c0_i32_0 = arith.constant 0 : i32
    return %arg0, %c0_i32 : i32, i32
  }
  func.func @transform_1(%arg0: i32, %arg1: i32) -> (i32, i32) {
    %c0_i32 = arith.constant 0 : i32
    %c0_i32_0 = arith.constant 0 : i32
    return %arg1, %c0_i32 : i32, i32
  }
  func.func @transform_2(%arg0: i32, %arg1: i32) -> (i32, i32) {
    %c0_i32 = arith.constant 0 : i32
    %c0_i32_0 = arith.constant 0 : i32
    return %arg0, %c0_i32 : i32, i32
  }
  func.func @transform_3(%arg0: i32, %arg1: i32) -> (i32, i32) {
    %c0_i32 = arith.constant 0 : i32
    %c0_i32_0 = arith.constant 0 : i32
    return %arg1, %c0_i32 : i32, i32
  }
  func.func @transform_4(%arg0: i32, %arg1: i32) -> (i32, i32) {
    %c0_i32 = arith.constant 0 : i32
    return %arg0, %arg1 : i32, i32
  }
  func.func @transform_5(%arg0: i32, %arg1: i32) -> (i32, i32) {
    %c0_i32 = arith.constant 0 : i32
    return %arg0, %arg1 : i32, i32
  }
}

</mosaic_0001>

<bundles_post_ra>
// kernel: gaan_forward.3
= control target key start
LH: loop header
LB: loop body
LE: loop exit
PB: predicated region body
PF: predicated region fallthrough
CT: control target
= control target key end

     0   :  { %s3926_s0 = inlined_call_operand.vmem [shape: bf16[512,128], index: 0, kind: input, shape index: {}, may-alias: {0,1}]   ;;  %s3927_s1 = inlined_call_operand.vmem [shape: bf16[512,128], index: 1, kind: input, shape index: {}, may-alias: {0,1}]   ;;  %s3928_s2 = inlined_call_operand.vmem [shape: bf16[512,128], index: 2, kind: input, shape index: {}, may-alias: {2,3}]   ;;  %s3929_s3 = inlined_call_operand.vmem [shape: bf16[512,128], index: 3, kind: input, shape index: {}, may-alias: {2,3}]   ;;  %s3930_s4 = inlined_call_operand.hbm [shape: f32[512,512], index: 4, kind: output, shape index: {0}]   ;;  %s3931_s5 = inlined_call_operand.hbm [shape: f32[512,512], index: 5, kind: output, shape index: {1}]  }
   0x1   :  { %3932 = sst [smem:[#allocation23_spill]] %s3926_s0 }
   0x2   :  { %11 = vsyncpa [#allocation3], 0 }
   0x3   :  { %13 = vsyncpa [#allocation3 + $0x1], 0 }
   0x4   :  { %14 = vsyncpa [#allocation5], 0 }
   0x5   :  { %16 = vsyncpa [#allocation5 + $0x1], 0  ;;  %s3184_s18 = smov 0   ;;  %s3186_s19 = smov 0  }
   0x6   :  { %s3188_s20 = smov 0   ;;  %s3190_s21 = smov 0  }
   0x7   :  { %s3192_s22 = smov 0   ;;  %s3194_s23 = smov 0  }
   0x8   :  { %s3196_s24 = smov 0   ;;  %s3198_s25 = smov 0  }
   0x9 LB: > { %s2177_s26 = sadd.s32 4294967295, %s3147_s25   ;;  %s2178_s27 = sadd.s32 4294967294, %s3147_s25   ;;  %s3147_s25 = sphi %s3198_s25, %s22_s25   ;;  %s3143_s24 = sphi %s3196_s24, %s3972_s24   ;;  %s3139_s23 = sphi %s3194_s23, %s3971_s23   ;;  %s3135_s22 = sphi %s3192_s22, %s3970_s22   ;;  %s3131_s21 = sphi %s3190_s21, %s3969_s21   ;;  %s3127_s20 = sphi %s3188_s20, %s3968_s20   ;;  %s3123_s19 = sphi %s3186_s19, %s3967_s19   ;;  %s3119_s18 = sphi %s3184_s18, %s3966_s18  }
   0xa   : > { %s31_s28 = sadd.s32 1, %s3139_s23  ;;  %s34_s29 = sadd.s32 1, %s3143_s24 }
   0xb   : > { %p32_p0 = scmp.ge.s32.totalorder %s31_s28, 2  ;;  %p157_p1 = scmp.ne.s32.totalorder %s3127_s20, %s3123_s19 }
   0xc   : > { %p158_p2 = scmp.eq.s32.totalorder %s2177_s26, 3  ;;  %p163_p5 = scmp.ne.s32.totalorder %s3123_s19, %s3119_s18 }
   0xd   : > { %s3974_s28 = smov (%p32_p0, %s31_s28), 0  ;;  %s3976_s29 = smov (!%p32_p0, %s34_s29), %s3143_s24 }
   0xe   : > { %s143_s30 = ssub.s32 %s3139_s23, %s3974_s28  ;;  %p3235_p3 = por %p158_p2, %p157_p1 }
   0xf   : > { %p36_p4 = scmp.ge.s32.totalorder %s3976_s29, 2  ;;  %p164_p6 = scmp.eq.s32.totalorder %s2178_s27, 3 }
  0x10   : > { %p2181_p7 = scmp.ge.s32.totalorder %s3147_s25, 1  ;;  %p246_p9 = scmp.lt.s32.totalorder %s3147_s25, 5 }
  0x11   : > { %s3978_s29 = smov (%p36_p4, %s3976_s29), 0  ;;  %p3244_p8 = por %p164_p6, %p163_p5 }
  0x12   : > { %s142_s8 = ssub.s32 %s3143_s24, %s3978_s29  ;;  %s147_s9 = sadd.s32 1, %s3127_s20 }
  0x13   : > { %s144_s10 = sor.u32 %s143_s30, %s142_s8  ;;  %p247_p10 = pnand %p2181_p7, %p246_p9 }
  0x14   : > { %p145_p11 = scmp.eq.s32.totalorder %s144_s10, 0 }
  0x15   : > { %250 = sbr.rel (%p247_p10) target bundleno = 624 (0x270), region = 36 }
  0x16   : > { %s3253_s11 = scalar_select %p145_p11, %s3127_s20, %s147_s9  }
  0x1c   : > { %s2186_s12 = sshll.u32 %s3131_s21, 5  ;;  %s2184_s30 = sshll.u32 %s3135_s22, 5 }
  0x1d   : > { %p301_p12 = scmp.lt.s32.totalorder %s2186_s12, 63  ;;  %p295_p13 = scmp.lt.s32.totalorder %s2184_s30, 63 }
  0x1e   : > { %s3935_s0 = sld [smem:[#allocation23_spill]]  ;;  %s3149_s10 = smov [#allocation2]  }
  0x1f   : > { %s3980_s12 = smov (!%p301_p12, %s2186_s12), 63  ;;  %s3982_s30 = smov (!%p295_p13, %s2184_s30), 63 }
  0x20   : > { %s2187_s13 = sshll.u32 %s3980_s12, 2  ;;  %s2185_s8 = sshll.u32 %s3982_s30, 2 }
  0x21   : > { %s3259_s16 = scalar_lea.vmem %s3927_s1, %s2187_s13  ;;  %s3264_s27 = scalar_lea.vmem %s3929_s3, %s2187_s13 }
  0x22   : > { %v2445_v0 = vld [vmem:[%s3259_s16 + $0x40] sm:$0xff]   ;;  %v2449_v4 = vld [vmem:[%s3259_s16 + $0x48] sm:$0xff]   ;;  %v2453_v8 = vld [vmem:[%s3259_s16 + $0x50] sm:$0xff]   ;;  %s3294_s15 = scalar_lea.vmem %s3928_s2, %s2185_s8  ;;  %s2259_s30 = sshll.u32 %s3131_s21, 1 }
  0x23   : > { %v2446_v1 = vld [vmem:[%s3264_s27 + $0x40] sm:$0xff]   ;;  %2270 = vmatprep.subr.bf16.mxu0 %v2445_v0  ;;  %v2450_v5 = vld [vmem:[%s3264_s27 + $0x48] sm:$0xff]   ;;  %v2454_v9 = vld [vmem:[%s3264_s27 + $0x50] sm:$0xff]  }
  0x24   : > { %v2447_v2 = vld [vmem:[%s3259_s16] sm:$0xff]   ;;  %2318 = vmatprep.subr.bf16.mxu1 %v2446_v1  ;;  %v2451_v6 = vld [vmem:[%s3259_s16 + $0x8] sm:$0xff]   ;;  %v2455_v10 = vld [vmem:[%s3259_s16 + $0x10] sm:$0xff]   ;;  %s3288_s12 = scalar_lea.vmem %s3935_s0, %s2185_s8  ;;  %s2268_s8 = sshll.u32 %s3135_s22, 7 }
  0x25   : > { %v2448_v3 = vld [vmem:[%s3264_s27] sm:$0xff]   ;;  %2271 = vmatpush3.bf16.xpose.msra.mxu0 %v2447_v2  ;;  %v2452_v7 = vld [vmem:[%s3264_s27 + $0x8] sm:$0xff]   ;;  %v2456_v11 = vld [vmem:[%s3264_s27 + $0x10] sm:$0xff]   ;;  %s2008_s9 = sadd.s32 %s2268_s8, %s2259_s30 }
  0x26   : > { %2319 = vmatpush3.bf16.xpose.msra.mxu1 %v2448_v3  ;;  %2272 = vmatprep.subr.bf16.mxu0 %v2449_v4  ;;  %v2457_v12 = vld [vmem:[%s3259_s16 + $0x58] sm:$0xff]   ;;  %v2461_v16 = vld [vmem:[%s3259_s16 + $0x60] sm:$0xff]   ;;  %v2465_v20 = vld [vmem:[%s3259_s16 + $0x68] sm:$0xff]   ;;  %s2261_s21 = sshll.u32 %s2008_s9, 7 }
  0x27   : > { %2320 = vmatprep.subr.bf16.mxu1 %v2450_v5  ;;  %v2458_v13 = vld [vmem:[%s3264_s27 + $0x58] sm:$0xff]   ;;  %v2462_v17 = vld [vmem:[%s3264_s27 + $0x60] sm:$0xff]   ;;  %v2466_v23 = vld [vmem:[%s3264_s27 + $0x68] sm:$0xff]   ;;  %s3826_s13 = scalar_lea.hbm %s3930_s4, %s2261_s21  ;;  %s3838_s30 = scalar_lea.hbm %s3931_s5, %s2261_s21 }
  0x28   : > { %v2459_v14 = vld [vmem:[%s3259_s16 + $0x18] sm:$0xff]   ;;  %v2463_v18 = vld [vmem:[%s3259_s16 + $0x20] sm:$0xff]   ;;  %v2467_v24 = vld [vmem:[%s3259_s16 + $0x28] sm:$0xff]  }
  0x29   : > { %v2460_v15 = vld [vmem:[%s3264_s27 + $0x18] sm:$0xff]   ;;  %v2464_v19 = vld [vmem:[%s3264_s27 + $0x20] sm:$0xff]   ;;  %v2468_v25 = vld [vmem:[%s3264_s27 + $0x28] sm:$0xff]  }
  0x2a   : > { %v2477_v21 = vld [vmem:[%s3288_s12] sm:$0xff]   ;;  %v2469_v26 = vld [vmem:[%s3259_s16 + $0x70] sm:$0xff]   ;;  %v2473_v30 = vld [vmem:[%s3259_s16 + $0x78] sm:$0xff]  }
  0x2b   : > { %v2478_v22 = vld [vmem:[%s3294_s15] sm:$0xff]   ;;  %2286 = vmatprep.mubr.bf16.mxu0 %v2477_v21  ;;  %v2470_v27 = vld [vmem:[%s3264_s27 + $0x70] sm:$0xff]   ;;  %v2474_v31 = vld [vmem:[%s3264_s27 + $0x78] sm:$0xff]  }
  0x2c   : > { %2334 = vmatprep.mubr.bf16.mxu1 %v2478_v22  ;;  %v2471_v28 = vld [vmem:[%s3259_s16 + $0x30] sm:$0xff]   ;;  %v2475_v32 = vld [vmem:[%s3259_s16 + $0x38] sm:$0xff]   ;;  %v2479_v34 = vld [vmem:[%s3288_s12 + $0x8] sm:$0xff]   ;;  %s3362_s16 = sand.u32 1, %s3123_s19  }
  0x2d   : > { %2273 = vmatpush3.bf16.xpose.msra.mxu0 %v2451_v6  ;;  %v2472_v29 = vld [vmem:[%s3264_s27 + $0x30] sm:$0xff]   ;;  %v2476_v33 = vld [vmem:[%s3264_s27 + $0x38] sm:$0xff]   ;;  %v2480_v35 = vld [vmem:[%s3294_s15 + $0x8] sm:$0xff]   ;;  %s2182_s17 = sshll.u32 %s3362_s16, 9  ;;  %s1990_s8 = scalar_lea.sflag [#allocation3], %s3362_s16 }
  0x2e   : > { %2321 = vmatpush3.bf16.xpose.msra.mxu1 %v2452_v7  ;;  %2274 = vmatprep.subr.bf16.mxu0 %v2453_v8  ;;  %v2481_v36 = vld [vmem:[%s3288_s12 + $0x10] sm:$0xff]   ;;  %v2483_v38 = vld [vmem:[%s3288_s12 + $0x18] sm:$0xff]   ;;  %v2485_v40 = vld [vmem:[%s3288_s12 + $0x20] sm:$0xff]   ;;  %s3391_s26 = scalar_lea.vmem [#allocation2], %s2182_s17  ;;  %s3397_s27 = scalar_lea.vmem [#allocation4], %s2182_s17 }
  0x2f   : > { %2322 = vmatprep.subr.bf16.mxu1 %v2454_v9  ;;  %v2482_v37 = vld [vmem:[%s3294_s15 + $0x10] sm:$0xff]   ;;  %v2484_v39 = vld [vmem:[%s3294_s15 + $0x18] sm:$0xff]   ;;  %v2486_v41 = vld [vmem:[%s3294_s15 + $0x20] sm:$0xff]   ;;  %s2011_s22 = sshll.u32 %s3391_s26, 4  ;;  %s2030_s14 = sshll.u32 %s3397_s27, 4  ;;  %s3829_s22 = int_to_ptr.vmem [resolvable:$true] %s2011_s22  ;;  %s3840_s14 = int_to_ptr.vmem [resolvable:$true] %s2030_s14 }
  0x30   : > { %v2487_v42 = vld [vmem:[%s3288_s12 + $0x28] sm:$0xff]   ;;  %v2489_v44 = vld [vmem:[%s3288_s12 + $0x30] sm:$0xff]   ;;  %v2491_v46 = vld [vmem:[%s3288_s12 + $0x38] sm:$0xff]   ;;  %s3021_s9 = scalar_lea.vmem %s3829_s22, 8192 }
  0x31   : > { %v2488_v43 = vld [vmem:[%s3294_s15 + $0x28] sm:$0xff]   ;;  %v2490_v45 = vld [vmem:[%s3294_s15 + $0x30] sm:$0xff]   ;;  %v2492_v47 = vld [vmem:[%s3294_s15 + $0x38] sm:$0xff]   ;;  %p3022_p0 = scmp.ne.s32.totalorder %s3829_s22, %s3021_s9 }
  0x32   : > { %v2493_v48 = vld [vmem:[%s3288_s12 + $0x40] sm:$0xff]   ;;  %v2495_v50 = vld [vmem:[%s3288_s12 + $0x48] sm:$0xff]   ;;  %v2497_v52 = vld [vmem:[%s3288_s12 + $0x50] sm:$0xff]  }
  0x33   : > { %v2494_v49 = vld [vmem:[%s3294_s15 + $0x40] sm:$0xff]   ;;  %v2496_v51 = vld [vmem:[%s3294_s15 + $0x48] sm:$0xff]   ;;  %v2498_v53 = vld [vmem:[%s3294_s15 + $0x50] sm:$0xff]   ;;  %p3023_p1 = pnand %p3022_p0, %p3235_p3 }
  0x34   : > { %v2499_v54 = vld [vmem:[%s3288_s12 + $0x58] sm:$0xff]   ;;  %v2501_v56 = vld [vmem:[%s3288_s12 + $0x60] sm:$0xff]   ;;  %v2503_v58 = vld [vmem:[%s3288_s12 + $0x68] sm:$0xff]  }
  0x35   : > { %2275 = vmatpush3.bf16.xpose.msra.mxu0 %v2455_v10  ;;  %v2500_v55 = vld [vmem:[%s3294_s15 + $0x58] sm:$0xff]   ;;  %v2502_v57 = vld [vmem:[%s3294_s15 + $0x60] sm:$0xff]   ;;  %v2504_v59 = vld [vmem:[%s3294_s15 + $0x68] sm:$0xff]   ;;  %p3024_p2 = pneg %p3023_p1 }
  0x36   : > { %2323 = vmatpush3.bf16.xpose.msra.mxu1 %v2456_v11  ;;  %2276 = vmatprep.subr.bf16.mxu0 %v2457_v12  ;;  %v2505_v60 = vld [vmem:[%s3288_s12 + $0x70] sm:$0xff]   ;;  %v2507_v62 = vld [vmem:[%s3288_s12 + $0x78] sm:$0xff]   ;;  %s3025_s12 = sshll.u32 %s3149_s10, 4  ;;  %s3026_s12 = int_to_ptr.vmem [resolvable:$false] %s3025_s12 }
  0x37   : > { %2324 = vmatprep.subr.bf16.mxu1 %v2458_v13  ;;  %v2506_v61 = vld [vmem:[%s3294_s15 + $0x70] sm:$0xff]   ;;  %v2508_v63 = vld [vmem:[%s3294_s15 + $0x78] sm:$0xff]   ;;  %s3027_s0 = scalar_lea.vmem %s3026_s12, 16384  ;;  %p3028_p4 = scmp.lt.s32.totalorder %s3829_s22, %s3026_s12 }
  0x38   : > { %p3029_p5 = scmp.lt.s32.totalorder %s3027_s0, %s3021_s9 }
  0x3a   : > { %p3030_p6 = por %p3029_p5, %p3028_p4 }
  0x3c   : > { %p3031_p7 = pnand %p3030_p6, %p3024_p2 }
  0x3d   : > { %2277 = vmatpush3.bf16.xpose.msra.mxu0 %v2459_v14 }
  0x3e   : > { %2325 = vmatpush3.bf16.xpose.msra.mxu1 %v2460_v15  ;;  %2278 = vmatprep.subr.bf16.mxu0 %v2461_v16 }
  0x3f   : > { %2326 = vmatprep.subr.bf16.mxu1 %v2462_v17 }
  0x45   : > { %2279 = vmatpush3.bf16.xpose.msra.mxu0 %v2463_v18 }
  0x46   : > { %2327 = vmatpush3.bf16.xpose.msra.mxu1 %v2464_v19  ;;  %2280 = vmatprep.subr.bf16.mxu0 %v2465_v20 }
  0x47   : > { %2328 = vmatprep.subr.bf16.mxu1 %v2466_v23 }
  0x4d   : > { %2281 = vmatpush3.bf16.xpose.msra.mxu0 %v2467_v24 }
  0x4e   : > { %2329 = vmatpush3.bf16.xpose.msra.mxu1 %v2468_v25  ;;  %2282 = vmatprep.subr.bf16.mxu0 %v2469_v26 }
  0x4f   : > { %2330 = vmatprep.subr.bf16.mxu1 %v2470_v27 }
  0x55   : > { %2283 = vmatpush3.bf16.xpose.msra.mxu0 %v2471_v28 }
  0x56   : > { %2331 = vmatpush3.bf16.xpose.msra.mxu1 %v2472_v29  ;;  %2284 = vmatprep.subr.bf16.mxu0 %v2473_v30 }
  0x57   : > { %2332 = vmatprep.subr.bf16.mxu1 %v2474_v31 }
  0x5d   : > { %2285 = vmatpush3.bf16.xpose.msra.mxu0 %v2475_v32 }
  0x5e   : > { %2333 = vmatpush3.bf16.xpose.msra.mxu1 %v2476_v33 }
  0x64   : > { %2287 = vmatmul.mubr.bf16.vlgmr.msra.gmra.mrb[0].mxu0 %v2477_v21 }
  0x65   : > { %2335 = vmatmul.mubr.bf16.vlgmr.msra.gmra.mrb[0].mxu1 %v2478_v22  ;;  %2288 = vmatprep.mubr.bf16.mxu0 %v2479_v34 }
  0x66   : > { %2336 = vmatprep.mubr.bf16.mxu1 %v2480_v35 }
  0x6c   : > { %2289 = vmatmul.mubr.bf16.gmra.mrb[4].mxu0 %v2479_v34 }
  0x6d   : > { %2337 = vmatmul.mubr.bf16.gmra.mrb[4].mxu1 %v2480_v35  ;;  %2290 = vmatprep.mubr.bf16.mxu0 %v2481_v36 }
  0x6e   : > { %2338 = vmatprep.mubr.bf16.mxu1 %v2482_v37 }
  0x74   : > { %2291 = vmatmul.mubr.bf16.gmra.mrb[8].mxu0 %v2481_v36 }
  0x75   : > { %2339 = vmatmul.mubr.bf16.gmra.mrb[8].mxu1 %v2482_v37  ;;  %2292 = vmatprep.mubr.bf16.mxu0 %v2483_v38 }
  0x76   : > { %2340 = vmatprep.mubr.bf16.mxu1 %v2484_v39 }
  0x7c   : > { %2293 = vmatmul.mubr.bf16.gmra.mrb[12].mxu0 %v2483_v38 }
  0x7d   : > { %2341 = vmatmul.mubr.bf16.gmra.mrb[12].mxu1 %v2484_v39  ;;  %2294 = vmatprep.mubr.bf16.mxu0 %v2485_v40 }
  0x7e   : > { %2342 = vmatprep.mubr.bf16.mxu1 %v2486_v41 }
  0x84   : > { %2295 = vmatmul.mubr.bf16.gmra.mrb[16].mxu0 %v2485_v40 }
  0x85   : > { %2343 = vmatmul.mubr.bf16.gmra.mrb[16].mxu1 %v2486_v41  ;;  %2296 = vmatprep.mubr.bf16.mxu0 %v2487_v42 }
  0x86   : > { %2344 = vmatprep.mubr.bf16.mxu1 %v2488_v43 }
  0x8c   : > { %2297 = vmatmul.mubr.bf16.gmra.mrb[20].mxu0 %v2487_v42 }
  0x8d   : > { %2345 = vmatmul.mubr.bf16.gmra.mrb[20].mxu1 %v2488_v43  ;;  %2298 = vmatprep.mubr.bf16.mxu0 %v2489_v44 }
  0x8e   : > { %2346 = vmatprep.mubr.bf16.mxu1 %v2490_v45 }
  0x94   : > { %2299 = vmatmul.mubr.bf16.gmra.mrb[24].mxu0 %v2489_v44 }
  0x95   : > { %2347 = vmatmul.mubr.bf16.gmra.mrb[24].mxu1 %v2490_v45  ;;  %2300 = vmatprep.mubr.bf16.mxu0 %v2491_v46 }
  0x96   : > { %2348 = vmatprep.mubr.bf16.mxu1 %v2492_v47 }
  0x9c   : > { %2301 = vmatmul.mubr.bf16.gmra.mrb[28].mxu0 %v2491_v46 }
  0x9d   : > { %2349 = vmatmul.mubr.bf16.gmra.mrb[28].mxu1 %v2492_v47  ;;  %2302 = vmatprep.mubr.bf16.mxu0 %v2493_v48 }
  0x9e   : > { %2350 = vmatprep.mubr.bf16.mxu1 %v2494_v49 }
  0xa4   : > { %2303 = vmatmul.mubr.bf16.gmra.mrb[32].mxu0 %v2493_v48 }
  0xa5   : > { %2351 = vmatmul.mubr.bf16.gmra.mrb[32].mxu1 %v2494_v49  ;;  %2304 = vmatprep.mubr.bf16.mxu0 %v2495_v50 }
  0xa6   : > { %2352 = vmatprep.mubr.bf16.mxu1 %v2496_v51 }
  0xac   : > { %2305 = vmatmul.mubr.bf16.gmra.mrb[36].mxu0 %v2495_v50 }
  0xad   : > { %2353 = vmatmul.mubr.bf16.gmra.mrb[36].mxu1 %v2496_v51  ;;  %2306 = vmatprep.mubr.bf16.mxu0 %v2497_v52 }
  0xae   : > { %2354 = vmatprep.mubr.bf16.mxu1 %v2498_v53 }
  0xb4   : > { %2307 = vmatmul.mubr.bf16.gmra.mrb[40].mxu0 %v2497_v52 }
  0xb5   : > { %2355 = vmatmul.mubr.bf16.gmra.mrb[40].mxu1 %v2498_v53  ;;  %2308 = vmatprep.mubr.bf16.mxu0 %v2499_v54 }
  0xb6   : > { %2356 = vmatprep.mubr.bf16.mxu1 %v2500_v55 }
  0xbc   : > { %2309 = vmatmul.mubr.bf16.gmra.mrb[44].mxu0 %v2499_v54 }
  0xbd   : > { %2357 = vmatmul.mubr.bf16.gmra.mrb[44].mxu1 %v2500_v55  ;;  %2310 = vmatprep.mubr.bf16.mxu0 %v2501_v56 }
  0xbe   : > { %2358 = vmatprep.mubr.bf16.mxu1 %v2502_v57 }
  0xc4   : > { %2311 = vmatmul.mubr.bf16.gmra.mrb[48].mxu0 %v2501_v56 }
  0xc5   : > { %2359 = vmatmul.mubr.bf16.gmra.mrb[48].mxu1 %v2502_v57  ;;  %2312 = vmatprep.mubr.bf16.mxu0 %v2503_v58 }
  0xc6   : > { %2360 = vmatprep.mubr.bf16.mxu1 %v2504_v59 }
  0xcc   : > { %2313 = vmatmul.mubr.bf16.gmra.mrb[52].mxu0 %v2503_v58 }
  0xcd   : > { %2361 = vmatmul.mubr.bf16.gmra.mrb[52].mxu1 %v2504_v59  ;;  %2314 = vmatprep.mubr.bf16.mxu0 %v2505_v60 }
  0xce   : > { %2362 = vmatprep.mubr.bf16.mxu1 %v2506_v61 }
  0xd4   : > { %2315 = vmatmul.mubr.bf16.gmra.mrb[56].mxu0 %v2505_v60 }
  0xd5   : > { %2363 = vmatmul.mubr.bf16.gmra.mrb[56].mxu1 %v2506_v61  ;;  %2316 = vmatprep.mubr.bf16.mxu0 %v2507_v62 }
  0xd6   : > { %2364 = vmatprep.mubr.bf16.mxu1 %v2508_v63 }
  0xdc   : > { %2317 = vmatmul.mubr.bf16.gmra.mrb[60].mxu0 %v2507_v62 }
  0xdd   : > { %2365 = vmatmul.mubr.bf16.gmra.mrb[60].mxu1 %v2508_v63 }
 0x137   : > { %v613_v0 = vpop.f32.mrb[0].mxu0 }
 0x138   : > { %v772_v1 = vsub.f32 0.0, %v613_v0  ;;  %v1446_v2 = vpop.f32.mrb[0].mxu1  ;;  %v615_v3 = vpop.f32.mrb[1].mxu0 }
 0x139   : > { %v1605_v4 = vsub.f32 0.0, %v1446_v2  ;;  %v773_v5 = vsub.f32 0.0, %v615_v3  ;;  %v1448_v6 = vpop.f32.mrb[1].mxu1  ;;  %v617_v7 = vpop.f32.mrb[2].mxu0 }
 0x13a   : > { %v836_v8 = vmul.f32 1.442695, %v772_v1  ;;  %v1606_v9 = vsub.f32 0.0, %v1448_v6  ;;  %v774_v10 = vsub.f32 0.0, %v617_v7  ;;  %v1450_v11 = vpop.f32.mrb[2].mxu1  ;;  %v619_v12 = vpop.f32.mrb[3].mxu0 }
 0x13b   : > { %v1669_v13 = vmul.f32 1.442695, %v1605_v4  ;;  %v838_v14 = vmul.f32 1.442695, %v773_v5  ;;  %v1607_v15 = vsub.f32 0.0, %v1450_v11  ;;  %v775_v16 = vsub.f32 0.0, %v619_v12 }
 0x13c   : > { %2509 = vpow2.f32 %v836_v8  ;;  %v1671_v17 = vmul.f32 1.442695, %v1606_v9  ;;  %v840_v18 = vmul.f32 1.442695, %v774_v10  ;;  %v1452_v19 = vpop.f32.mrb[3].mxu1 }
 0x13d   : > { %2511 = vpow2.f32 %v1669_v13  ;;  %v1673_v20 = vmul.f32 1.442695, %v1607_v15  ;;  %v1608_v21 = vsub.f32 0.0, %v1452_v19  ;;  %v842_v22 = vmul.f32 1.442695, %v775_v16 }
 0x13e   : > { %2513 = vpow2.f32 %v838_v14 }
 0x13f   : > { %2515 = vpow2.f32 %v1671_v17  ;;  %v1675_v23 = vmul.f32 1.442695, %v1608_v21  ;;  %v623_v24 = vpop.f32.mrb[4].mxu0 }
 0x140   : > { %2517 = vpow2.f32 %v840_v18  ;;  %v776_v25 = vsub.f32 0.0, %v623_v24  ;;  %v1456_v26 = vpop.f32.mrb[4].mxu1  ;;  %v625_v27 = vpop.f32.mrb[5].mxu0 }
 0x141   : > { %2519 = vpow2.f32 %v1673_v20  ;;  %v1609_v28 = vsub.f32 0.0, %v1456_v26  ;;  %v777_v29 = vsub.f32 0.0, %v625_v27  ;;  %v1458_v30 = vpop.f32.mrb[5].mxu1  ;;  %v627_v31 = vpop.f32.mrb[6].mxu0 }
 0x142   : > { %2521 = vpow2.f32 %v842_v22  ;;  %v844_v32 = vmul.f32 1.442695, %v776_v25  ;;  %v1610_v33 = vsub.f32 0.0, %v1458_v30  ;;  %v778_v34 = vsub.f32 0.0, %v627_v31  ;;  %v3341_v35 = vpop.f32.mrb[6].mxu1  ;;  %v3343_v36 = vpop.f32.mrb[7].mxu0 }
 0x143   : > { %2523 = vpow2.f32 %v1675_v23  ;;  %v1677_v37 = vmul.f32 1.442695, %v1609_v28  ;;  %v846_v38 = vmul.f32 1.442695, %v777_v29  ;;  %v3345_v39 = vpop.f32.mrb[7].mxu1  ;;  %v1611_v3 = vsub.f32 0.0, %v3341_v35 }
 0x144   : > { %2525 = vpow2.f32 %v844_v32  ;;  %v1679_v40 = vmul.f32 1.442695, %v1610_v33  ;;  %v848_v41 = vmul.f32 1.442695, %v778_v34  ;;  %v779_v6 = vsub.f32 0.0, %v3343_v36 }
 0x145   : > { %2527 = vpow2.f32 %v1677_v37  ;;  %v1612_v10 = vsub.f32 0.0, %v3345_v39  ;;  %v1681_v20 = vmul.f32 1.442695, %v1611_v3 }
 0x146   : > { %v2510_v42 = vpop.eup %2509  ;;  %2529 = vpow2.f32 %v846_v38  ;;  %v850_v26 = vmul.f32 1.442695, %v779_v6 }
 0x147   : > { %v2512_v43 = vpop.eup %2511  ;;  %v964_v44 = vadd.f32 1.0, %v2510_v42  ;;  %2531 = vpow2.f32 %v1679_v40  ;;  %v3347_v45 = vpop.f32.mrb[8].mxu0  ;;  %v1683_v30 = vmul.f32 1.442695, %v1612_v10 }
 0x148   : > { %v2514_v46 = vpop.eup %2513  ;;  %v1797_v47 = vadd.f32 1.0, %v2512_v43  ;;  %2533 = vpow2.f32 %v848_v41  ;;  %v3349_v48 = vpop.f32.mrb[8].mxu1  ;;  %v780_v15 = vsub.f32 0.0, %v3347_v45 }
 0x149   : > { %v3351_v49 = vpop.f32.mrb[9].mxu0  ;;  %v2516_v50 = vpop.eup %2515  ;;  %2535 = vrcp.f32 %v964_v44  ;;  %v965_v51 = vadd.f32 1.0, %v2514_v46  ;;  %v1613_v21 = vsub.f32 0.0, %v3349_v48 }
 0x14a   : > { %v3353_v52 = vpop.f32.mrb[9].mxu1  ;;  %v3355_v53 = vpop.f32.mrb[10].mxu0  ;;  %2537 = vrcp.f32 %v1797_v47  ;;  %v1798_v55 = vadd.f32 1.0, %v2516_v50  ;;  %v781_v27 = vsub.f32 0.0, %v3351_v49  ;;  %v852_v33 = vmul.f32 1.442695, %v780_v15 }
 0x14b   : > { %v2518_v54 = vpop.eup %2517  ;;  %v3357_v56 = vpop.f32.mrb[10].mxu1  ;;  %2539 = vrcp.f32 %v965_v51  ;;  %v1614_v31 = vsub.f32 0.0, %v3353_v52  ;;  %v782_v34 = vsub.f32 0.0, %v3355_v53  ;;  %v1685_v36 = vmul.f32 1.442695, %v1613_v21 }
 0x14c   : > { %v3359_v57 = vpop.f32.mrb[11].mxu0  ;;  %v2520_v58 = vpop.eup %2519  ;;  %v966_v59 = vadd.f32 1.0, %v2518_v54  ;;  %2541 = vrcp.f32 %v1798_v55  ;;  %v1615_v37 = vsub.f32 0.0, %v3357_v56  ;;  %v854_v39 = vmul.f32 1.442695, %v781_v27 }
 0x14d   : > { %v3364_v60 = vpop.f32.mrb[11].mxu1  ;;  %v2522_v61 = vpop.eup %2521  ;;  %v1799_v62 = vadd.f32 1.0, %v2520_v58  ;;  %v783_v40 = vsub.f32 0.0, %v3359_v57  ;;  %v1687_v43 = vmul.f32 1.442695, %v1614_v31 }
 0x14e   : > { %v2524_v63 = vpop.eup %2523  ;;  %2543 = vrcp.f32 %v966_v59  ;;  %v967_v0 = vadd.f32 1.0, %v2522_v61  ;;  %v1616_v44 = vsub.f32 0.0, %v3364_v60  ;;  %v856_v48 = vmul.f32 1.442695, %v782_v34 }
 0x14f   : > { %v2526_v1 = vpop.eup %2525  ;;  %2545 = vrcp.f32 %v1799_v62  ;;  %v1800_v2 = vadd.f32 1.0, %v2524_v63  ;;  %v3369_v7 = vpop.f32.mrb[12].mxu0  ;;  %v1689_v53 = vmul.f32 1.442695, %v1615_v37  ;;  %v858_v58 = vmul.f32 1.442695, %v783_v40 }
 0x150   : > { %v2528_v4 = vpop.eup %2527  ;;  %2547 = vrcp.f32 %v967_v0  ;;  %v968_v5 = vadd.f32 1.0, %v2526_v1  ;;  %v3372_v11 = vpop.f32.mrb[12].mxu1  ;;  %v784_v49 = vsub.f32 0.0, %v3369_v7  ;;  %v1691_v61 = vmul.f32 1.442695, %v1616_v44 }
 0x151   : > { %v2530_v8 = vpop.eup %2529  ;;  %2549 = vrcp.f32 %v1800_v2  ;;  %v1801_v9 = vadd.f32 1.0, %v2528_v4  ;;  %v3374_v12 = vpop.f32.mrb[13].mxu0  ;;  %v1617_v54 = vsub.f32 0.0, %v3372_v11 }
 0x152   : > { %v2532_v13 = vpop.eup %2531  ;;  %2551 = vrcp.f32 %v968_v5  ;;  %v969_v14 = vadd.f32 1.0, %v2530_v8  ;;  %v3377_v16 = vpop.f32.mrb[13].mxu1  ;;  %v860_v63 = vmul.f32 1.442695, %v784_v49 }
 0x153   : > { %v3379_v17 = vpop.f32.mrb[14].mxu0  ;;  %v2534_v18 = vpop.eup %2533  ;;  %2553 = vrcp.f32 %v1801_v9  ;;  %v1802_v19 = vadd.f32 1.0, %v2532_v13  ;;  %v1693_v1 = vmul.f32 1.442695, %v1617_v54  ;;  %v1618_v40 = vsub.f32 0.0, %v3377_v16 }
 0x154   : > { %v3382_v22 = vpop.f32.mrb[14].mxu1  ;;  %v3384_v23 = vpop.f32.mrb[15].mxu0  ;;  %2555 = vrcp.f32 %v969_v14  ;;  %v970_v25 = vadd.f32 1.0, %v2534_v18 }
 0x155   : > { %v2536_v24 = vpop.eup %2535  ;;  %v3387_v28 = vpop.f32.mrb[15].mxu1  ;;  %2557 = vrcp.f32 %v1802_v19  ;;  %v1619_v54 = vsub.f32 0.0, %v3382_v22 }
 0x156   : > { %v2538_v29 = vpop.eup %2537  ;;  %1092 = vst [vmem:[%s3391_s26] sm:$0xff] %v2536_v24  ;;  %2559 = vrcp.f32 %v970_v25 }
 0x157   : > { %v2540_v32 = vpop.eup %2539  ;;  %1925 = vst [vmem:[%s3397_s27] sm:$0xff] %v2538_v29  ;;  %2561 = vpow2.f32 %v1681_v20  ;;  %v3405_v41 = vpop.f32.mrb[16].mxu0 }
 0x158   : > { %v2542_v35 = vpop.eup %2541  ;;  %1093 = vst [vmem:[%s3391_s26 + $0x8] sm:$0xff] %v2540_v32  ;;  %2563 = vpow2.f32 %v850_v26  ;;  %v3409_v45 = vpop.f32.mrb[16].mxu1 }
 0x159   : > { %v2544_v38 = vpop.eup %2543  ;;  %1926 = vst [vmem:[%s3397_s27 + $0x8] sm:$0xff] %v2542_v35  ;;  %2565 = vpow2.f32 %v1683_v30  ;;  %v3411_v46 = vpop.f32.mrb[17].mxu0  ;;  %v785_v35 = vsub.f32 0.0, %v3374_v12 }
 0x15a   : > { %v2546_v42 = vpop.eup %2545  ;;  %1094 = vst [vmem:[%s3391_s26 + $0x10] sm:$0xff] %v2544_v38  ;;  %2567 = vpow2.f32 %v852_v33  ;;  %v3415_v50 = vpop.f32.mrb[17].mxu1 }
 0x15b   : > { %v2548_v47 = vpop.eup %2547  ;;  %1927 = vst [vmem:[%s3397_s27 + $0x10] sm:$0xff] %v2546_v42  ;;  %v3417_v51 = vpop.f32.mrb[18].mxu0  ;;  %2569 = vpow2.f32 %v1685_v36 }
 0x15c   : > { %v2550_v52 = vpop.eup %2549  ;;  %1095 = vst [vmem:[%s3391_s26 + $0x18] sm:$0xff] %v2548_v47  ;;  %v3421_v55 = vpop.f32.mrb[18].mxu1  ;;  %2571 = vpow2.f32 %v854_v39 }
 0x15d   : > { %v3423_v56 = vpop.f32.mrb[19].mxu0  ;;  %v2552_v57 = vpop.eup %2551  ;;  %1928 = vst [vmem:[%s3397_s27 + $0x18] sm:$0xff] %v2550_v52  ;;  %2573 = vpow2.f32 %v1687_v43 }
 0x15e   : > { %v3426_v59 = vpop.f32.mrb[19].mxu1  ;;  %v2554_v60 = vpop.eup %2553  ;;  %1096 = vst [vmem:[%s3391_s26 + $0x20] sm:$0xff] %v2552_v57  ;;  %2575 = vpow2.f32 %v856_v48  ;;  %v786_v48 = vsub.f32 0.0, %v3379_v17 }
 0x15f   : > { %v2556_v62 = vpop.eup %2555  ;;  %1929 = vst [vmem:[%s3397_s27 + $0x20] sm:$0xff] %v2554_v60  ;;  %2577 = vpow2.f32 %v1689_v53  ;;  %v3432_v3 = vpop.f32.mrb[20].mxu0  ;;  %v862_v60 = vmul.f32 1.442695, %v785_v35 }
 0x160   : > { %v2558_v0 = vpop.eup %2557  ;;  %1097 = vst [vmem:[%s3391_s26 + $0x28] sm:$0xff] %v2556_v62  ;;  %2579 = vpow2.f32 %v858_v58  ;;  %v3435_v5 = vpop.f32.mrb[20].mxu1  ;;  %v864_v22 = vmul.f32 1.442695, %v786_v48 }
 0x161   : > { %v2560_v2 = vpop.eup %2559  ;;  %1930 = vst [vmem:[%s3397_s27 + $0x28] sm:$0xff] %v2558_v0  ;;  %2581 = vpow2.f32 %v1691_v61  ;;  %v3437_v6 = vpop.f32.mrb[21].mxu0  ;;  %v787_v61 = vsub.f32 0.0, %v3384_v23  ;;  %v1620_v0 = vsub.f32 0.0, %v3387_v28  ;;  %v1621_v23 = vsub.f32 0.0, %v3409_v45 }
 0x162   : > { %v2562_v4 = vpop.eup %2561  ;;  %1098 = vst [vmem:[%s3391_s26 + $0x30] sm:$0xff] %v2560_v2  ;;  %2583 = vpow2.f32 %v860_v63  ;;  %v3439_v9 = vpop.f32.mrb[21].mxu1  ;;  %v1695_v63 = vmul.f32 1.442695, %v1618_v40  ;;  %v788_v2 = vsub.f32 0.0, %v3405_v41  ;;  %v1622_v45 = vsub.f32 0.0, %v3415_v50 }
 0x163   : > { %v2564_v7 = vpop.eup %2563  ;;  %v1803_v8 = vadd.f32 1.0, %v2562_v4  ;;  %v3441_v10 = vpop.f32.mrb[22].mxu0  ;;  %2585 = vpow2.f32 %v1693_v1  ;;  %v866_v28 = vmul.f32 1.442695, %v787_v61  ;;  %v1701_v50 = vmul.f32 1.442695, %v1621_v23 }
 0x164   : > { %v2566_v11 = vpop.eup %2565  ;;  %v971_v13 = vadd.f32 1.0, %v2564_v7  ;;  %v3443_v14 = vpop.f32.mrb[22].mxu1  ;;  %v1697_v7 = vmul.f32 1.442695, %v1619_v54  ;;  %v1703_v40 = vmul.f32 1.442695, %v1622_v45 }
 0x165   : > { %v3445_v15 = vpop.f32.mrb[23].mxu0  ;;  %v2568_v18 = vpop.eup %2567  ;;  %2587 = vrcp.f32 %v1803_v8  ;;  %v1804_v19 = vadd.f32 1.0, %v2566_v11 }
 0x166   : > { %v3447_v20 = vpop.f32.mrb[23].mxu1  ;;  %v2570_v21 = vpop.eup %2569  ;;  %2589 = vrcp.f32 %v971_v13  ;;  %v972_v24 = vadd.f32 1.0, %v2568_v18  ;;  %v789_v13 = vsub.f32 0.0, %v3411_v46  ;;  %v868_v46 = vmul.f32 1.442695, %v788_v2 }
 0x167   : > { %v2572_v25 = vpop.eup %2571  ;;  %2591 = vrcp.f32 %v1804_v19  ;;  %v1805_v26 = vadd.f32 1.0, %v2570_v21  ;;  %v3449_v32 = vpop.f32.mrb[24].mxu0  ;;  %v1699_v21 = vmul.f32 1.442695, %v1620_v0 }
 0x168   : > { %v2574_v27 = vpop.eup %2573  ;;  %2593 = vrcp.f32 %v972_v24  ;;  %v973_v29 = vadd.f32 1.0, %v2572_v25  ;;  %v3452_v36 = vpop.f32.mrb[24].mxu1 }
 0x169   : > { %v2576_v30 = vpop.eup %2575  ;;  %2595 = vrcp.f32 %v1805_v26  ;;  %v1806_v31 = vadd.f32 1.0, %v2574_v27  ;;  %v3454_v37 = vpop.f32.mrb[25].mxu0  ;;  %v790_v27 = vsub.f32 0.0, %v3417_v51  ;;  %v791_v51 = vsub.f32 0.0, %v3423_v56 }
 0x16a   : > { %v2578_v33 = vpop.eup %2577  ;;  %2597 = vrcp.f32 %v973_v29  ;;  %v974_v34 = vadd.f32 1.0, %v2576_v30  ;;  %v3457_v42 = vpop.f32.mrb[25].mxu1 }
 0x16b   : > { %v2580_v38 = vpop.eup %2579  ;;  %2599 = vrcp.f32 %v1806_v31  ;;  %v1807_v39 = vadd.f32 1.0, %v2578_v33  ;;  %v3459_v43 = vpop.f32.mrb[26].mxu0  ;;  %v1623_v33 = vsub.f32 0.0, %v3421_v55  ;;  %v874_v56 = vmul.f32 1.442695, %v791_v51 }
 0x16c   : > { %v2582_v44 = vpop.eup %2581  ;;  %2601 = vrcp.f32 %v974_v34  ;;  %v975_v47 = vadd.f32 1.0, %v2580_v38  ;;  %v3462_v49 = vpop.f32.mrb[26].mxu1  ;;  %v870_v38 = vmul.f32 1.442695, %v789_v13 }
 0x16d   : > { %v3464_v12 = vpop.f32.mrb[27].mxu0  ;;  %v2584_v52 = vpop.eup %2583  ;;  %2603 = vrcp.f32 %v1807_v39  ;;  %v1808_v53 = vadd.f32 1.0, %v2582_v44  ;;  %v1705_v48 = vmul.f32 1.442695, %v1623_v33 }
 0x16e   : > { %v3467_v16 = vpop.f32.mrb[27].mxu1  ;;  %v2586_v57 = vpop.eup %2585  ;;  %2605 = vrcp.f32 %v975_v47  ;;  %v976_v58 = vadd.f32 1.0, %v2584_v52  ;;  %v872_v47 = vmul.f32 1.442695, %v790_v27 }
 0x16f   : > { %v2588_v17 = vpop.eup %2587  ;;  %2607 = vrcp.f32 %v1808_v53  ;;  %v1809_v62 = vadd.f32 1.0, %v2586_v57  ;;  %v3475_v8 = vpop.f32.mrb[28].mxu0 }
 0x170   : > { %v2590_v1 = vpop.eup %2589  ;;  %1931 = vst [vmem:[%s3397_s27 + $0x30] sm:$0xff] %v2588_v17  ;;  %2609 = vrcp.f32 %v976_v58  ;;  %v3479_v18 = vpop.f32.mrb[28].mxu1 }
 0x171   : > { %v2592_v4 = vpop.eup %2591  ;;  %1099 = vst [vmem:[%s3391_s26 + $0x38] sm:$0xff] %v2590_v1  ;;  %2611 = vrcp.f32 %v1809_v62  ;;  %v3481_v19 = vpop.f32.mrb[29].mxu0 }
 0x172   : > { %v2594_v11 = vpop.eup %2593  ;;  %1932 = vst [vmem:[%s3397_s27 + $0x38] sm:$0xff] %v2592_v4  ;;  %2613 = vpow2.f32 %v862_v60  ;;  %v3485_v24 = vpop.f32.mrb[29].mxu1 }
 0x173   : > { %v2596_v41 = vpop.eup %2595  ;;  %1100 = vst [vmem:[%s3391_s26 + $0x40] sm:$0xff] %v2594_v11  ;;  %2615 = vpow2.f32 %v1695_v63  ;;  %v3487_v25 = vpop.f32.mrb[30].mxu0 }
 0x174   : > { %v2598_v26 = vpop.eup %2597  ;;  %1933 = vst [vmem:[%s3397_s27 + $0x40] sm:$0xff] %v2596_v41  ;;  %2617 = vpow2.f32 %v864_v22  ;;  %v3491_v29 = vpop.f32.mrb[30].mxu1 }
 0x175   : > { %v3493_v30 = vpop.f32.mrb[31].mxu0  ;;  %v2600_v31 = vpop.eup %2599  ;;  %1101 = vst [vmem:[%s3391_s26 + $0x48] sm:$0xff] %v2598_v26  ;;  %2619 = vpow2.f32 %v1697_v7 }
 0x176   : > { %v3497_v34 = vpop.f32.mrb[31].mxu1  ;;  %v2602_v35 = vpop.eup %2601  ;;  %1934 = vst [vmem:[%s3397_s27 + $0x48] sm:$0xff] %v2600_v31  ;;  %2621 = vpow2.f32 %v866_v28 }
 0x177   : > { %v2604_v39 = vpop.eup %2603  ;;  %1102 = vst [vmem:[%s3391_s26 + $0x50] sm:$0xff] %v2602_v35  ;;  %2623 = vpow2.f32 %v1699_v21  ;;  %v3504_v52 = vpop.f32.mrb[32].mxu0 }
 0x178   : > { %v2606_v44 = vpop.eup %2605  ;;  %1935 = vst [vmem:[%s3397_s27 + $0x50] sm:$0xff] %v2604_v39  ;;  %2625 = vpow2.f32 %v868_v46  ;;  %v3507_v54 = vpop.f32.mrb[32].mxu1  ;;  %v1624_v39 = vsub.f32 0.0, %v3426_v59 }
 0x179   : > { %v2608_v55 = vpop.eup %2607  ;;  %1103 = vst [vmem:[%s3391_s26 + $0x58] sm:$0xff] %v2606_v44  ;;  %2627 = vpow2.f32 %v1701_v50  ;;  %v3509_v57 = vpop.f32.mrb[33].mxu0 }
 0x17a   : > { %v2610_v53 = vpop.eup %2609  ;;  %1936 = vst [vmem:[%s3397_s27 + $0x58] sm:$0xff] %v2608_v55  ;;  %2629 = vpow2.f32 %v870_v38  ;;  %v3512_v60 = vpop.f32.mrb[33].mxu1 }
 0x17b   : > { %v2612_v58 = vpop.eup %2611  ;;  %1104 = vst [vmem:[%s3391_s26 + $0x60] sm:$0xff] %v2610_v53  ;;  %2631 = vpow2.f32 %v1703_v40  ;;  %v3514_v61 = vpop.f32.mrb[34].mxu0 }
 0x17c   : > { %v2614_v17 = vpop.eup %2613  ;;  %1937 = vst [vmem:[%s3397_s27 + $0x60] sm:$0xff] %v2612_v58  ;;  %2633 = vpow2.f32 %v872_v47  ;;  %v3517_v62 = vpop.f32.mrb[34].mxu1 }
 0x17d   : > { %v3519_v63 = vpop.f32.mrb[35].mxu0  ;;  %v2616_v0 = vpop.eup %2615  ;;  %v977_v1 = vadd.f32 1.0, %v2614_v17  ;;  %2635 = vpow2.f32 %v1705_v48  ;;  %v792_v48 = vsub.f32 0.0, %v3432_v3  ;;  %v1625_v17 = vsub.f32 0.0, %v3435_v5 }
 0x17e   : > { %v3521_v22 = vpop.f32.mrb[35].mxu1  ;;  %v2618_v2 = vpop.eup %2617  ;;  %v1810_v4 = vadd.f32 1.0, %v2616_v0  ;;  %2637 = vpow2.f32 %v874_v56  ;;  %v1626_v3 = vsub.f32 0.0, %v3439_v9 }
 0x17f   : > { %v2620_v7 = vpop.eup %2619  ;;  %2639 = vrcp.f32 %v977_v1  ;;  %v978_v23 = vadd.f32 1.0, %v2618_v2  ;;  %v3523_v21 = vpop.f32.mrb[36].mxu0  ;;  %v793_v1 = vsub.f32 0.0, %v3437_v6  ;;  %v1709_v6 = vmul.f32 1.442695, %v1625_v17 }
 0x180   : > { %v2622_v11 = vpop.eup %2621  ;;  %2641 = vrcp.f32 %v1810_v4  ;;  %v1811_v28 = vadd.f32 1.0, %v2620_v7  ;;  %v3525_v46 = vpop.f32.mrb[36].mxu1  ;;  %v1707_v7 = vmul.f32 1.442695, %v1624_v39 }
 0x181   : > { %v2624_v13 = vpop.eup %2623  ;;  %2643 = vrcp.f32 %v978_v23  ;;  %v979_v41 = vadd.f32 1.0, %v2622_v11  ;;  %v3527_v27 = vpop.f32.mrb[37].mxu0 }
 0x182   : > { %v2626_v45 = vpop.eup %2625  ;;  %2645 = vrcp.f32 %v1811_v28  ;;  %v1812_v26 = vadd.f32 1.0, %v2624_v13  ;;  %v3529_v33 = vpop.f32.mrb[37].mxu1  ;;  %v876_v28 = vmul.f32 1.442695, %v792_v48  ;;  %v794_v13 = vsub.f32 0.0, %v3441_v10 }
 0x183   : > { %v2628_v31 = vpop.eup %2627  ;;  %2647 = vrcp.f32 %v979_v41  ;;  %v980_v50 = vadd.f32 1.0, %v2626_v45  ;;  %v3531_v35 = vpop.f32.mrb[38].mxu0  ;;  %v1627_v45 = vsub.f32 0.0, %v3443_v14  ;;  %v795_v10 = vsub.f32 0.0, %v3445_v15 }
 0x184   : > { %v2630_v38 = vpop.eup %2629  ;;  %2649 = vrcp.f32 %v1812_v26  ;;  %v1813_v51 = vadd.f32 1.0, %v2628_v31  ;;  %v3534_v40 = vpop.f32.mrb[38].mxu1  ;;  %v1711_v14 = vmul.f32 1.442695, %v1626_v3  ;;  %v880_v15 = vmul.f32 1.442695, %v794_v13 }
 0x185   : > { %v3536_v44 = vpop.f32.mrb[39].mxu0  ;;  %v2632_v47 = vpop.eup %2631  ;;  %2651 = vrcp.f32 %v980_v50  ;;  %v981_v55 = vadd.f32 1.0, %v2630_v38  ;;  %v878_v50 = vmul.f32 1.442695, %v793_v1  ;;  %v1630_v3 = vsub.f32 0.0, %v3457_v42 }
 0x186   : > { %v3539_v53 = vpop.f32.mrb[39].mxu1  ;;  %v2634_v56 = vpop.eup %2633  ;;  %2653 = vrcp.f32 %v1813_v51  ;;  %v1814_v58 = vadd.f32 1.0, %v2632_v47  ;;  %v1628_v47 = vsub.f32 0.0, %v3447_v20  ;;  %v1629_v20 = vsub.f32 0.0, %v3452_v36 }
 0x187   : > { %v2636_v0 = vpop.eup %2635  ;;  %2655 = vrcp.f32 %v981_v55  ;;  %v982_v59 = vadd.f32 1.0, %v2634_v56  ;;  %v3545_v5 = vpop.f32.mrb[40].mxu0 }
 0x188   : > { %v2638_v2 = vpop.eup %2637  ;;  %2657 = vrcp.f32 %v1814_v58  ;;  %v1815_v4 = vadd.f32 1.0, %v2636_v0  ;;  %v3549_v26 = vpop.f32.mrb[40].mxu1  ;;  %v796_v58 = vsub.f32 0.0, %v3449_v32  ;;  %v1715_v32 = vmul.f32 1.442695, %v1628_v47 }
 0x189   : > { %v2640_v23 = vpop.eup %2639  ;;  %2659 = vrcp.f32 %v982_v59  ;;  %v983_v11 = vadd.f32 1.0, %v2638_v2  ;;  %v3551_v31 = vpop.f32.mrb[41].mxu0  ;;  %v1713_v59 = vmul.f32 1.442695, %v1627_v45  ;;  %v882_v2 = vmul.f32 1.442695, %v795_v10 }
 0x18a   : > { %v2642_v41 = vpop.eup %2641  ;;  %1105 = vst [vmem:[%s3391_s26 + $0x68] sm:$0xff] %v2640_v23  ;;  %2661 = vrcp.f32 %v1815_v4  ;;  %v3555_v38 = vpop.f32.mrb[41].mxu1  ;;  %v797_v4 = vsub.f32 0.0, %v3454_v37  ;;  %v1717_v13 = vmul.f32 1.442695, %v1629_v20 }
 0x18b   : > { %v2644_v9 = vpop.eup %2643  ;;  %1938 = vst [vmem:[%s3397_s27 + $0x68] sm:$0xff] %v2642_v41  ;;  %2663 = vrcp.f32 %v983_v11  ;;  %v3557_v51 = vpop.f32.mrb[42].mxu0  ;;  %v884_v11 = vmul.f32 1.442695, %v796_v58  ;;  %v1719_v10 = vmul.f32 1.442695, %v1630_v3 }
 0x18c   : > { %v2646_v39 = vpop.eup %2645  ;;  %1106 = vst [vmem:[%s3391_s26 + $0x70] sm:$0xff] %v2644_v9  ;;  %2665 = vpow2.f32 %v1707_v7  ;;  %v3561_v55 = vpop.f32.mrb[42].mxu1  ;;  %v886_v42 = vmul.f32 1.442695, %v797_v4 }
 0x18d   : > { %v3563_v48 = vpop.f32.mrb[43].mxu0  ;;  %v2648_v56 = vpop.eup %2647  ;;  %1939 = vst [vmem:[%s3397_s27 + $0x70] sm:$0xff] %v2646_v39  ;;  %2667 = vpow2.f32 %v876_v28 }
 0x18e   : > { %v3567_v17 = vpop.f32.mrb[43].mxu1  ;;  %v2650_v0 = vpop.eup %2649  ;;  %1107 = vst [vmem:[%s3391_s26 + $0x78] sm:$0xff] %v2648_v56  ;;  %2669 = vpow2.f32 %v1709_v6 }
 0x18f   : > { %v2652_v1 = vpop.eup %2651  ;;  %1940 = vst [vmem:[%s3397_s27 + $0x78] sm:$0xff] %v2650_v0  ;;  %2671 = vpow2.f32 %v878_v50  ;;  %v3576_v36 = vpop.f32.mrb[44].mxu0 }
 0x190   : > { %v2654_v7 = vpop.eup %2653  ;;  %1108 = vst [vmem:[%s3391_s26 + $0x80] sm:$0xff] %v2652_v1  ;;  %2673 = vpow2.f32 %v1711_v14  ;;  %v3579_v37 = vpop.f32.mrb[44].mxu1 }
 0x191   : > { %v2656_v23 = vpop.eup %2655  ;;  %1941 = vst [vmem:[%s3397_s27 + $0x80] sm:$0xff] %v2654_v7  ;;  %2675 = vpow2.f32 %v880_v15  ;;  %v3581_v41 = vpop.f32.mrb[45].mxu0 }
 0x192   : > { %v2658_v28 = vpop.eup %2657  ;;  %1109 = vst [vmem:[%s3391_s26 + $0x88] sm:$0xff] %v2656_v23  ;;  %2677 = vpow2.f32 %v1713_v59  ;;  %v3584_v45 = vpop.f32.mrb[45].mxu1 }
 0x193   : > { %v2660_v6 = vpop.eup %2659  ;;  %1942 = vst [vmem:[%s3397_s27 + $0x88] sm:$0xff] %v2658_v28  ;;  %2679 = vpow2.f32 %v882_v2  ;;  %v3586_v9 = vpop.f32.mrb[46].mxu0 }
 0x194   : > { %v2662_v50 = vpop.eup %2661  ;;  %1110 = vst [vmem:[%s3391_s26 + $0x90] sm:$0xff] %v2660_v6  ;;  %2681 = vpow2.f32 %v1715_v32  ;;  %v3589_v39 = vpop.f32.mrb[46].mxu1 }
 0x195   : > { %v3591_v14 = vpop.f32.mrb[47].mxu0  ;;  %v2664_v47 = vpop.eup %2663  ;;  %1943 = vst [vmem:[%s3397_s27 + $0x90] sm:$0xff] %v2662_v50  ;;  %2683 = vpow2.f32 %v884_v11 }
 0x196   : > { %v3594_v56 = vpop.f32.mrb[47].mxu1  ;;  %v2666_v15 = vpop.eup %2665  ;;  %1111 = vst [vmem:[%s3391_s26 + $0x98] sm:$0xff] %v2664_v47  ;;  %2685 = vpow2.f32 %v1717_v13 }
 0x197   : > { %v2668_v58 = vpop.eup %2667  ;;  %v1816_v0 = vadd.f32 1.0, %v2666_v15  ;;  %2687 = vpow2.f32 %v886_v42  ;;  %v3597_v4 = vpop.f32.mrb[48].mxu0 }
 0x198   : > { %v2670_v59 = vpop.eup %2669  ;;  %v984_v20 = vadd.f32 1.0, %v2668_v58  ;;  %2689 = vpow2.f32 %v1719_v10  ;;  %v3599_v3 = vpop.f32.mrb[48].mxu1 }
 0x199   : > { %v2672_v1 = vpop.eup %2671  ;;  %2691 = vrcp.f32 %v1816_v0  ;;  %v1817_v2 = vadd.f32 1.0, %v2670_v59  ;;  %v3601_v23 = vpop.f32.mrb[49].mxu0 }
 0x19a   : > { %v2674_v7 = vpop.eup %2673  ;;  %2693 = vrcp.f32 %v984_v20  ;;  %v985_v32 = vadd.f32 1.0, %v2672_v1  ;;  %v3603_v13 = vpop.f32.mrb[49].mxu1  ;;  %v798_v1 = vsub.f32 0.0, %v3459_v43 }
 0x19b   : > { %v2676_v11 = vpop.eup %2675  ;;  %2695 = vrcp.f32 %v1817_v2  ;;  %v1818_v28 = vadd.f32 1.0, %v2674_v7  ;;  %v3605_v6 = vpop.f32.mrb[50].mxu0 }
 0x19c   : > { %3936 = vst [vmem:[#allocation8_spill] sm:$0xff] %v3605_v6  ;;  %v2678_v42 = vpop.eup %2677  ;;  %2697 = vrcp.f32 %v985_v32  ;;  %v986_v50 = vadd.f32 1.0, %v2676_v11  ;;  %v3607_v10 = vpop.f32.mrb[50].mxu1  ;;  %v1631_v32 = vsub.f32 0.0, %v3462_v49 }
 0x19d   : > { %3937 = vst [vmem:[#allocation9_spill] sm:$0xff] %v3607_v10  ;;  %v3609_v47 = vpop.f32.mrb[51].mxu0  ;;  %v2680_v15 = vpop.eup %2679  ;;  %2699 = vrcp.f32 %v1818_v28  ;;  %v1819_v58 = vadd.f32 1.0, %v2678_v42  ;;  %v1632_v42 = vsub.f32 0.0, %v3467_v16  ;;  %v1633_v16 = vsub.f32 0.0, %v3479_v18 }
 0x19e   : > { %3938 = vst [vmem:[#allocation10_spill] sm:$0xff] %v3609_v47  ;;  %v3611_v0 = vpop.f32.mrb[51].mxu1  ;;  %v2682_v59 = vpop.eup %2681  ;;  %2701 = vrcp.f32 %v986_v50  ;;  %v987_v20 = vadd.f32 1.0, %v2680_v15  ;;  %v799_v47 = vsub.f32 0.0, %v3464_v12  ;;  %v888_v15 = vmul.f32 1.442695, %v798_v1 }
 0x19f   : > { %3939 = vst [vmem:[#allocation11_spill] sm:$0xff] %v3611_v0  ;;  %v2684_v2 = vpop.eup %2683  ;;  %2703 = vrcp.f32 %v1819_v58  ;;  %v1820_v7 = vadd.f32 1.0, %v2682_v59  ;;  %v3617_v0 = vpop.f32.mrb[52].mxu0  ;;  %v800_v58 = vsub.f32 0.0, %v3475_v8  ;;  %v1723_v18 = vmul.f32 1.442695, %v1632_v42 }
 0x1a0   : > { %v2686_v11 = vpop.eup %2685  ;;  %2705 = vrcp.f32 %v987_v20  ;;  %v988_v10 = vadd.f32 1.0, %v2684_v2  ;;  %v3620_v49 = vpop.f32.mrb[52].mxu1  ;;  %v1721_v2 = vmul.f32 1.442695, %v1631_v32  ;;  %v890_v8 = vmul.f32 1.442695, %v799_v47 }
 0x1a1   : > { %v2688_v6 = vpop.eup %2687  ;;  %2707 = vrcp.f32 %v1820_v7  ;;  %v1821_v28 = vadd.f32 1.0, %v2686_v11  ;;  %v3622_v59 = vpop.f32.mrb[53].mxu0  ;;  %v1634_v32 = vsub.f32 0.0, %v3485_v24  ;;  %v892_v47 = vmul.f32 1.442695, %v800_v58 }
 0x1a2   : > { %v2690_v50 = vpop.eup %2689  ;;  %2709 = vrcp.f32 %v988_v10  ;;  %v989_v43 = vadd.f32 1.0, %v2688_v6  ;;  %3940 = vst [vmem:[#allocation12_spill] sm:$0xff] %v3622_v59  ;;  %v3625_v7 = vpop.f32.mrb[53].mxu1  ;;  %v801_v10 = vsub.f32 0.0, %v3481_v19  ;;  %v802_v19 = vsub.f32 0.0, %v3487_v25 }
 0x1a3   : > { %v2692_v12 = vpop.eup %2691  ;;  %2711 = vrcp.f32 %v1821_v28  ;;  %v1822_v20 = vadd.f32 1.0, %v2690_v50  ;;  %v3627_v11 = vpop.f32.mrb[54].mxu0  ;;  %v803_v42 = vsub.f32 0.0, %v3493_v30  ;;  %v1636_v25 = vsub.f32 0.0, %v3497_v34 }
 0x1a4   : > { %3941 = vst [vmem:[#allocation13_spill] sm:$0xff] %v3627_v11  ;;  %v2694_v6 = vpop.eup %2693  ;;  %1944 = vst [vmem:[%s3397_s27 + $0x98] sm:$0xff] %v2692_v12  ;;  %2713 = vrcp.f32 %v989_v43  ;;  %v3631_v1 = vpop.f32.mrb[54].mxu1  ;;  %v1725_v12 = vmul.f32 1.442695, %v1633_v16  ;;  %v804_v16 = vsub.f32 0.0, %v3504_v52 }
 0x1a5   : > { %v3633_v59 = vpop.f32.mrb[55].mxu0  ;;  %v2696_v28 = vpop.eup %2695  ;;  %1112 = vst [vmem:[%s3391_s26 + $0xa0] sm:$0xff] %v2694_v6  ;;  %2715 = vrcp.f32 %v1822_v20  ;;  %v1635_v6 = vsub.f32 0.0, %v3491_v29  ;;  %v894_v24 = vmul.f32 1.442695, %v801_v10 }
 0x1a6   : > { %v3637_v50 = vpop.f32.mrb[55].mxu1  ;;  %v2698_v11 = vpop.eup %2697  ;;  %1945 = vst [vmem:[%s3397_s27 + $0xa0] sm:$0xff] %v2696_v28  ;;  %2717 = vpow2.f32 %v888_v15  ;;  %v1727_v15 = vmul.f32 1.442695, %v1634_v32  ;;  %v896_v29 = vmul.f32 1.442695, %v802_v19 }
 0x1a7   : > { %3942 = vst [vmem:[#allocation14_spill] sm:$0xff] %v3637_v50  ;;  %v2700_v43 = vpop.eup %2699  ;;  %1113 = vst [vmem:[%s3391_s26 + $0xa8] sm:$0xff] %v2698_v11  ;;  %2719 = vpow2.f32 %v1721_v2  ;;  %v3647_v58 = vpop.f32.mrb[56].mxu0  ;;  %v1729_v10 = vmul.f32 1.442695, %v1635_v6 }
 0x1a8   : > { %v2702_v20 = vpop.eup %2701  ;;  %1946 = vst [vmem:[%s3397_s27 + $0xa8] sm:$0xff] %v2700_v43  ;;  %2721 = vpow2.f32 %v890_v8  ;;  %v3651_v11 = vpop.f32.mrb[56].mxu1  ;;  %v898_v32 = vmul.f32 1.442695, %v803_v42  ;;  %v1731_v19 = vmul.f32 1.442695, %v1636_v25 }
 0x1a9   : > { %v2704_v50 = vpop.eup %2703  ;;  %1114 = vst [vmem:[%s3391_s26 + $0xb0] sm:$0xff] %v2702_v20  ;;  %2723 = vpow2.f32 %v1723_v18  ;;  %v3653_v8 = vpop.f32.mrb[57].mxu0  ;;  %v900_v6 = vmul.f32 1.442695, %v804_v16 }
 0x1aa   : > { %v2706_v2 = vpop.eup %2705  ;;  %1947 = vst [vmem:[%s3397_s27 + $0xb0] sm:$0xff] %v2704_v50  ;;  %2725 = vpow2.f32 %v892_v47  ;;  %v3656_v34 = vpop.f32.mrb[57].mxu1 }
 0x1ab   : > { %v2708_v30 = vpop.eup %2707  ;;  %1115 = vst [vmem:[%s3391_s26 + $0xb8] sm:$0xff] %v2706_v2  ;;  %2727 = vpow2.f32 %v1725_v12  ;;  %v3658_v28 = vpop.f32.mrb[58].mxu0 }
 0x1ac   : > { %v2710_v18 = vpop.eup %2709  ;;  %1948 = vst [vmem:[%s3397_s27 + $0xb8] sm:$0xff] %v2708_v30  ;;  %2729 = vpow2.f32 %v894_v24  ;;  %v3661_v52 = vpop.f32.mrb[58].mxu1 }
 0x1ad   : > { %v3663_v50 = vpop.f32.mrb[59].mxu0  ;;  %v2712_v47 = vpop.eup %2711  ;;  %1116 = vst [vmem:[%s3391_s26 + $0xc0] sm:$0xff] %v2710_v18  ;;  %2731 = vpow2.f32 %v1727_v15 }
 0x1ae   : > { %v3666_v43 = vpop.f32.mrb[59].mxu1  ;;  %v2714_v12 = vpop.eup %2713  ;;  %1949 = vst [vmem:[%s3397_s27 + $0xc0] sm:$0xff] %v2712_v47  ;;  %2733 = vpow2.f32 %v896_v29 }
 0x1af   : > { %3943 = vst [vmem:[#allocation15_spill] sm:$0xff] %v3666_v43  ;;  %v2716_v20 = vpop.eup %2715  ;;  %1117 = vst [vmem:[%s3391_s26 + $0xc8] sm:$0xff] %v2714_v12  ;;  %2735 = vpow2.f32 %v1729_v10  ;;  %v3671_v30 = vpop.f32.mrb[60].mxu0 }
 0x1b0   : > { %v2718_v24 = vpop.eup %2717  ;;  %1950 = vst [vmem:[%s3397_s27 + $0xc8] sm:$0xff] %v2716_v20  ;;  %2737 = vpow2.f32 %v898_v32  ;;  %v3673_v25 = vpop.f32.mrb[60].mxu1 }
 0x1b1   : > { %v2720_v42 = vpop.eup %2719  ;;  %v990_v2 = vadd.f32 1.0, %v2718_v24  ;;  %2739 = vpow2.f32 %v1731_v19  ;;  %3944 = vst [vmem:[#allocation16_spill] sm:$0xff] %v3673_v25  ;;  %v3675_v43 = vpop.f32.mrb[61].mxu0 }
 0x1b2   : > { %v2722_v18 = vpop.eup %2721  ;;  %v1823_v15 = vadd.f32 1.0, %v2720_v42  ;;  %2741 = vpow2.f32 %v900_v6  ;;  %3945 = vst [vmem:[#allocation17_spill] sm:$0xff] %v3675_v43  ;;  %v3677_v47 = vpop.f32.mrb[61].mxu1 }
 0x1b3   : > { %v2724_v29 = vpop.eup %2723  ;;  %2743 = vrcp.f32 %v990_v2  ;;  %v991_v16 = vadd.f32 1.0, %v2722_v18  ;;  %3946 = vst [vmem:[#allocation18_spill] sm:$0xff] %v3677_v47  ;;  %v3679_v10 = vpop.f32.mrb[62].mxu0 }
 0x1b4   : > { %3947 = vst [vmem:[#allocation19_spill] sm:$0xff] %v3679_v10  ;;  %v2726_v32 = vpop.eup %2725  ;;  %2745 = vrcp.f32 %v1823_v15  ;;  %v1824_v12 = vadd.f32 1.0, %v2724_v29  ;;  %v3681_v19 = vpop.f32.mrb[62].mxu1  ;;  %v1637_v15 = vsub.f32 0.0, %v3507_v54 }
 0x1b5   : > { %3948 = vst [vmem:[#allocation20_spill] sm:$0xff] %v3681_v19  ;;  %v3683_v20 = vpop.f32.mrb[63].mxu0  ;;  %v2728_v24 = vpop.eup %2727  ;;  %2747 = vrcp.f32 %v991_v16  ;;  %v992_v6 = vadd.f32 1.0, %v2726_v32 }
 0x1b6   : > { %3949 = vst [vmem:[#allocation21_spill] sm:$0xff] %v3683_v20  ;;  %v3685_v42 = vpop.f32.mrb[63].mxu1  ;;  %v2730_v43 = vpop.eup %2729  ;;  %2749 = vrcp.f32 %v1824_v12  ;;  %v1825_v2 = vadd.f32 1.0, %v2728_v24  ;;  %v805_v20 = vsub.f32 0.0, %v3509_v57 }
 0x1b7   : > { %3950 = vst [vmem:[#allocation22_spill] sm:$0xff] %v3685_v42  ;;  %v2732_v18 = vpop.eup %2731  ;;  %2751 = vrcp.f32 %v992_v6  ;;  %v993_v47 = vadd.f32 1.0, %v2730_v43  ;;  %v1638_v42 = vsub.f32 0.0, %v3512_v60  ;;  %v806_v43 = vsub.f32 0.0, %v3514_v61 }
 0x1b8   : > { %v2734_v25 = vpop.eup %2733  ;;  %2753 = vrcp.f32 %v1825_v2  ;;  %v1826_v10 = vadd.f32 1.0, %v2732_v18  ;;  %v1733_v2 = vmul.f32 1.442695, %v1637_v15  ;;  %v807_v60 = vsub.f32 0.0, %v3519_v63 }
 0x1b9   : > { %v2736_v29 = vpop.eup %2735  ;;  %2755 = vrcp.f32 %v993_v47  ;;  %v994_v19 = vadd.f32 1.0, %v2734_v25  ;;  %v1639_v25 = vsub.f32 0.0, %v3517_v62  ;;  %v1640_v61 = vsub.f32 0.0, %v3521_v22 }
 0x1ba   : > { %v2738_v16 = vpop.eup %2737  ;;  %2757 = vrcp.f32 %v1826_v10  ;;  %v1827_v32 = vadd.f32 1.0, %v2736_v29  ;;  %v902_v10 = vmul.f32 1.442695, %v805_v20  ;;  %v904_v15 = vmul.f32 1.442695, %v806_v43 }
 0x1bb   : > { %v2740_v12 = vpop.eup %2739  ;;  %2759 = vrcp.f32 %v994_v19  ;;  %v995_v24 = vadd.f32 1.0, %v2738_v16  ;;  %v1735_v19 = vmul.f32 1.442695, %v1638_v42  ;;  %v808_v62 = vsub.f32 0.0, %v3523_v21 }
 0x1bc   : > { %v2742_v6 = vpop.eup %2741  ;;  %2761 = vrcp.f32 %v1827_v32  ;;  %v1828_v54 = vadd.f32 1.0, %v2740_v12  ;;  %v1737_v20 = vmul.f32 1.442695, %v1639_v25  ;;  %v1641_v63 = vsub.f32 0.0, %v3525_v46 }
 0x1bd   : > { %v2744_v47 = vpop.eup %2743  ;;  %2763 = vrcp.f32 %v995_v24  ;;  %v996_v57 = vadd.f32 1.0, %v2742_v6  ;;  %v906_v42 = vmul.f32 1.442695, %v807_v60  ;;  %v809_v22 = vsub.f32 0.0, %v3527_v27 }
 0x1be   : > { %v2746_v18 = vpop.eup %2745  ;;  %1118 = vst [vmem:[%s3391_s26 + $0xd0] sm:$0xff] %v2744_v47  ;;  %2765 = vrcp.f32 %v1828_v54  ;;  %v1739_v24 = vmul.f32 1.442695, %v1640_v61  ;;  %v1642_v21 = vsub.f32 0.0, %v3529_v33  ;;  %v908_v6 = vmul.f32 1.442695, %v808_v62 }
 0x1bf   : > { %v2748_v29 = vpop.eup %2747  ;;  %1951 = vst [vmem:[%s3397_s27 + $0xd0] sm:$0xff] %v2746_v18  ;;  %2767 = vrcp.f32 %v996_v57  ;;  %v810_v46 = vsub.f32 0.0, %v3531_v35  ;;  %v1741_v27 = vmul.f32 1.442695, %v1641_v63  ;;  %v910_v33 = vmul.f32 1.442695, %v809_v22 }
 0x1c0   : > { %v2750_v16 = vpop.eup %2749  ;;  %1119 = vst [vmem:[%s3391_s26 + $0xd8] sm:$0xff] %v2748_v29  ;;  %2769 = vpow2.f32 %v1733_v2  ;;  %v1643_v2 = vsub.f32 0.0, %v3534_v40  ;;  %v1743_v57 = vmul.f32 1.442695, %v1642_v21 }
 0x1c1   : > { %v2752_v32 = vpop.eup %2751  ;;  %1952 = vst [vmem:[%s3397_s27 + $0xd8] sm:$0xff] %v2750_v16  ;;  %2771 = vpow2.f32 %v902_v10  ;;  %v912_v35 = vmul.f32 1.442695, %v810_v46 }
 0x1c2   : > { %v2754_v12 = vpop.eup %2753  ;;  %1120 = vst [vmem:[%s3391_s26 + $0xe0] sm:$0xff] %v2752_v32  ;;  %2773 = vpow2.f32 %v1735_v19  ;;  %v1745_v18 = vmul.f32 1.442695, %v1643_v2 }
 0x1c3   : > { %v2756_v43 = vpop.eup %2755  ;;  %1953 = vst [vmem:[%s3397_s27 + $0xe0] sm:$0xff] %v2754_v12  ;;  %2775 = vpow2.f32 %v904_v15 }
 0x1c4   : > { %v2758_v54 = vpop.eup %2757  ;;  %1121 = vst [vmem:[%s3391_s26 + $0xe8] sm:$0xff] %v2756_v43  ;;  %2777 = vpow2.f32 %v1737_v20 }
 0x1c5   : > { %v2760_v25 = vpop.eup %2759  ;;  %1954 = vst [vmem:[%s3397_s27 + $0xe8] sm:$0xff] %v2758_v54  ;;  %2779 = vpow2.f32 %v906_v42  ;;  %v811_v54 = vsub.f32 0.0, %v3536_v44 }
 0x1c6   : > { %v2762_v47 = vpop.eup %2761  ;;  %1122 = vst [vmem:[%s3391_s26 + $0xf0] sm:$0xff] %v2760_v25  ;;  %2781 = vpow2.f32 %v1739_v24  ;;  %v1644_v25 = vsub.f32 0.0, %v3539_v53 }
 0x1c7   : > { %v2764_v10 = vpop.eup %2763  ;;  %1955 = vst [vmem:[%s3397_s27 + $0xf0] sm:$0xff] %v2762_v47  ;;  %2783 = vpow2.f32 %v908_v6 }
 0x1c8   : > { %v2766_v60 = vpop.eup %2765  ;;  %1123 = vst [vmem:[%s3391_s26 + $0xf8] sm:$0xff] %v2764_v10  ;;  %2785 = vpow2.f32 %v1741_v27 }
 0x1c9   : > { %v2768_v19 = vpop.eup %2767  ;;  %1956 = vst [vmem:[%s3397_s27 + $0xf8] sm:$0xff] %v2766_v60  ;;  %2787 = vpow2.f32 %v910_v33  ;;  %v1645_v60 = vsub.f32 0.0, %v3549_v26  ;;  %v814_v26 = vsub.f32 0.0, %v3557_v51  ;;  %v1648_v51 = vsub.f32 0.0, %v3567_v17 }
 0x1ca   : > { %v2770_v40 = vpop.eup %2769  ;;  %1124 = vst [vmem:[%s3391_s26 + $0x100] sm:$0xff] %v2768_v19  ;;  %2789 = vpow2.f32 %v1743_v57  ;;  %v812_v57 = vsub.f32 0.0, %v3545_v5  ;;  %v914_v19 = vmul.f32 1.442695, %v811_v54  ;;  %v1646_v5 = vsub.f32 0.0, %v3555_v38 }
 0x1cb   : > { %v2772_v61 = vpop.eup %2771  ;;  %v1829_v29 = vadd.f32 1.0, %v2770_v40  ;;  %2791 = vpow2.f32 %v912_v35  ;;  %v813_v40 = vsub.f32 0.0, %v3551_v31  ;;  %v1647_v31 = vsub.f32 0.0, %v3561_v55 }
 0x1cc   : > { %v2774_v15 = vpop.eup %2773  ;;  %v997_v62 = vadd.f32 1.0, %v2772_v61  ;;  %2793 = vpow2.f32 %v1745_v18  ;;  %v815_v38 = vsub.f32 0.0, %v3563_v48  ;;  %v816_v55 = vsub.f32 0.0, %v3576_v36 }
 0x1cd   : > { %v2776_v16 = vpop.eup %2775  ;;  %2795 = vrcp.f32 %v1829_v29  ;;  %v1830_v20 = vadd.f32 1.0, %v2774_v15  ;;  %v1747_v29 = vmul.f32 1.442695, %v1644_v25  ;;  %v1649_v48 = vsub.f32 0.0, %v3579_v37 }
 0x1ce   : > { %v2778_v63 = vpop.eup %2777  ;;  %2797 = vrcp.f32 %v997_v62  ;;  %v998_v32 = vadd.f32 1.0, %v2776_v16  ;;  %v916_v62 = vmul.f32 1.442695, %v812_v57  ;;  %v922_v17 = vmul.f32 1.442695, %v815_v38 }
 0x1cf   : > { %v2780_v42 = vpop.eup %2779  ;;  %2799 = vrcp.f32 %v1830_v20  ;;  %v1831_v22 = vadd.f32 1.0, %v2778_v63  ;;  %v1749_v20 = vmul.f32 1.442695, %v1645_v60  ;;  %v1755_v36 = vmul.f32 1.442695, %v1648_v51 }
 0x1d0   : > { %v2782_v12 = vpop.eup %2781  ;;  %2801 = vrcp.f32 %v998_v32  ;;  %v999_v24 = vadd.f32 1.0, %v2780_v42  ;;  %v918_v32 = vmul.f32 1.442695, %v813_v40  ;;  %v1757_v37 = vmul.f32 1.442695, %v1649_v48 }
 0x1d1   : > { %v2784_v21 = vpop.eup %2783  ;;  %2803 = vrcp.f32 %v1831_v22  ;;  %v1832_v43 = vadd.f32 1.0, %v2782_v12  ;;  %v1751_v22 = vmul.f32 1.442695, %v1646_v5  ;;  %v818_v38 = vsub.f32 0.0, %v3586_v9 }
 0x1d2   : > { %v2786_v6 = vpop.eup %2785  ;;  %2805 = vrcp.f32 %v999_v24  ;;  %v1000_v46 = vadd.f32 1.0, %v2784_v21  ;;  %v920_v24 = vmul.f32 1.442695, %v814_v26  ;;  %v1651_v51 = vsub.f32 0.0, %v3589_v39 }
 0x1d3   : > { %v2788_v27 = vpop.eup %2787  ;;  %2807 = vrcp.f32 %v1832_v43  ;;  %v1833_v2 = vadd.f32 1.0, %v2786_v6  ;;  %v1753_v43 = vmul.f32 1.442695, %v1647_v31  ;;  %v1650_v31 = vsub.f32 0.0, %v3584_v45 }
 0x1d4   : > { %v2790_v33 = vpop.eup %2789  ;;  %2809 = vrcp.f32 %v1000_v46  ;;  %v1001_v47 = vadd.f32 1.0, %v2788_v27  ;;  %v817_v46 = vsub.f32 0.0, %v3581_v41  ;;  %v1652_v48 = vsub.f32 0.0, %v3594_v56 }
 0x1d5   : > { %v2792_v10 = vpop.eup %2791  ;;  %2811 = vrcp.f32 %v1833_v2  ;;  %v1834_v35 = vadd.f32 1.0, %v2790_v33  ;;  %v924_v2 = vmul.f32 1.442695, %v816_v55  ;;  %v819_v55 = vsub.f32 0.0, %v3591_v14 }
 0x1d6   : > { %v2794_v18 = vpop.eup %2793  ;;  %2813 = vrcp.f32 %v1001_v47  ;;  %v1002_v44 = vadd.f32 1.0, %v2792_v10  ;;  %v926_v47 = vmul.f32 1.442695, %v817_v46  ;;  %v820_v39 = vsub.f32 0.0, %v3597_v4 }
 0x1d7   : > { %v2796_v61 = vpop.eup %2795  ;;  %2815 = vrcp.f32 %v1834_v35  ;;  %v1835_v53 = vadd.f32 1.0, %v2794_v18  ;;  %v1653_v14 = vsub.f32 0.0, %v3599_v3  ;;  %v821_v56 = vsub.f32 0.0, %v3601_v23  ;;  %v3951_v3 = vld [vmem:[#allocation8_spill] sm:$0xff]  ;;  %v3952_v23 = vld [vmem:[#allocation9_spill] sm:$0xff] }
 0x1d8   : > { %v2798_v15 = vpop.eup %2797  ;;  %1957 = vst [vmem:[%s3397_s27 + $0x100] sm:$0xff] %v2796_v61  ;;  %2817 = vrcp.f32 %v1002_v44  ;;  %v1654_v4 = vsub.f32 0.0, %v3603_v13  ;;  %v3953_v13 = vld [vmem:[#allocation10_spill] sm:$0xff] }
 0x1d9   : > { %v2800_v16 = vpop.eup %2799  ;;  %1125 = vst [vmem:[%s3391_s26 + $0x108] sm:$0xff] %v2798_v15  ;;  %2819 = vrcp.f32 %v1835_v53 }
 0x1da   : > { %v2802_v63 = vpop.eup %2801  ;;  %1958 = vst [vmem:[%s3397_s27 + $0x108] sm:$0xff] %v2800_v16  ;;  %2821 = vpow2.f32 %v914_v19 }
 0x1db   : > { %v2804_v42 = vpop.eup %2803  ;;  %1126 = vst [vmem:[%s3391_s26 + $0x110] sm:$0xff] %v2802_v63  ;;  %2823 = vpow2.f32 %v1747_v29 }
 0x1dc   : > { %v2806_v12 = vpop.eup %2805  ;;  %1959 = vst [vmem:[%s3397_s27 + $0x110] sm:$0xff] %v2804_v42  ;;  %2825 = vpow2.f32 %v916_v62 }
 0x1dd   : > { %v2808_v21 = vpop.eup %2807  ;;  %1127 = vst [vmem:[%s3391_s26 + $0x118] sm:$0xff] %v2806_v12  ;;  %2827 = vpow2.f32 %v1749_v20 }
 0x1de   : > { %v2810_v6 = vpop.eup %2809  ;;  %1960 = vst [vmem:[%s3397_s27 + $0x118] sm:$0xff] %v2808_v21  ;;  %2829 = vpow2.f32 %v918_v32 }
 0x1df   : > { %v2812_v54 = vpop.eup %2811  ;;  %1128 = vst [vmem:[%s3391_s26 + $0x120] sm:$0xff] %v2810_v6  ;;  %2831 = vpow2.f32 %v1751_v22 }
 0x1e0   : > { %v2814_v27 = vpop.eup %2813  ;;  %1961 = vst [vmem:[%s3397_s27 + $0x120] sm:$0xff] %v2812_v54  ;;  %2833 = vpow2.f32 %v920_v24  ;;  %v1761_v54 = vmul.f32 1.442695, %v1651_v51 }
 0x1e1   : > { %v2816_v25 = vpop.eup %2815  ;;  %1129 = vst [vmem:[%s3391_s26 + $0x128] sm:$0xff] %v2814_v27  ;;  %2835 = vpow2.f32 %v1753_v43  ;;  %v1759_v43 = vmul.f32 1.442695, %v1650_v31  ;;  %v930_v27 = vmul.f32 1.442695, %v819_v55 }
 0x1e2   : > { %v2818_v33 = vpop.eup %2817  ;;  %1962 = vst [vmem:[%s3397_s27 + $0x128] sm:$0xff] %v2816_v25  ;;  %2837 = vpow2.f32 %v922_v17  ;;  %v928_v17 = vmul.f32 1.442695, %v818_v38  ;;  %v1763_v25 = vmul.f32 1.442695, %v1652_v48 }
 0x1e3   : > { %v2820_v57 = vpop.eup %2819  ;;  %1130 = vst [vmem:[%s3391_s26 + $0x130] sm:$0xff] %v2818_v33  ;;  %2839 = vpow2.f32 %v1755_v36  ;;  %v932_v33 = vmul.f32 1.442695, %v820_v39 }
 0x1e4   : > { %v2822_v41 = vpop.eup %2821  ;;  %1963 = vst [vmem:[%s3397_s27 + $0x130] sm:$0xff] %v2820_v57  ;;  %2841 = vpow2.f32 %v924_v2 }
 0x1e5   : > { %v2824_v10 = vpop.eup %2823  ;;  %v1003_v35 = vadd.f32 1.0, %v2822_v41  ;;  %2843 = vpow2.f32 %v1757_v37  ;;  %v1765_v41 = vmul.f32 1.442695, %v1653_v14 }
 0x1e6   : > { %v2826_v60 = vpop.eup %2825  ;;  %v1836_v18 = vadd.f32 1.0, %v2824_v10  ;;  %2845 = vpow2.f32 %v926_v47  ;;  %v822_v47 = vsub.f32 0.0, %v3951_v3  ;;  %v1655_v10 = vsub.f32 0.0, %v3952_v23 }
 0x1e7   : > { %v2828_v44 = vpop.eup %2827  ;;  %2847 = vrcp.f32 %v1003_v35  ;;  %v1004_v19 = vadd.f32 1.0, %v2826_v60  ;;  %v934_v60 = vmul.f32 1.442695, %v821_v56 }
 0x1e8   : > { %v2830_v40 = vpop.eup %2829  ;;  %2849 = vrcp.f32 %v1836_v18  ;;  %v1837_v61 = vadd.f32 1.0, %v2828_v44  ;;  %v823_v18 = vsub.f32 0.0, %v3953_v13 }
 0x1e9   : > { %v2832_v53 = vpop.eup %2831  ;;  %2851 = vrcp.f32 %v1004_v19  ;;  %v1005_v29 = vadd.f32 1.0, %v2830_v40  ;;  %v1767_v19 = vmul.f32 1.442695, %v1654_v4  ;;  %v3954_v40 = vld [vmem:[#allocation11_spill] sm:$0xff] }
 0x1ea   : > { %v2834_v5 = vpop.eup %2833  ;;  %2853 = vrcp.f32 %v1837_v61  ;;  %v1838_v15 = vadd.f32 1.0, %v2832_v53  ;;  %v1656_v61 = vsub.f32 0.0, %v3954_v40 }
 0x1eb   : > { %v2836_v62 = vpop.eup %2835  ;;  %2855 = vrcp.f32 %v1005_v29  ;;  %v1006_v26 = vadd.f32 1.0, %v2834_v5  ;;  %v936_v29 = vmul.f32 1.442695, %v822_v47 }
 0x1ec   : > { %v2838_v16 = vpop.eup %2837  ;;  %2857 = vrcp.f32 %v1838_v15  ;;  %v1839_v20 = vadd.f32 1.0, %v2836_v62  ;;  %v1769_v15 = vmul.f32 1.442695, %v1655_v10 }
 0x1ed   : > { %v2840_v63 = vpop.eup %2839  ;;  %2859 = vrcp.f32 %v1006_v26  ;;  %v1007_v32 = vadd.f32 1.0, %v2838_v16  ;;  %v938_v26 = vmul.f32 1.442695, %v823_v18 }
 0x1ee   : > { %v2842_v42 = vpop.eup %2841  ;;  %2861 = vrcp.f32 %v1839_v20  ;;  %v1840_v22 = vadd.f32 1.0, %v2840_v63  ;;  %v1771_v20 = vmul.f32 1.442695, %v1656_v61 }
 0x1ef   : > { %v2844_v12 = vpop.eup %2843  ;;  %2863 = vrcp.f32 %v1007_v32  ;;  %v1008_v24 = vadd.f32 1.0, %v2842_v42 }
 0x1f0   : > { %v2846_v21 = vpop.eup %2845  ;;  %2865 = vrcp.f32 %v1840_v22  ;;  %v1841_v45 = vadd.f32 1.0, %v2844_v12 }
 0x1f1   : > { %v2848_v6 = vpop.eup %2847  ;;  %2867 = vrcp.f32 %v1008_v24  ;;  %v1009_v9 = vadd.f32 1.0, %v2846_v21 }
 0x1f2   : > { %v2850_v46 = vpop.eup %2849  ;;  %1131 = vst [vmem:[%s3391_s26 + $0x138] sm:$0xff] %v2848_v6  ;;  %2869 = vrcp.f32 %v1841_v45 }
 0x1f3   : > { %v2852_v36 = vpop.eup %2851  ;;  %1964 = vst [vmem:[%s3397_s27 + $0x138] sm:$0xff] %v2850_v46  ;;  %2871 = vrcp.f32 %v1009_v9  ;;  %v824_v46 = vsub.f32 0.0, %v3617_v0 }
 0x1f4   : > { %v2854_v2 = vpop.eup %2853  ;;  %1132 = vst [vmem:[%s3391_s26 + $0x140] sm:$0xff] %v2852_v36  ;;  %2873 = vpow2.f32 %v1759_v43  ;;  %v1657_v36 = vsub.f32 0.0, %v3620_v49 }
 0x1f5   : > { %v2856_v37 = vpop.eup %2855  ;;  %1965 = vst [vmem:[%s3397_s27 + $0x140] sm:$0xff] %v2854_v2  ;;  %2875 = vpow2.f32 %v928_v17  ;;  %v3955_v2 = vld [vmem:[#allocation12_spill] sm:$0xff]  ;;  %v940_v47 = vmul.f32 1.442695, %v824_v46 }
 0x1f6   : > { %v2858_v57 = vpop.eup %2857  ;;  %1133 = vst [vmem:[%s3391_s26 + $0x148] sm:$0xff] %v2856_v37  ;;  %2877 = vpow2.f32 %v1761_v54  ;;  %v1773_v10 = vmul.f32 1.442695, %v1657_v36 }
 0x1f7   : > { %v2860_v35 = vpop.eup %2859  ;;  %1966 = vst [vmem:[%s3397_s27 + $0x148] sm:$0xff] %v2858_v57  ;;  %2879 = vpow2.f32 %v930_v27  ;;  %v3956_v57 = vld [vmem:[#allocation13_spill] sm:$0xff] }
 0x1f8   : > { %v2862_v44 = vpop.eup %2861  ;;  %1134 = vst [vmem:[%s3391_s26 + $0x150] sm:$0xff] %v2860_v35  ;;  %2881 = vpow2.f32 %v1763_v25  ;;  %v825_v25 = vsub.f32 0.0, %v3955_v2  ;;  %v1659_v35 = vsub.f32 0.0, %v3631_v1  ;;  %v828_v1 = vsub.f32 0.0, %v3647_v58 }
 0x1f9   : > { %v2864_v53 = vpop.eup %2863  ;;  %1967 = vst [vmem:[%s3397_s27 + $0x150] sm:$0xff] %v2862_v44  ;;  %2883 = vpow2.f32 %v932_v33  ;;  %v1658_v33 = vsub.f32 0.0, %v3625_v7  ;;  %v827_v7 = vsub.f32 0.0, %v3633_v59  ;;  %v1661_v59 = vsub.f32 0.0, %v3651_v11 }
 0x1fa   : > { %v2866_v5 = vpop.eup %2865  ;;  %1135 = vst [vmem:[%s3391_s26 + $0x158] sm:$0xff] %v2864_v53  ;;  %2885 = vpow2.f32 %v1765_v41  ;;  %v826_v41 = vsub.f32 0.0, %v3956_v57  ;;  %v942_v13 = vmul.f32 1.442695, %v825_v25  ;;  %v1662_v58 = vsub.f32 0.0, %v3656_v34 }
 0x1fb   : > { %v2868_v62 = vpop.eup %2867  ;;  %1968 = vst [vmem:[%s3397_s27 + $0x158] sm:$0xff] %v2866_v5  ;;  %2887 = vpow2.f32 %v934_v60  ;;  %v1775_v44 = vmul.f32 1.442695, %v1658_v33  ;;  %v1777_v5 = vmul.f32 1.442695, %v1659_v35  ;;  %v1663_v25 = vsub.f32 0.0, %v3661_v52 }
 0x1fc   : > { %v2870_v16 = vpop.eup %2869  ;;  %1136 = vst [vmem:[%s3391_s26 + $0x160] sm:$0xff] %v2868_v62  ;;  %2889 = vpow2.f32 %v1767_v19  ;;  %v3957_v19 = vld [vmem:[#allocation14_spill] sm:$0xff]  ;;  %v944_v53 = vmul.f32 1.442695, %v826_v41  ;;  %v946_v62 = vmul.f32 1.442695, %v827_v7 }
 0x1fd   : > { %v2872_v31 = vpop.eup %2871  ;;  %1969 = vst [vmem:[%s3397_s27 + $0x160] sm:$0xff] %v2870_v16  ;;  %2891 = vpow2.f32 %v936_v29  ;;  %v1660_v40 = vsub.f32 0.0, %v3957_v19  ;;  %v948_v11 = vmul.f32 1.442695, %v828_v1  ;;  %v1783_v34 = vmul.f32 1.442695, %v1662_v58 }
 0x1fe   : > { %v2874_v63 = vpop.eup %2873  ;;  %1137 = vst [vmem:[%s3391_s26 + $0x168] sm:$0xff] %v2872_v31  ;;  %2893 = vpow2.f32 %v1769_v15  ;;  %v831_v33 = vsub.f32 0.0, %v3663_v50  ;;  %v1785_v35 = vmul.f32 1.442695, %v1663_v25 }
 0x1ff   : > { %v2876_v32 = vpop.eup %2875  ;;  %v1842_v38 = vadd.f32 1.0, %v2874_v63  ;;  %2895 = vpow2.f32 %v938_v26  ;;  %v829_v26 = vsub.f32 0.0, %v3653_v8  ;;  %v830_v63 = vsub.f32 0.0, %v3658_v28 }
 0x200   : > { %v2878_v42 = vpop.eup %2877  ;;  %v1010_v22 = vadd.f32 1.0, %v2876_v32  ;;  %2897 = vpow2.f32 %v1771_v20  ;;  %v1779_v20 = vmul.f32 1.442695, %v1660_v40  ;;  %v1781_v8 = vmul.f32 1.442695, %v1661_v59 }
 0x201   : > { %v2880_v51 = vpop.eup %2879  ;;  %2899 = vrcp.f32 %v1842_v38  ;;  %v1843_v12 = vadd.f32 1.0, %v2878_v42  ;;  %v950_v42 = vmul.f32 1.442695, %v829_v26  ;;  %v3963_v26 = vld [vmem:[#allocation20_spill] sm:$0xff] }
 0x202   : > { %v2882_v24 = vpop.eup %2881  ;;  %2901 = vrcp.f32 %v1010_v22  ;;  %v1011_v55 = vadd.f32 1.0, %v2880_v51 }
 0x203   : > { %v2884_v21 = vpop.eup %2883  ;;  %2903 = vrcp.f32 %v1843_v12  ;;  %v1844_v45 = vadd.f32 1.0, %v2882_v24  ;;  %v952_v12 = vmul.f32 1.442695, %v830_v63 }
 0x204   : > { %v2886_v43 = vpop.eup %2885  ;;  %2905 = vrcp.f32 %v1011_v55  ;;  %v1012_v48 = vadd.f32 1.0, %v2884_v21 }
 0x205   : > { %v2888_v6 = vpop.eup %2887  ;;  %2907 = vrcp.f32 %v1844_v45  ;;  %v1845_v9 = vadd.f32 1.0, %v2886_v43 }
 0x206   : > { %v2890_v17 = vpop.eup %2889  ;;  %2909 = vrcp.f32 %v1012_v48  ;;  %v1013_v39 = vadd.f32 1.0, %v2888_v6 }
 0x207   : > { %v2892_v54 = vpop.eup %2891  ;;  %2911 = vrcp.f32 %v1845_v9  ;;  %v1846_v14 = vadd.f32 1.0, %v2890_v17 }
 0x208   : > { %v2894_v27 = vpop.eup %2893  ;;  %2913 = vrcp.f32 %v1013_v39  ;;  %v1014_v56 = vadd.f32 1.0, %v2892_v54 }
 0x209   : > { %v2896_v4 = vpop.eup %2895  ;;  %2915 = vrcp.f32 %v1846_v14  ;;  %v1847_v37 = vadd.f32 1.0, %v2894_v27 }
 0x20a   : > { %v2898_v3 = vpop.eup %2897  ;;  %2917 = vrcp.f32 %v1014_v56  ;;  %v1015_v0 = vadd.f32 1.0, %v2896_v4 }
 0x20b   : > { %v2900_v23 = vpop.eup %2899  ;;  %2919 = vrcp.f32 %v1847_v37  ;;  %v1848_v49 = vadd.f32 1.0, %v2898_v3 }
 0x20c   : > { %v2902_v60 = vpop.eup %2901  ;;  %1970 = vst [vmem:[%s3397_s27 + $0x168] sm:$0xff] %v2900_v23  ;;  %2921 = vrcp.f32 %v1015_v0 }
 0x20d   : > { %v2904_v18 = vpop.eup %2903  ;;  %1138 = vst [vmem:[%s3391_s26 + $0x170] sm:$0xff] %v2902_v60  ;;  %2923 = vrcp.f32 %v1848_v49  ;;  %v832_v49 = vsub.f32 0.0, %v3671_v30  ;;  %v3959_v60 = vld [vmem:[#allocation16_spill] sm:$0xff]  ;;  %v3961_v30 = vld [vmem:[#allocation18_spill] sm:$0xff] }
 0x20e   : > { %v2906_v61 = vpop.eup %2905  ;;  %1971 = vst [vmem:[%s3397_s27 + $0x170] sm:$0xff] %v2904_v18  ;;  %2925 = vpow2.f32 %v940_v47  ;;  %v3958_v47 = vld [vmem:[#allocation15_spill] sm:$0xff]  ;;  %v954_v18 = vmul.f32 1.442695, %v831_v33 }
 0x20f   : > { %v2908_v29 = vpop.eup %2907  ;;  %1139 = vst [vmem:[%s3391_s26 + $0x178] sm:$0xff] %v2906_v61  ;;  %2927 = vpow2.f32 %v1773_v10  ;;  %v1664_v57 = vsub.f32 0.0, %v3958_v47 }
 0x210   : > { %v2910_v15 = vpop.eup %2909  ;;  %1972 = vst [vmem:[%s3397_s27 + $0x178] sm:$0xff] %v2908_v29  ;;  %2929 = vpow2.f32 %v942_v13  ;;  %v1665_v13 = vsub.f32 0.0, %v3959_v60  ;;  %v956_v29 = vmul.f32 1.442695, %v832_v49 }
 0x211   : > { %v2912_v16 = vpop.eup %2911  ;;  %1140 = vst [vmem:[%s3391_s26 + $0x180] sm:$0xff] %v2910_v15  ;;  %2931 = vpow2.f32 %v1775_v44  ;;  %v3960_v44 = vld [vmem:[#allocation17_spill] sm:$0xff]  ;;  %v1787_v61 = vmul.f32 1.442695, %v1664_v57 }
 0x212   : > { %v2914_v31 = vpop.eup %2913  ;;  %1973 = vst [vmem:[%s3397_s27 + $0x180] sm:$0xff] %v2912_v16  ;;  %2933 = vpow2.f32 %v944_v53  ;;  %v833_v19 = vsub.f32 0.0, %v3960_v44  ;;  %v1666_v53 = vsub.f32 0.0, %v3961_v30  ;;  %v1667_v16 = vsub.f32 0.0, %v3963_v26 }
 0x213   : > { %v2916_v32 = vpop.eup %2915  ;;  %1141 = vst [vmem:[%s3391_s26 + $0x188] sm:$0xff] %v2914_v31  ;;  %2935 = vpow2.f32 %v1777_v5  ;;  %v3962_v5 = vld [vmem:[#allocation19_spill] sm:$0xff]  ;;  %v3964_v31 = vld [vmem:[#allocation21_spill] sm:$0xff] }
 0x214   : > { %v2918_v38 = vpop.eup %2917  ;;  %1974 = vst [vmem:[%s3397_s27 + $0x188] sm:$0xff] %v2916_v32  ;;  %2937 = vpow2.f32 %v946_v62  ;;  %v834_v59 = vsub.f32 0.0, %v3962_v5  ;;  %v1789_v62 = vmul.f32 1.442695, %v1665_v13  ;;  %v958_v58 = vmul.f32 1.442695, %v833_v19 }
 0x215   : > { %v2920_v22 = vpop.eup %2919  ;;  %1142 = vst [vmem:[%s3391_s26 + $0x190] sm:$0xff] %v2918_v38  ;;  %2939 = vpow2.f32 %v1779_v20  ;;  %v1791_v32 = vmul.f32 1.442695, %v1666_v53 }
 0x216   : > { %v2922_v51 = vpop.eup %2921  ;;  %1975 = vst [vmem:[%s3397_s27 + $0x190] sm:$0xff] %v2920_v22  ;;  %2941 = vpow2.f32 %v948_v11  ;;  %v835_v11 = vsub.f32 0.0, %v3964_v31  ;;  %v960_v22 = vmul.f32 1.442695, %v834_v59 }
 0x217   : > { %v2924_v24 = vpop.eup %2923  ;;  %1143 = vst [vmem:[%s3391_s26 + $0x198] sm:$0xff] %v2922_v51  ;;  %2943 = vpow2.f32 %v1781_v8  ;;  %v3965_v8 = vld [vmem:[#allocation22_spill] sm:$0xff]  ;;  %v1793_v51 = vmul.f32 1.442695, %v1667_v16 }
 0x218   : > { %v2926_v28 = vpop.eup %2925  ;;  %1976 = vst [vmem:[%s3397_s27 + $0x198] sm:$0xff] %v2924_v24  ;;  %2945 = vpow2.f32 %v950_v42  ;;  %v1668_v38 = vsub.f32 0.0, %v3965_v8  ;;  %v962_v24 = vmul.f32 1.442695, %v835_v11 }
 0x219   : > { %v2928_v55 = vpop.eup %2927  ;;  %v1016_v21 = vadd.f32 1.0, %v2926_v28  ;;  %2947 = vpow2.f32 %v1783_v34 }
 0x21a   : > { %v2930_v45 = vpop.eup %2929  ;;  %v1849_v43 = vadd.f32 1.0, %v2928_v55  ;;  %2949 = vpow2.f32 %v952_v12  ;;  %v1795_v55 = vmul.f32 1.442695, %v1668_v38 }
 0x21b   : > { %v2932_v48 = vpop.eup %2931  ;;  %2951 = vrcp.f32 %v1016_v21  ;;  %v1017_v6 = vadd.f32 1.0, %v2930_v45 }
 0x21c   : > { %v2934_v9 = vpop.eup %2933  ;;  %2953 = vrcp.f32 %v1849_v43  ;;  %v1850_v17 = vadd.f32 1.0, %v2932_v48 }
 0x21d   : > { %v2936_v39 = vpop.eup %2935  ;;  %2955 = vrcp.f32 %v1017_v6  ;;  %v1018_v46 = vadd.f32 1.0, %v2934_v9 }
 0x21e   : > { %v2938_v54 = vpop.eup %2937  ;;  %2957 = vrcp.f32 %v1850_v17  ;;  %v1851_v14 = vadd.f32 1.0, %v2936_v39 }
 0x21f   : > { %v2940_v36 = vpop.eup %2939  ;;  %2959 = vrcp.f32 %v1018_v46  ;;  %v1019_v27 = vadd.f32 1.0, %v2938_v54 }
 0x220   : > { %v2942_v56 = vpop.eup %2941  ;;  %2961 = vrcp.f32 %v1851_v14  ;;  %v1852_v2 = vadd.f32 1.0, %v2940_v36 }
 0x221   : > { %v2944_v4 = vpop.eup %2943  ;;  %2963 = vrcp.f32 %v1019_v27  ;;  %v1020_v37 = vadd.f32 1.0, %v2942_v56 }
 0x222   : > { %v2946_v3 = vpop.eup %2945  ;;  %2965 = vrcp.f32 %v1852_v2  ;;  %v1853_v0 = vadd.f32 1.0, %v2944_v4 }
 0x223   : > { %v2948_v41 = vpop.eup %2947  ;;  %2967 = vrcp.f32 %v1020_v37  ;;  %v1021_v23 = vadd.f32 1.0, %v2946_v3 }
 0x224   : > { %v2950_v10 = vpop.eup %2949  ;;  %2969 = vrcp.f32 %v1853_v0  ;;  %v1854_v52 = vadd.f32 1.0, %v2948_v41 }
 0x225   : > { %v2952_v7 = vpop.eup %2951  ;;  %2971 = vrcp.f32 %v1021_v23  ;;  %v1022_v50 = vadd.f32 1.0, %v2950_v10 }
 0x226   : > { %v2954_v40 = vpop.eup %2953  ;;  %1144 = vst [vmem:[%s3391_s26 + $0x1a0] sm:$0xff] %v2952_v7  ;;  %2973 = vrcp.f32 %v1854_v52 }
 0x227   : > { %v2956_v1 = vpop.eup %2955  ;;  %1977 = vst [vmem:[%s3397_s27 + $0x1a0] sm:$0xff] %v2954_v40  ;;  %2975 = vrcp.f32 %v1022_v50 }
 0x228   : > { %v2958_v15 = vpop.eup %2957  ;;  %1145 = vst [vmem:[%s3391_s26 + $0x1a8] sm:$0xff] %v2956_v1  ;;  %2977 = vpow2.f32 %v1785_v35 }
 0x229   : > { %v2960_v20 = vpop.eup %2959  ;;  %1978 = vst [vmem:[%s3397_s27 + $0x1a8] sm:$0xff] %v2958_v15  ;;  %2979 = vpow2.f32 %v954_v18 }
 0x22a   : > { %v2962_v63 = vpop.eup %2961  ;;  %1146 = vst [vmem:[%s3391_s26 + $0x1b0] sm:$0xff] %v2960_v20  ;;  %2981 = vpow2.f32 %v1787_v61 }
 0x22b   : > { %v2964_v42 = vpop.eup %2963  ;;  %1979 = vst [vmem:[%s3397_s27 + $0x1b0] sm:$0xff] %v2962_v63  ;;  %2983 = vpow2.f32 %v956_v29 }
 0x22c   : > { %v2966_v34 = vpop.eup %2965  ;;  %1147 = vst [vmem:[%s3391_s26 + $0x1b8] sm:$0xff] %v2964_v42  ;;  %2985 = vpow2.f32 %v1789_v62 }
 0x22d   : > { %v2968_v12 = vpop.eup %2967  ;;  %1980 = vst [vmem:[%s3397_s27 + $0x1b8] sm:$0xff] %v2966_v34  ;;  %2987 = vpow2.f32 %v958_v58 }
 0x22e   : > { %v2970_v28 = vpop.eup %2969  ;;  %1148 = vst [vmem:[%s3391_s26 + $0x1c0] sm:$0xff] %v2968_v12  ;;  %2989 = vpow2.f32 %v1791_v32 }
 0x22f   : > { %v2972_v21 = vpop.eup %2971  ;;  %1981 = vst [vmem:[%s3397_s27 + $0x1c0] sm:$0xff] %v2970_v28  ;;  %2991 = vpow2.f32 %v960_v22 }
 0x230   : > { %v2974_v45 = vpop.eup %2973  ;;  %1149 = vst [vmem:[%s3391_s26 + $0x1c8] sm:$0xff] %v2972_v21  ;;  %2993 = vpow2.f32 %v1793_v51 }
 0x231   : > { %v2976_v43 = vpop.eup %2975  ;;  %1982 = vst [vmem:[%s3397_s27 + $0x1c8] sm:$0xff] %v2974_v45  ;;  %2995 = vpow2.f32 %v962_v24 }
 0x232   : > { %v2978_v48 = vpop.eup %2977  ;;  %1150 = vst [vmem:[%s3391_s26 + $0x1d0] sm:$0xff] %v2976_v43  ;;  %2997 = vpow2.f32 %v1795_v55 }
 0x233   : > { %v2980_v6 = vpop.eup %2979  ;;  %v1855_v9 = vadd.f32 1.0, %v2978_v48 }
 0x234   : > { %v2982_v17 = vpop.eup %2981  ;;  %v1023_v39 = vadd.f32 1.0, %v2980_v6 }
 0x235   : > { %v2984_v46 = vpop.eup %2983  ;;  %2999 = vrcp.f32 %v1855_v9  ;;  %v1856_v54 = vadd.f32 1.0, %v2982_v17 }
 0x236   : > { %v2986_v14 = vpop.eup %2985  ;;  %3001 = vrcp.f32 %v1023_v39  ;;  %v1024_v36 = vadd.f32 1.0, %v2984_v46 }
 0x237   : > { %v2988_v27 = vpop.eup %2987  ;;  %3003 = vrcp.f32 %v1856_v54  ;;  %v1857_v56 = vadd.f32 1.0, %v2986_v14 }
 0x238   : > { %v2990_v2 = vpop.eup %2989  ;;  %3005 = vrcp.f32 %v1024_v36  ;;  %v1025_v25 = vadd.f32 1.0, %v2988_v27 }
 0x239   : > { %v2992_v4 = vpop.eup %2991  ;;  %3007 = vrcp.f32 %v1857_v56  ;;  %v1858_v37 = vadd.f32 1.0, %v2990_v2 }
 0x23a   : > { %v2994_v33 = vpop.eup %2993  ;;  %3009 = vrcp.f32 %v1025_v25  ;;  %v1026_v3 = vadd.f32 1.0, %v2992_v4 }
 0x23b   : > { %v2996_v0 = vpop.eup %2995  ;;  %3011 = vrcp.f32 %v1858_v37  ;;  %v1859_v47 = vadd.f32 1.0, %v2994_v33 }
 0x23c   : > { %v2998_v57 = vpop.eup %2997  ;;  %3013 = vrcp.f32 %v1026_v3  ;;  %v1027_v41 = vadd.f32 1.0, %v2996_v0 }
 0x23d   : > { %3015 = vrcp.f32 %v1859_v47  ;;  %v1860_v23 = vadd.f32 1.0, %v2998_v57 }
 0x23e   : > { %3017 = vrcp.f32 %v1027_v41 }
 0x23f   : > { %v3000_v49 = vpop.eup %2999  ;;  %3019 = vrcp.f32 %v1860_v23 }
 0x240   : > { %v3002_v10 = vpop.eup %3001  ;;  %1983 = vst [vmem:[%s3397_s27 + $0x1d0] sm:$0xff] %v3000_v49 }
 0x241   : > { %v3004_v52 = vpop.eup %3003  ;;  %1151 = vst [vmem:[%s3391_s26 + $0x1d8] sm:$0xff] %v3002_v10 }
 0x242   : > { %v3006_v35 = vpop.eup %3005  ;;  %1984 = vst [vmem:[%s3397_s27 + $0x1d8] sm:$0xff] %v3004_v52 }
 0x243   : > { %v3008_v60 = vpop.eup %3007  ;;  %1152 = vst [vmem:[%s3391_s26 + $0x1e0] sm:$0xff] %v3006_v35 }
 0x244   : > { %v3010_v13 = vpop.eup %3009  ;;  %1985 = vst [vmem:[%s3397_s27 + $0x1e0] sm:$0xff] %v3008_v60 }
 0x245   : > { %v3012_v7 = vpop.eup %3011  ;;  %1153 = vst [vmem:[%s3391_s26 + $0x1e8] sm:$0xff] %v3010_v13 }
 0x246   : > { %v3014_v50 = vpop.eup %3013  ;;  %1986 = vst [vmem:[%s3397_s27 + $0x1e8] sm:$0xff] %v3012_v7 }
 0x247   : > { %v3016_v18 = vpop.eup %3015  ;;  %1154 = vst [vmem:[%s3391_s26 + $0x1f0] sm:$0xff] %v3014_v50 }
 0x248   : > { %v3018_v44 = vpop.eup %3017  ;;  %1987 = vst [vmem:[%s3397_s27 + $0x1f0] sm:$0xff] %v3016_v18 }
 0x249   : > { %v3020_v19 = vpop.eup %3019  ;;  %1155 = vst [vmem:[%s3391_s26 + $0x1f8] sm:$0xff] %v3018_v44 }
 0x24a   : > { %1988 = vst [vmem:[%s3397_s27 + $0x1f8] sm:$0xff] %v3020_v19 }
 0x24b   : > { %3034 = shalt.err (!%p3031_p7)
}
 0x24c   : > { %s3035_s26 = scalar_lea.hbm %s3826_s13, 8192  ;;  %s3039_s15 = scalar_lea.hbm %s3930_s4, 32768 }
 0x24d   : > { %p3036_p9 = scmp.ne.s32.totalorder %s3826_s13, %s3035_s26  ;;  %p3040_p12 = scmp.lt.u32.totalorder %s3826_s13, %s3930_s4 }
 0x24e   : > { %p3041_p13 = scmp.lt.u32.totalorder %s3039_s15, %s3035_s26  ;;  %p3043_p1 = scmp.lt.u32.totalorder %s3035_s26, %s3826_s13 }
 0x24f   : > { %p3037_p10 = pnand %p3036_p9, %p3235_p3 }
 0x250   : > { %p3042_p0 = por %p3041_p13, %p3040_p12 }
 0x251   : > { %p3038_p11 = pneg %p3037_p10 }
 0x252   : > { %p3044_p2 = por %p3043_p1, %p3042_p0 }
 0x254   : > { %p3045_p4 = pnand %p3044_p2, %p3038_p11 }
 0x256   : > { %3048 = shalt.err (!%p3045_p4)
}
 0x257   : > { %s3150_s0 = smov 256   ;;  %s3151_s9 = smov 512  }
 0x258   : > { %s3152_s12 = smov 16   ;;  %s1995_s26 = scalar_lea.sflag [#allocation5], %s3362_s16 }
 0x259   : > { %2366 = dma.vmem_to_hbm [thread:$0]  (%p3235_p3), %s3829_s22, 8192, %s3826_s13, %s1990_s8, %s3150_s0, %s3151_s9, %s3152_s12  }
 0x25a   : > { %s3049_s27 = scalar_lea.vmem %s3840_s14, 8192  ;;  %s3153_s21 = smov [#allocation4]  }
 0x25b   : > { %p3050_p5 = scmp.ne.s32.totalorder %s3840_s14, %s3049_s27  ;;  %s3053_s15 = sshll.u32 %s3153_s21, 4  ;;  %s3054_s15 = int_to_ptr.vmem [resolvable:$false] %s3053_s15 }
 0x25c   : > { %s3055_s17 = scalar_lea.vmem %s3054_s15, 16384  ;;  %p3056_p9 = scmp.lt.s32.totalorder %s3840_s14, %s3054_s15 }
 0x25d   : > { %p3051_p6 = pnand %p3050_p5, %p3235_p3  ;;  %p3057_p10 = scmp.lt.s32.totalorder %s3055_s17, %s3049_s27 }
 0x25f   : > { %p3052_p7 = pneg %p3051_p6  ;;  %p3058_p11 = por %p3057_p10, %p3056_p9 }
 0x261   : > { %p3059_p12 = pnand %p3058_p11, %p3052_p7 }
 0x263   : > { %3062 = shalt.err (!%p3059_p12)
}
 0x264   : > { %s3063_s22 = scalar_lea.hbm %s3838_s30, 8192  ;;  %s3067_s10 = scalar_lea.hbm %s3931_s5, 32768 }
 0x265   : > { %p3064_p13 = scmp.ne.s32.totalorder %s3838_s30, %s3063_s22  ;;  %p3068_p2 = scmp.lt.u32.totalorder %s3838_s30, %s3931_s5 }
 0x266   : > { %p3069_p4 = scmp.lt.u32.totalorder %s3067_s10, %s3063_s22  ;;  %p3071_p6 = scmp.lt.u32.totalorder %s3063_s22, %s3838_s30 }
 0x267   : > { %p3065_p0 = pnand %p3064_p13, %p3235_p3 }
 0x268   : > { %p3070_p5 = por %p3069_p4, %p3068_p2 }
 0x269   : > { %p3066_p1 = pneg %p3065_p0 }
 0x26a   : > { %p3072_p7 = por %p3071_p6, %p3070_p5 }
 0x26c   : > { %p3073_p9 = pnand %p3072_p7, %p3066_p1 }
 0x26e   : > { %3076 = shalt.err (!%p3073_p9)
}
 0x26f   : > { %2367 = dma.vmem_to_hbm [thread:$0]  (%p3235_p3), %s3840_s14, 8192, %s3838_s30, %s1995_s26, %s3150_s0, %s3151_s9, %s3152_s12  }
 0x270 PF: > { %p2377_p10 = scmp.ge.s32.totalorder %s3147_s25, 2  ;;  %s2045_s27 = sand.u32 1, %s3119_s18  }
 0x271   : > { %s2046_s17 = scalar_lea.sflag [#allocation3], %s2045_s27 }
 0x272   : > { %p2371_p11 = pnand %p2377_p10, %p3244_p8 }
 0x274   : > { %3110 = dma.done.wait (!%p2371_p11), %s2046_s17, 8192  }
 0x275   : > { %3112 = vsyncadd (!%p2371_p11), %s2046_s17, 4294959104  ;;  %s2055_s6 = scalar_lea.sflag [#allocation5], %s2045_s27 }
 0x276   : > { %3114 = dma.done.wait (!%p2371_p11), %s2055_s6, 8192  }
 0x277   : > { %3116 = vsyncadd (!%p2371_p11), %s2055_s6, 4294959104  ;;  %s22_s25 = sadd.s32 1, %s3147_s25   ;;  %s3966_s18 = smov %s3123_s19 }
 0x278   : > { %p19_p12 = scmp.ge.s32.totalorder %s22_s25, 6   ;;  %s3967_s19 = smov %s3127_s20 }
 0x279   : > { %s3968_s20 = smov %s3253_s11  ;;  %s3969_s21 = smov %s3139_s23 }
 0x27a   : > { %s3970_s22 = smov %s3143_s24  ;;  %s3971_s23 = smov %s3974_s28 }
 0x27b   : > { %s3972_s24 = smov %s3978_s29  ;;  %21 = sbr.rel (!%p19_p12) target bundleno = 9 (0x9), region = 97 }
 0x282   :  { %2060 = vsyncpa [#allocation3], 1 }
 0x283   :  { %2062 = vsyncpa [#allocation3 + $0x1], 1 }
 0x284   :  { %2063 = vsyncpa [#allocation5], 1 }
 0x285   :  { %2065 = vsyncpa [#allocation5 + $0x1], 1 }

// kernel: gaan_forward.2
= control target key start
LH: loop header
LB: loop body
LE: loop exit
PB: predicated region body
PF: predicated region fallthrough
CT: control target
= control target key end

     0   :  { %s3777_s21 = smov 0   ;;  %s4275_s0 = inlined_call_operand.vmem [shape: bf16[512,128], index: 0, kind: input, shape index: {}]   ;;  %s4276_s1 = inlined_call_operand.vmem [shape: bf16[512,128], index: 1, kind: input, shape index: {}]   ;;  %s4277_s2 = inlined_call_operand.vmem [shape: bf16[128,128], index: 2, kind: input, shape index: {}]   ;;  %s4278_s3 = inlined_call_operand.vmem [shape: f32[1,128], index: 3, kind: input, shape index: {}]   ;;  %s4279_s4 = inlined_call_operand.vmem [shape: bf16[128,128], index: 4, kind: input, shape index: {}]   ;;  %s4280_s5 = inlined_call_operand.vmem [shape: f32[1,128], index: 5, kind: input, shape index: {}]   ;;  %s4281_s6 = inlined_call_operand.vmem [shape: bf16[128,128], index: 6, kind: input, shape index: {}]   ;;  %s4282_s7 = inlined_call_operand.vmem [shape: f32[1,128], index: 7, kind: input, shape index: {}]   ;;  %s4283_s8 = inlined_call_operand.vmem [shape: bf16[128,128], index: 8, kind: input, shape index: {}]   ;;  %s4284_s9 = inlined_call_operand.vmem [shape: f32[1,128], index: 9, kind: input, shape index: {}]   ;;  %s4285_s10 = inlined_call_operand.vmem [shape: f32[512,128], index: 10, kind: output, shape index: {0}]   ;;  %s4286_s11 = inlined_call_operand.vmem [shape: bf16[512,128], index: 11, kind: output, shape index: {1}]   ;;  %s4287_s12 = inlined_call_operand.vmem [shape: bf16[512,128], index: 12, kind: output, shape index: {2}]  }
   0x1 LB: > { %s2763_s22 = sadd.s32 4294967295, %s3710_s21   ;;  %p2767_p0 = scmp.ge.s32.totalorder %s3710_s21, 1  ;;  %s3710_s21 = sphi %s3777_s21, %s23_s21  }
   0x2   : > { %p379_p1 = scmp.lt.s32.totalorder %s3710_s21, 3 }
   0x4   : > { %p380_p2 = pnand %p2767_p0, %p379_p1 }
   0x5   : > { %v3624_v0 = vld [vmem:[%s4277_s2] sm:$0xff] (!%p380_p2)   ;;  %s2768_s25 = sshll.u32 (!%p380_p2), %s2763_s22, 5  ;;  %v3625_v1 = vld [vmem:[%s4277_s2 + $0x8] sm:$0xff] (!%p380_p2)   ;;  %v3626_v2 = vld [vmem:[%s4277_s2 + $0x10] sm:$0xff] (!%p380_p2)  }
   0x6   : > { %383 = sbr.rel (%p380_p2) target bundleno = 978 (0x3d2), region = 60  ;;  %p437_p3 = scmp.lt.s32.totalorder (!%p380_p2), %s2768_s25, 63  ;;  %3328 = vmatprep.subr.bf16.mxu0 (!%p380_p2), %v3624_v0  ;;  %v3627_v3 = vld [vmem:[%s4277_s2 + $0x18] sm:$0xff] (!%p380_p2)   ;;  %v3628_v5 = vld [vmem:[%s4277_s2 + $0x20] sm:$0xff] (!%p380_p2)   ;;  %v3629_v6 = vld [vmem:[%s4277_s2 + $0x28] sm:$0xff] (!%p380_p2)  }
   0x7   : > { %3329 = vmatpush3.bf16.msra.mxu0 (!%p380_p2), %v3624_v0  ;;  %v3630_v7 = vld [vmem:[%s4277_s2 + $0x30] sm:$0xff] (!%p380_p2)   ;;  %v3631_v8 = vld [vmem:[%s4277_s2 + $0x38] sm:$0xff] (!%p380_p2)   ;;  %v3648_v9 = vld [vmem:[%s4279_s4] sm:$0xff] (!%p380_p2)  }
   0x8   : > { %3330 = vmatprep.subr.bf16.mxu0 (!%p380_p2), %v3625_v1  ;;  %v3649_v10 = vld [vmem:[%s4279_s4 + $0x8] sm:$0xff] (!%p380_p2)   ;;  %3376 = vmatprep.subr.bf16.mxu1 (!%p380_p2), %v3648_v9  ;;  %v3650_v12 = vld [vmem:[%s4279_s4 + $0x10] sm:$0xff] (!%p380_p2)   ;;  %v3651_v14 = vld [vmem:[%s4279_s4 + $0x18] sm:$0xff] (!%p380_p2)  }
   0x9   : > { %3377 = vmatpush3.bf16.msra.mxu1 (!%p380_p2), %v3648_v9  ;;  %v3652_v15 = vld [vmem:[%s4279_s4 + $0x20] sm:$0xff] (!%p380_p2)   ;;  %v3653_v18 = vld [vmem:[%s4279_s4 + $0x28] sm:$0xff] (!%p380_p2)   ;;  %v3654_v30 = vld [vmem:[%s4279_s4 + $0x30] sm:$0xff] (!%p380_p2)  }
   0xa   : > { %3378 = vmatprep.subr.bf16.mxu1 (!%p380_p2), %v3649_v10  ;;  %v3655_v31 = vld [vmem:[%s4279_s4 + $0x38] sm:$0xff] (!%p380_p2)   ;;  %v3656_v32 = vld [vmem:[%s4281_s6] sm:$0xff] (!%p380_p2)   ;;  %v3657_v33 = vld [vmem:[%s4281_s6 + $0x8] sm:$0xff] (!%p380_p2)  }
   0xb   : > { %3331 = vmatpush3.bf16.msra.mxu0 (!%p380_p2), %v3625_v1  ;;  %v3658_v35 = vld [vmem:[%s4281_s6 + $0x10] sm:$0xff] (!%p380_p2)   ;;  %v3659_v36 = vld [vmem:[%s4281_s6 + $0x18] sm:$0xff] (!%p380_p2)   ;;  %v3660_v37 = vld [vmem:[%s4281_s6 + $0x20] sm:$0xff] (!%p380_p2)  }
   0xc   : > { %3332 = vmatprep.subr.bf16.mxu0 (!%p380_p2), %v3626_v2  ;;  %v3661_v38 = vld [vmem:[%s4281_s6 + $0x28] sm:$0xff] (!%p380_p2)   ;;  %v3662_v39 = vld [vmem:[%s4281_s6 + $0x30] sm:$0xff] (!%p380_p2)   ;;  %v3663_v40 = vld [vmem:[%s4281_s6 + $0x38] sm:$0xff] (!%p380_p2)  }
   0xd   : > { %s4289_s25 = smov (!%p437_p3, %s2768_s25), 63  ;;  %3379 = vmatpush3.bf16.msra.mxu1 %v3649_v10  ;;  %v3666_v41 = vld [vmem:[%s4281_s6] sm:$0xff]   ;;  %v3669_v44 = vld [vmem:[%s4281_s6 + $0x8] sm:$0xff]   ;;  %v3672_v45 = vld [vmem:[%s4281_s6 + $0x10] sm:$0xff]  }
   0xe   : > { %s3797_s30 = sshll.u32 %s4289_s25, 2  ;;  %3380 = vmatprep.subr.bf16.mxu1 %v3650_v12  ;;  %v3675_v48 = vld [vmem:[%s4281_s6 + $0x18] sm:$0xff]   ;;  %v3678_v49 = vld [vmem:[%s4281_s6 + $0x20] sm:$0xff]   ;;  %v3681_v52 = vld [vmem:[%s4281_s6 + $0x28] sm:$0xff]   ;;  %s2773_s24 = sshll.u32 %s4289_s25, 3 }
   0xf   : > { %s3803_s15 = scalar_lea.vmem %s4275_s0, %s3797_s30  ;;  %3333 = vmatpush3.bf16.msra.mxu0 %v3626_v2  ;;  %s3870_s19 = scalar_lea.vmem %s4276_s1, %s3797_s30  ;;  %v3684_v53 = vld [vmem:[%s4281_s6 + $0x30] sm:$0xff]   ;;  %v3923_v56 = vld [vmem:[%s4278_s3] ss:$0 sm:$0xff] }
  0x10   : > { %v3632_v4 = vld [vmem:[%s3803_s15] sm:$0xff]   ;;  %3334 = vmatprep.subr.bf16.mxu0 %v3627_v3  ;;  %v3633_v11 = vld [vmem:[%s3803_s15 + $0x8] sm:$0xff]   ;;  %v3634_v13 = vld [vmem:[%s3803_s15 + $0x10] sm:$0xff]   ;;  %s4046_s13 = scalar_lea.vmem %s4285_s10, %s2773_s24  ;;  %s4225_s23 = scalar_lea.vmem %s4287_s12, %s3797_s30 }
  0x11   : > { %3344 = vmatprep.mubr.bf16.mxu0 %v3632_v4  ;;  %3381 = vmatpush3.bf16.msra.mxu1 %v3650_v12  ;;  %v3635_v16 = vld [vmem:[%s3803_s15 + $0x18] sm:$0xff]   ;;  %v3636_v17 = vld [vmem:[%s3803_s15 + $0x20] sm:$0xff]   ;;  %v3637_v19 = vld [vmem:[%s3803_s15 + $0x28] sm:$0xff]  }
  0x12   : > { %3382 = vmatprep.subr.bf16.mxu1 %v3651_v14  ;;  %v3638_v20 = vld [vmem:[%s3803_s15 + $0x30] sm:$0xff]   ;;  %v3639_v21 = vld [vmem:[%s3803_s15 + $0x38] sm:$0xff]   ;;  %v3640_v22 = vld [vmem:[%s3803_s15 + $0x40] sm:$0xff]  }
  0x13   : > { %3335 = vmatpush3.bf16.msra.mxu0 %v3627_v3  ;;  %v3641_v23 = vld [vmem:[%s3803_s15 + $0x48] sm:$0xff]   ;;  %v3642_v24 = vld [vmem:[%s3803_s15 + $0x50] sm:$0xff]   ;;  %v3643_v25 = vld [vmem:[%s3803_s15 + $0x58] sm:$0xff]  }
  0x14   : > { %3336 = vmatprep.subr.bf16.mxu0 %v3628_v5  ;;  %v3644_v26 = vld [vmem:[%s3803_s15 + $0x60] sm:$0xff]   ;;  %v3645_v27 = vld [vmem:[%s3803_s15 + $0x68] sm:$0xff]   ;;  %v3646_v28 = vld [vmem:[%s3803_s15 + $0x70] sm:$0xff]  }
  0x15   : > { %3383 = vmatpush3.bf16.msra.mxu1 %v3651_v14  ;;  %v3647_v29 = vld [vmem:[%s3803_s15 + $0x78] sm:$0xff]   ;;  %v3664_v34 = vld [vmem:[%s3870_s19] sm:$0xff]   ;;  %v3665_v42 = vld [vmem:[%s3870_s19 + $0x8] sm:$0xff]  }
  0x16   : > { %3384 = vmatprep.subr.bf16.mxu1 %v3652_v15  ;;  %v3667_v43 = vld [vmem:[%s3870_s19 + $0x10] sm:$0xff]   ;;  %v3668_v46 = vld [vmem:[%s3870_s19 + $0x18] sm:$0xff]   ;;  %v3670_v47 = vld [vmem:[%s3870_s19 + $0x20] sm:$0xff]  }
  0x17   : > { %3337 = vmatpush3.bf16.msra.mxu0 %v3628_v5  ;;  %v3671_v50 = vld [vmem:[%s3870_s19 + $0x28] sm:$0xff]   ;;  %v3673_v51 = vld [vmem:[%s3870_s19 + $0x30] sm:$0xff]   ;;  %v3674_v54 = vld [vmem:[%s3870_s19 + $0x38] sm:$0xff]  }
  0x18   : > { %3338 = vmatprep.subr.bf16.mxu0 %v3629_v6  ;;  %v3676_v55 = vld [vmem:[%s3870_s19 + $0x40] sm:$0xff]   ;;  %v3677_v60 = vld [vmem:[%s3870_s19 + $0x48] sm:$0xff]   ;;  %v3679_v63 = vld [vmem:[%s3870_s19 + $0x50] sm:$0xff]  }
  0x19   : > { %3385 = vmatpush3.bf16.msra.mxu1 %v3652_v15  ;;  %v3680_v12 = vld [vmem:[%s3870_s19 + $0x58] sm:$0xff]   ;;  %v3682_v15 = vld [vmem:[%s3870_s19 + $0x60] sm:$0xff]  }
  0x1a   : > { %3386 = vmatprep.subr.bf16.mxu1 %v3653_v18 }
  0x1b   : > { %3339 = vmatpush3.bf16.msra.mxu0 %v3629_v6 }
  0x1c   : > { %3340 = vmatprep.subr.bf16.mxu0 %v3630_v7 }
  0x1d   : > { %3387 = vmatpush3.bf16.msra.mxu1 %v3653_v18 }
  0x1e   : > { %3388 = vmatprep.subr.bf16.mxu1 %v3654_v30 }
  0x1f   : > { %3341 = vmatpush3.bf16.msra.mxu0 %v3630_v7 }
  0x20   : > { %3342 = vmatprep.subr.bf16.mxu0 %v3631_v8 }
  0x21   : > { %3389 = vmatpush3.bf16.msra.mxu1 %v3654_v30 }
  0x22   : > { %3390 = vmatprep.subr.bf16.mxu1 %v3655_v31 }
  0x23   : > { %3343 = vmatpush3.bf16.msra.mxu0 %v3631_v8 }
  0x24   : > { %3424 = vmatprep.subr.bf16.mxu0 %v3656_v32 }
  0x25   : > { %3391 = vmatpush3.bf16.msra.mxu1 %v3655_v31  ;;  %v3685_v31 = vld [vmem:[%s3870_s19 + $0x70] sm:$0xff]  }
  0x26   : > { %3345 = vmatmul.mubr.bf16.vlgmr.msra.gmra.mrb[0].mxu0 %v3633_v11 }
  0x27   : > { %3348 = vmatprep.mubr.bf16.mxu0 %v3634_v13  ;;  %3425 = vmatpush3.bf16.msra.mxu0 %v3656_v32 }
  0x28   : > { %3426 = vmatprep.subr.bf16.mxu0 %v3657_v33 }
  0x2b   : > { %3427 = vmatpush3.bf16.msra.mxu0 %v3657_v33 }
  0x2c   : > { %3428 = vmatprep.subr.bf16.mxu0 %v3658_v35 }
  0x2e   : > { %3349 = vmatmul.mubr.bf16.gmra.mrb[4].mxu0 %v3635_v16 }
  0x2f   : > { %3352 = vmatprep.mubr.bf16.mxu0 %v3636_v17  ;;  %3429 = vmatpush3.bf16.msra.mxu0 %v3658_v35 }
  0x30   : > { %3430 = vmatprep.subr.bf16.mxu0 %v3659_v36 }
  0x33   : > { %3431 = vmatpush3.bf16.msra.mxu0 %v3659_v36 }
  0x34   : > { %3432 = vmatprep.subr.bf16.mxu0 %v3660_v37 }
  0x36   : > { %3353 = vmatmul.mubr.bf16.gmra.mrb[8].mxu0 %v3637_v19 }
  0x37   : > { %3356 = vmatprep.mubr.bf16.mxu0 %v3638_v20  ;;  %3433 = vmatpush3.bf16.msra.mxu0 %v3660_v37 }
  0x38   : > { %3434 = vmatprep.subr.bf16.mxu0 %v3661_v38 }
  0x3b   : > { %3435 = vmatpush3.bf16.msra.mxu0 %v3661_v38 }
  0x3c   : > { %3436 = vmatprep.subr.bf16.mxu0 %v3662_v39 }
  0x3e   : > { %3357 = vmatmul.mubr.bf16.gmra.mrb[12].mxu0 %v3639_v21 }
  0x3f   : > { %3360 = vmatprep.mubr.bf16.mxu0 %v3640_v22  ;;  %3437 = vmatpush3.bf16.msra.mxu0 %v3662_v39 }
  0x40   : > { %3438 = vmatprep.subr.bf16.mxu0 %v3663_v40 }
  0x43   : > { %3439 = vmatpush3.bf16.msra.mxu0 %v3663_v40 }
  0x44   : > { %3520 = vmatprep.subr.bf16.mxu0 %v3666_v41 }
  0x46   : > { %3361 = vmatmul.mubr.bf16.gmra.mrb[16].mxu0 %v3641_v23 }
  0x47   : > { %3364 = vmatprep.mubr.bf16.mxu0 %v3642_v24 }
  0x4e   : > { %3365 = vmatmul.mubr.bf16.gmra.mrb[20].mxu0 %v3643_v25 }
  0x4f   : > { %3368 = vmatprep.mubr.bf16.mxu0 %v3644_v26 }
  0x56   : > { %3369 = vmatmul.mubr.bf16.gmra.mrb[24].mxu0 %v3645_v27 }
  0x57   : > { %3372 = vmatprep.mubr.bf16.mxu0 %v3646_v28  ;;  %v3683_v28 = vld [vmem:[%s3870_s19 + $0x68] sm:$0xff]  }
  0x5e   : > { %3373 = vmatmul.mubr.bf16.gmra.mrb[28].mxu0 %v3647_v29 }
  0x5f   : > { %3440 = vmatprep.mubr.bf16.mxu0 %v3664_v34 }
  0x66   : > { %3441 = vmatmul.mubr.bf16.vlgmr.msra.gmra.mrb[32].mxu0 %v3665_v42 }
  0x67   : > { %3444 = vmatprep.mubr.bf16.mxu0 %v3667_v43  ;;  %3521 = vmatpush3.bf16.msra.mxu0 %v3666_v41 }
  0x68   : > { %3522 = vmatprep.subr.bf16.mxu0 %v3669_v44 }
  0x6b   : > { %3523 = vmatpush3.bf16.msra.mxu0 %v3669_v44  ;;  %v3686_v44 = vld [vmem:[%s3870_s19 + $0x78] sm:$0xff]   ;;  %s4139_s19 = scalar_lea.vmem %s4286_s11, %s3797_s30 }
  0x6c   : > { %3524 = vmatprep.subr.bf16.mxu0 %v3672_v45 }
  0x6e   : > { %3445 = vmatmul.mubr.bf16.gmra.mrb[36].mxu0 %v3668_v46 }
  0x6f   : > { %3448 = vmatprep.mubr.bf16.mxu0 %v3670_v47  ;;  %3525 = vmatpush3.bf16.msra.mxu0 %v3672_v45 }
  0x70   : > { %3526 = vmatprep.subr.bf16.mxu0 %v3675_v48 }
  0x73   : > { %3527 = vmatpush3.bf16.msra.mxu0 %v3675_v48 }
  0x74   : > { %3528 = vmatprep.subr.bf16.mxu0 %v3678_v49 }
  0x76   : > { %3449 = vmatmul.mubr.bf16.gmra.mrb[40].mxu0 %v3671_v50 }
  0x77   : > { %3452 = vmatprep.mubr.bf16.mxu0 %v3673_v51  ;;  %3529 = vmatpush3.bf16.msra.mxu0 %v3678_v49 }
  0x78   : > { %3530 = vmatprep.subr.bf16.mxu0 %v3681_v52 }
  0x7b   : > { %3531 = vmatpush3.bf16.msra.mxu0 %v3681_v52 }
  0x7c   : > { %3532 = vmatprep.subr.bf16.mxu0 %v3684_v53 }
  0x7e   : > { %3453 = vmatmul.mubr.bf16.gmra.mrb[44].mxu0 %v3674_v54 }
  0x7f   : > { %3456 = vmatprep.mubr.bf16.mxu0 %v3676_v55  ;;  %3533 = vmatpush3.bf16.msra.mxu0 %v3684_v53 }
  0x86   : > { %3457 = vmatmul.mubr.bf16.gmra.mrb[48].mxu0 %v3677_v60 }
  0x87   : > { %3460 = vmatprep.mubr.bf16.mxu0 %v3679_v63 }
  0x8e   : > { %3461 = vmatmul.mubr.bf16.gmra.mrb[52].mxu0 %v3680_v12 }
  0x8f   : > { %3464 = vmatprep.mubr.bf16.mxu0 %v3682_v15 }
  0x96   : > { %3465 = vmatmul.mubr.bf16.gmra.mrb[56].mxu0 %v3683_v28 }
  0x97   : > { %3468 = vmatprep.mubr.bf16.mxu0 %v3685_v31 }
  0x9e   : > { %3469 = vmatmul.mubr.bf16.gmra.mrb[60].mxu0 %v3686_v44 }
  0xf9   : > { %v3346_v57 = vpop.f32.mrb[0].mxu0 }
  0xfa   : > { %v709_v58 = vadd.f32 %v3346_v57, %v3923_v56  ;;  %v700_v59 = vpop.f32.mrb[1].mxu0 }
  0xfb   : > { %v701_v61 = vadd.f32 %v3923_v56, %v700_v59  ;;  %v3347_v62 = vpop.f32.mrb[2].mxu0 }
  0xfc   : > { %v712_v0 = vadd.f32 %v3347_v62, %v3923_v56  ;;  %v703_v1 = vpop.f32.mrb[3].mxu0  ;;  %v829_v3 = vmax.f32 %v709_v58, 0.0 }
  0xfd   : > { %v704_v2 = vadd.f32 %v3923_v56, %v703_v1  ;;  %v827_v5 = vmax.f32 %v701_v61, 0.0 }
  0xfe   : > { %v830_v4 = vmax.f32 %v712_v0, 0.0 }
  0xff   : > { %v828_v6 = vmax.f32 %v704_v2, 0.0 }
 0x100   : > { %v860_v7 = vpack.c.bf16 %v830_v4, %v829_v3 }
 0x101   : > { %v3350_v8 = vpop.f32.mrb[4].mxu0  ;;  %v859_v9 = vpack.c.bf16 %v828_v6, %v827_v5 }
 0x102   : > { %v725_v10 = vadd.f32 %v3350_v8, %v3923_v56  ;;  %v716_v11 = vpop.f32.mrb[5].mxu0 }
 0x103   : > { %v717_v13 = vadd.f32 %v3923_v56, %v716_v11  ;;  %v3351_v14 = vpop.f32.mrb[6].mxu0  ;;  %3392 = vmatprep.mubr.bf16.mxu1 %v859_v9 }
 0x104   : > { %v728_v16 = vadd.f32 %v3351_v14, %v3923_v56  ;;  %v719_v17 = vpop.f32.mrb[7].mxu0  ;;  %3393 = vmatmul.mubr.bf16.vlgmr.msra.gmra.mrb[0].mxu1 %v860_v7  ;;  %v833_v19 = vmax.f32 %v725_v10, 0.0 }
 0x105   : > { %v720_v18 = vadd.f32 %v3923_v56, %v719_v17  ;;  %v831_v21 = vmax.f32 %v717_v13, 0.0 }
 0x106   : > { %v834_v20 = vmax.f32 %v728_v16, 0.0 }
 0x107   : > { %v832_v22 = vmax.f32 %v720_v18, 0.0 }
 0x108   : > { %v862_v23 = vpack.c.bf16 %v834_v20, %v833_v19 }
 0x109   : > { %v861_v24 = vpack.c.bf16 %v832_v22, %v831_v21  ;;  %v3354_v25 = vpop.f32.mrb[8].mxu0 }
 0x10a   : > { %v741_v26 = vadd.f32 %v3354_v25, %v3923_v56  ;;  %v732_v27 = vpop.f32.mrb[9].mxu0 }
 0x10b   : > { %v733_v29 = vadd.f32 %v3923_v56, %v732_v27  ;;  %v3355_v30 = vpop.f32.mrb[10].mxu0  ;;  %3396 = vmatprep.mubr.bf16.mxu1 %v861_v24 }
 0x10c   : > { %v744_v32 = vadd.f32 %v3355_v30, %v3923_v56  ;;  %v735_v33 = vpop.f32.mrb[11].mxu0  ;;  %3397 = vmatmul.mubr.bf16.gmra.mrb[4].mxu1 %v862_v23  ;;  %v837_v35 = vmax.f32 %v741_v26, 0.0 }
 0x10d   : > { %v736_v34 = vadd.f32 %v3923_v56, %v735_v33  ;;  %v835_v37 = vmax.f32 %v733_v29, 0.0 }
 0x10e   : > { %v838_v36 = vmax.f32 %v744_v32, 0.0 }
 0x10f   : > { %v836_v38 = vmax.f32 %v736_v34, 0.0 }
 0x110   : > { %v864_v39 = vpack.c.bf16 %v838_v36, %v837_v35 }
 0x111   : > { %v863_v40 = vpack.c.bf16 %v836_v38, %v835_v37  ;;  %v3358_v41 = vpop.f32.mrb[12].mxu0 }
 0x112   : > { %v757_v42 = vadd.f32 %v3358_v41, %v3923_v56  ;;  %v748_v43 = vpop.f32.mrb[13].mxu0 }
 0x113   : > { %v749_v45 = vadd.f32 %v3923_v56, %v748_v43  ;;  %v3359_v46 = vpop.f32.mrb[14].mxu0  ;;  %3400 = vmatprep.mubr.bf16.mxu1 %v863_v40 }
 0x114   : > { %v760_v47 = vadd.f32 %v3359_v46, %v3923_v56  ;;  %v751_v48 = vpop.f32.mrb[15].mxu0  ;;  %3401 = vmatmul.mubr.bf16.gmra.mrb[8].mxu1 %v864_v39  ;;  %v841_v50 = vmax.f32 %v757_v42, 0.0 }
 0x115   : > { %v752_v49 = vadd.f32 %v3923_v56, %v751_v48  ;;  %v839_v52 = vmax.f32 %v749_v45, 0.0 }
 0x116   : > { %v842_v51 = vmax.f32 %v760_v47, 0.0 }
 0x117   : > { %v840_v53 = vmax.f32 %v752_v49, 0.0  ;;  %v3687_v49 = vld [vmem:[%s4281_s6 + $0x38] sm:$0xff]  }
 0x118   : > { %v866_v54 = vpack.c.bf16 %v842_v51, %v841_v50  ;;  %3534 = vmatprep.subr.bf16.mxu0 %v3687_v49  ;;  %v3688_v50 = vld [vmem:[%s4283_s8] sm:$0xff]   ;;  %v3690_v51 = vld [vmem:[%s4283_s8 + $0x10] sm:$0xff]  }
 0x119   : > { %v865_v55 = vpack.c.bf16 %v840_v53, %v839_v52  ;;  %v3362_v57 = vpop.f32.mrb[16].mxu0  ;;  %3535 = vmatpush3.bf16.msra.mxu0 %v3687_v49  ;;  %3472 = vmatprep.subr.bf16.mxu1 %v3688_v50  ;;  %v3691_v52 = vld [vmem:[%s4283_s8 + $0x18] sm:$0xff]   ;;  %v3692_v53 = vld [vmem:[%s4283_s8 + $0x20] sm:$0xff]  }
 0x11a   : > { %v773_v58 = vadd.f32 %v3362_v57, %v3923_v56  ;;  %v764_v59 = vpop.f32.mrb[17].mxu0  ;;  %3473 = vmatpush3.bf16.msra.mxu1 %v3688_v50  ;;  %v3991_v57 = vld [vmem:[%s4282_s7] ss:$0 sm:$0xff] }
 0x11b   : > { %v765_v60 = vadd.f32 %v3923_v56, %v764_v59  ;;  %v3363_v61 = vpop.f32.mrb[18].mxu0  ;;  %3404 = vmatprep.mubr.bf16.mxu1 %v865_v55  ;;  %v3694_v55 = vld [vmem:[%s4283_s8 + $0x30] sm:$0xff]  }
 0x11c   : > { %v776_v62 = vadd.f32 %v3363_v61, %v3923_v56  ;;  %v767_v63 = vpop.f32.mrb[19].mxu0  ;;  %3405 = vmatmul.mubr.bf16.gmra.mrb[12].mxu1 %v866_v54  ;;  %v845_v1 = vmax.f32 %v773_v58, 0.0  ;;  %v3693_v54 = vld [vmem:[%s4283_s8 + $0x28] sm:$0xff]   ;;  %v3695_v58 = vld [vmem:[%s4283_s8 + $0x38] sm:$0xff]  }
 0x11d   : > { %v768_v0 = vadd.f32 %v3923_v56, %v767_v63  ;;  %v843_v3 = vmax.f32 %v765_v60, 0.0 }
 0x11e   : > { %v846_v2 = vmax.f32 %v776_v62, 0.0 }
 0x11f   : > { %v844_v4 = vmax.f32 %v768_v0, 0.0 }
 0x120   : > { %v868_v5 = vpack.c.bf16 %v846_v2, %v845_v1 }
 0x121   : > { %v867_v6 = vpack.c.bf16 %v844_v4, %v843_v3  ;;  %v3366_v7 = vpop.f32.mrb[20].mxu0  ;;  %v3696_v3 = vld [vmem:[%s4283_s8] sm:$0xff]  }
 0x122   : > { %v789_v8 = vadd.f32 %v3366_v7, %v3923_v56  ;;  %v780_v9 = vpop.f32.mrb[21].mxu0 }
 0x123   : > { %v781_v10 = vadd.f32 %v3923_v56, %v780_v9  ;;  %v3367_v11 = vpop.f32.mrb[22].mxu0  ;;  %3408 = vmatprep.mubr.bf16.mxu1 %v867_v6 }
 0x124   : > { %v792_v12 = vadd.f32 %v3367_v11, %v3923_v56  ;;  %v783_v13 = vpop.f32.mrb[23].mxu0  ;;  %3409 = vmatmul.mubr.bf16.gmra.mrb[16].mxu1 %v868_v5  ;;  %v849_v15 = vmax.f32 %v789_v8, 0.0 }
 0x125   : > { %v784_v14 = vadd.f32 %v3923_v56, %v783_v13  ;;  %v847_v17 = vmax.f32 %v781_v10, 0.0  ;;  %v3697_v13 = vld [vmem:[%s4283_s8 + $0x8] sm:$0xff]  }
 0x126   : > { %v850_v16 = vmax.f32 %v792_v12, 0.0 }
 0x127   : > { %v848_v18 = vmax.f32 %v784_v14, 0.0 }
 0x128   : > { %v870_v19 = vpack.c.bf16 %v850_v16, %v849_v15 }
 0x129   : > { %v869_v20 = vpack.c.bf16 %v848_v18, %v847_v17  ;;  %v3370_v21 = vpop.f32.mrb[24].mxu0 }
 0x12a   : > { %v805_v22 = vadd.f32 %v3370_v21, %v3923_v56  ;;  %v796_v23 = vpop.f32.mrb[25].mxu0 }
 0x12b   : > { %v797_v24 = vadd.f32 %v3923_v56, %v796_v23  ;;  %v3371_v25 = vpop.f32.mrb[26].mxu0  ;;  %3412 = vmatprep.mubr.bf16.mxu1 %v869_v20 }
 0x12c   : > { %v808_v26 = vadd.f32 %v3371_v25, %v3923_v56  ;;  %v799_v27 = vpop.f32.mrb[27].mxu0  ;;  %3413 = vmatmul.mubr.bf16.gmra.mrb[20].mxu1 %v870_v19  ;;  %v853_v29 = vmax.f32 %v805_v22, 0.0  ;;  %v3698_v22 = vld [vmem:[%s4283_s8 + $0x10] sm:$0xff]  }
 0x12d   : > { %v800_v28 = vadd.f32 %v3923_v56, %v799_v27  ;;  %v851_v31 = vmax.f32 %v797_v24, 0.0 }
 0x12e   : > { %v854_v30 = vmax.f32 %v808_v26, 0.0 }
 0x12f   : > { %v852_v32 = vmax.f32 %v800_v28, 0.0 }
 0x130   : > { %v872_v33 = vpack.c.bf16 %v854_v30, %v853_v29  ;;  %v3699_v29 = vld [vmem:[%s4283_s8 + $0x18] sm:$0xff]  }
 0x131   : > { %v871_v34 = vpack.c.bf16 %v852_v32, %v851_v31  ;;  %v3374_v35 = vpop.f32.mrb[28].mxu0 }
 0x132   : > { %v821_v36 = vadd.f32 %v3374_v35, %v3923_v56  ;;  %v812_v37 = vpop.f32.mrb[29].mxu0 }
 0x133   : > { %v813_v38 = vadd.f32 %v3923_v56, %v812_v37  ;;  %v3375_v39 = vpop.f32.mrb[30].mxu0  ;;  %3416 = vmatprep.mubr.bf16.mxu1 %v871_v34 }
 0x134   : > { %v824_v40 = vadd.f32 %v3375_v39, %v3923_v56  ;;  %v815_v41 = vpop.f32.mrb[31].mxu0  ;;  %3417 = vmatmul.mubr.bf16.gmra.mrb[24].mxu1 %v872_v33  ;;  %v857_v43 = vmax.f32 %v821_v36, 0.0 }
 0x135   : > { %v816_v42 = vadd.f32 %v3923_v56, %v815_v41  ;;  %v855_v45 = vmax.f32 %v813_v38, 0.0  ;;  %v3689_v56 = vld [vmem:[%s4283_s8 + $0x8] sm:$0xff]   ;;  %v3700_v38 = vld [vmem:[%s4283_s8 + $0x20] sm:$0xff]  }
 0x136   : > { %v858_v44 = vmax.f32 %v824_v40, 0.0  ;;  %3474 = vmatprep.subr.bf16.mxu1 %v3689_v56 }
 0x137   : > { %v856_v46 = vmax.f32 %v816_v42, 0.0  ;;  %3475 = vmatpush3.bf16.msra.mxu1 %v3689_v56 }
 0x138   : > { %v874_v47 = vpack.c.bf16 %v858_v44, %v857_v43  ;;  %3476 = vmatprep.subr.bf16.mxu1 %v3690_v51 }
 0x139   : > { %v873_v48 = vpack.c.bf16 %v856_v46, %v855_v45  ;;  %v3442_v59 = vpop.f32.mrb[32].mxu0  ;;  %v3701_v45 = vld [vmem:[%s4283_s8 + $0x28] sm:$0xff]  }
 0x13a   : > { %v1381_v60 = vadd.f32 %v3442_v59, %v3991_v57  ;;  %v1372_v61 = vpop.f32.mrb[33].mxu0 }
 0x13b   : > { %3420 = vmatprep.mubr.bf16.mxu1 %v873_v48  ;;  %3477 = vmatpush3.bf16.msra.mxu1 %v3690_v51  ;;  %v1373_v62 = vadd.f32 %v3991_v57, %v1372_v61  ;;  %v3443_v63 = vpop.f32.mrb[34].mxu0 }
 0x13c   : > { %3421 = vmatmul.mubr.bf16.gmra.mrb[28].mxu1 %v874_v47  ;;  %3478 = vmatprep.subr.bf16.mxu1 %v3691_v52  ;;  %v1501_v0 = vmax.f32 %v1381_v60, 0.0  ;;  %v1384_v1 = vadd.f32 %v3443_v63, %v3991_v57  ;;  %v1375_v2 = vpop.f32.mrb[35].mxu0 }
 0x13d   : > { %v1499_v4 = vmax.f32 %v1373_v62, 0.0  ;;  %v1376_v5 = vadd.f32 %v3991_v57, %v1375_v2 }
 0x13e   : > { %v1502_v6 = vmax.f32 %v1384_v1, 0.0 }
 0x13f   : > { %3479 = vmatpush3.bf16.msra.mxu1 %v3691_v52  ;;  %v1500_v7 = vmax.f32 %v1376_v5, 0.0 }
 0x140   : > { %3480 = vmatprep.subr.bf16.mxu1 %v3692_v53  ;;  %v1532_v8 = vpack.c.bf16 %v1502_v6, %v1501_v0 }
 0x141   : > { %v1531_v9 = vpack.c.bf16 %v1500_v7, %v1499_v4  ;;  %v3446_v10 = vpop.f32.mrb[36].mxu0 }
 0x142   : > { %v1397_v11 = vadd.f32 %v3446_v10, %v3991_v57  ;;  %v1388_v12 = vpop.f32.mrb[37].mxu0 }
 0x143   : > { %3481 = vmatpush3.bf16.msra.mxu1 %v3692_v53  ;;  %v1389_v14 = vadd.f32 %v3991_v57, %v1388_v12  ;;  %v3447_v15 = vpop.f32.mrb[38].mxu0  ;;  %3488 = vmatprep.mubr.bf16.mxu1 %v1531_v9  ;;  %v3702_v53 = vld [vmem:[%s4283_s8 + $0x30] sm:$0xff]  }
 0x144   : > { %3482 = vmatprep.subr.bf16.mxu1 %v3693_v54  ;;  %v1505_v16 = vmax.f32 %v1397_v11, 0.0  ;;  %v1400_v17 = vadd.f32 %v3447_v15, %v3991_v57  ;;  %v1391_v18 = vpop.f32.mrb[39].mxu0 }
 0x145   : > { %v1503_v19 = vmax.f32 %v1389_v14, 0.0  ;;  %v1392_v20 = vadd.f32 %v3991_v57, %v1391_v18 }
 0x146   : > { %v1506_v21 = vmax.f32 %v1400_v17, 0.0 }
 0x147   : > { %3483 = vmatpush3.bf16.msra.mxu1 %v3693_v54  ;;  %v1504_v23 = vmax.f32 %v1392_v20, 0.0 }
 0x148   : > { %3484 = vmatprep.subr.bf16.mxu1 %v3694_v55  ;;  %v1534_v24 = vpack.c.bf16 %v1506_v21, %v1505_v16 }
 0x149   : > { %v1533_v25 = vpack.c.bf16 %v1504_v23, %v1503_v19  ;;  %v3450_v26 = vpop.f32.mrb[40].mxu0 }
 0x14a   : > { %v1413_v27 = vadd.f32 %v3450_v26, %v3991_v57  ;;  %v1404_v28 = vpop.f32.mrb[41].mxu0 }
 0x14b   : > { %3485 = vmatpush3.bf16.msra.mxu1 %v3694_v55  ;;  %v1405_v30 = vadd.f32 %v3991_v57, %v1404_v28  ;;  %v3451_v31 = vpop.f32.mrb[42].mxu0 }
 0x14c   : > { %3486 = vmatprep.subr.bf16.mxu1 %v3695_v58  ;;  %v1509_v32 = vmax.f32 %v1413_v27, 0.0  ;;  %v1416_v33 = vadd.f32 %v3451_v31, %v3991_v57  ;;  %v1407_v34 = vpop.f32.mrb[43].mxu0 }
 0x14d   : > { %v1507_v35 = vmax.f32 %v1405_v30, 0.0  ;;  %v1408_v36 = vadd.f32 %v3991_v57, %v1407_v34 }
 0x14e   : > { %v1510_v37 = vmax.f32 %v1416_v33, 0.0 }
 0x14f   : > { %3487 = vmatpush3.bf16.msra.mxu1 %v3695_v58  ;;  %v1508_v39 = vmax.f32 %v1408_v36, 0.0 }
 0x150   : > { %3568 = vmatprep.subr.bf16.mxu1 %v3696_v3  ;;  %v1536_v40 = vpack.c.bf16 %v1510_v37, %v1509_v32 }
 0x151   : > { %v1535_v41 = vpack.c.bf16 %v1508_v39, %v1507_v35  ;;  %v3454_v42 = vpop.f32.mrb[44].mxu0 }
 0x152   : > { %3489 = vmatmul.mubr.bf16.vlgmr.msra.gmra.mrb[32].mxu1 %v1532_v8  ;;  %v1429_v43 = vadd.f32 %v3454_v42, %v3991_v57  ;;  %v1420_v44 = vpop.f32.mrb[45].mxu0 }
 0x153   : > { %3569 = vmatpush3.bf16.msra.mxu1 %v3696_v3  ;;  %3492 = vmatprep.mubr.bf16.mxu1 %v1533_v25  ;;  %v1421_v46 = vadd.f32 %v3991_v57, %v1420_v44  ;;  %v3455_v47 = vpop.f32.mrb[46].mxu0  ;;  %v4040_v3 = vld [vmem:[%s4280_s5] ss:$0 sm:$0xff] }
 0x154   : > { %3570 = vmatprep.subr.bf16.mxu1 %v3697_v13  ;;  %v1513_v48 = vmax.f32 %v1429_v43, 0.0  ;;  %v1432_v49 = vadd.f32 %v3455_v47, %v3991_v57  ;;  %v1423_v50 = vpop.f32.mrb[47].mxu0 }
 0x155   : > { %v1511_v56 = vmax.f32 %v1421_v46, 0.0  ;;  %v1424_v51 = vadd.f32 %v3991_v57, %v1423_v50 }
 0x156   : > { %v1514_v52 = vmax.f32 %v1432_v49, 0.0 }
 0x157   : > { %3571 = vmatpush3.bf16.msra.mxu1 %v3697_v13  ;;  %v1512_v54 = vmax.f32 %v1424_v51, 0.0 }
 0x158   : > { %3572 = vmatprep.subr.bf16.mxu1 %v3698_v22  ;;  %v1538_v55 = vpack.c.bf16 %v1514_v52, %v1513_v48 }
 0x159   : > { %v1537_v58 = vpack.c.bf16 %v1512_v54, %v1511_v56  ;;  %v3458_v59 = vpop.f32.mrb[48].mxu0 }
 0x15a   : > { %3493 = vmatmul.mubr.bf16.gmra.mrb[36].mxu1 %v1534_v24  ;;  %v1445_v60 = vadd.f32 %v3458_v59, %v3991_v57  ;;  %v1436_v61 = vpop.f32.mrb[49].mxu0 }
 0x15b   : > { %3573 = vmatpush3.bf16.msra.mxu1 %v3698_v22  ;;  %3496 = vmatprep.mubr.bf16.mxu1 %v1535_v41  ;;  %v1437_v62 = vadd.f32 %v3991_v57, %v1436_v61  ;;  %v3459_v63 = vpop.f32.mrb[50].mxu0 }
 0x15c   : > { %3574 = vmatprep.subr.bf16.mxu1 %v3699_v29  ;;  %v1517_v0 = vmax.f32 %v1445_v60, 0.0  ;;  %v1448_v1 = vadd.f32 %v3459_v63, %v3991_v57  ;;  %v1439_v2 = vpop.f32.mrb[51].mxu0 }
 0x15d   : > { %v1515_v4 = vmax.f32 %v1437_v62, 0.0  ;;  %v1440_v5 = vadd.f32 %v3991_v57, %v1439_v2 }
 0x15e   : > { %v1518_v6 = vmax.f32 %v1448_v1, 0.0 }
 0x15f   : > { %3575 = vmatpush3.bf16.msra.mxu1 %v3699_v29  ;;  %v1516_v8 = vmax.f32 %v1440_v5, 0.0 }
 0x160   : > { %3576 = vmatprep.subr.bf16.mxu1 %v3700_v38  ;;  %v1540_v11 = vpack.c.bf16 %v1518_v6, %v1517_v0 }
 0x161   : > { %v1539_v14 = vpack.c.bf16 %v1516_v8, %v1515_v4  ;;  %v3462_v15 = vpop.f32.mrb[52].mxu0 }
 0x162   : > { %3497 = vmatmul.mubr.bf16.gmra.mrb[40].mxu1 %v1536_v40  ;;  %v1461_v18 = vadd.f32 %v3462_v15, %v3991_v57  ;;  %v1452_v19 = vpop.f32.mrb[53].mxu0 }
 0x163   : > { %3577 = vmatpush3.bf16.msra.mxu1 %v3700_v38  ;;  %3500 = vmatprep.mubr.bf16.mxu1 %v1537_v58  ;;  %v1453_v21 = vadd.f32 %v3991_v57, %v1452_v19  ;;  %v3463_v22 = vpop.f32.mrb[54].mxu0 }
 0x164   : > { %3578 = vmatprep.subr.bf16.mxu1 %v3701_v45  ;;  %v1521_v24 = vmax.f32 %v1461_v18, 0.0  ;;  %v1464_v25 = vadd.f32 %v3463_v22, %v3991_v57  ;;  %v1455_v26 = vpop.f32.mrb[55].mxu0 }
 0x165   : > { %v1519_v28 = vmax.f32 %v1453_v21, 0.0  ;;  %v1456_v29 = vadd.f32 %v3991_v57, %v1455_v26 }
 0x166   : > { %v1522_v30 = vmax.f32 %v1464_v25, 0.0 }
 0x167   : > { %3579 = vmatpush3.bf16.msra.mxu1 %v3701_v45  ;;  %v1520_v32 = vmax.f32 %v1456_v29, 0.0 }
 0x168   : > { %3580 = vmatprep.subr.bf16.mxu1 %v3702_v53  ;;  %v1542_v35 = vpack.c.bf16 %v1522_v30, %v1521_v24 }
 0x169   : > { %v1541_v38 = vpack.c.bf16 %v1520_v32, %v1519_v28  ;;  %v3466_v39 = vpop.f32.mrb[56].mxu0 }
 0x16a   : > { %3501 = vmatmul.mubr.bf16.gmra.mrb[44].mxu1 %v1538_v55  ;;  %v1477_v42 = vadd.f32 %v3466_v39, %v3991_v57  ;;  %v1468_v43 = vpop.f32.mrb[57].mxu0 }
 0x16b   : > { %3581 = vmatpush3.bf16.msra.mxu1 %v3702_v53  ;;  %3504 = vmatprep.mubr.bf16.mxu1 %v1539_v14  ;;  %v1469_v45 = vadd.f32 %v3991_v57, %v1468_v43  ;;  %v3467_v46 = vpop.f32.mrb[58].mxu0 }
 0x16c   : > { %v1525_v48 = vmax.f32 %v1477_v42, 0.0  ;;  %v1480_v49 = vadd.f32 %v3467_v46, %v3991_v57  ;;  %v1471_v50 = vpop.f32.mrb[59].mxu0 }
 0x16d   : > { %v1523_v51 = vmax.f32 %v1469_v45, 0.0  ;;  %v1472_v52 = vadd.f32 %v3991_v57, %v1471_v50 }
 0x16e   : > { %v1526_v53 = vmax.f32 %v1480_v49, 0.0 }
 0x16f   : > { %v1524_v55 = vmax.f32 %v1472_v52, 0.0 }
 0x170   : > { %v1544_v60 = vpack.c.bf16 %v1526_v53, %v1525_v48 }
 0x171   : > { %v1543_v63 = vpack.c.bf16 %v1524_v55, %v1523_v51  ;;  %v3470_v0 = vpop.f32.mrb[60].mxu0 }
 0x172   : > { %3505 = vmatmul.mubr.bf16.gmra.mrb[48].mxu1 %v1540_v11  ;;  %v1493_v4 = vadd.f32 %v3470_v0, %v3991_v57  ;;  %v1484_v5 = vpop.f32.mrb[61].mxu0 }
 0x173   : > { %3508 = vmatprep.mubr.bf16.mxu1 %v1541_v38  ;;  %v3471_v8 = vpop.f32.mrb[62].mxu0 }
 0x174   : > { %v1496_v11 = vadd.f32 %v3471_v8, %v3991_v57  ;;  %v3703_v8 = vld [vmem:[%s4283_s8 + $0x38] sm:$0xff]  }
 0x175   : > { %3582 = vmatprep.subr.bf16.mxu1 %v3703_v8 }
 0x176   : > { %3583 = vmatpush3.bf16.msra.mxu1 %v3703_v8 }
 0x17a   : > { %3509 = vmatmul.mubr.bf16.gmra.mrb[52].mxu1 %v1542_v35 }
 0x17b   : > { %3512 = vmatprep.mubr.bf16.mxu1 %v1543_v63 }
 0x182   : > { %3513 = vmatmul.mubr.bf16.gmra.mrb[56].mxu1 %v1544_v60 }
 0x1d7   : > { %v3394_v7 = vpop.f32.mrb[0].mxu1 }
 0x1d8   : > { %v989_v9 = vadd.f32 %v3394_v7, %v4040_v3  ;;  %v980_v10 = vpop.f32.mrb[1].mxu1  ;;  %v1485_v7 = vadd.f32 %v3991_v57, %v1484_v5 }
 0x1d9   : > { %v981_v12 = vadd.f32 %v4040_v3, %v980_v10  ;;  %v3395_v13 = vpop.f32.mrb[2].mxu1  ;;  %v1529_v10 = vmax.f32 %v1493_v4, 0.0 }
 0x1da   : > { %1109 = vst [vmem:[%s4046_s13 + $0x10] sm:$0xff] %v989_v9  ;;  %v992_v16 = vadd.f32 %v3395_v13, %v4040_v3  ;;  %v983_v17 = vpop.f32.mrb[3].mxu1  ;;  %v1527_v14 = vmax.f32 %v1485_v7, 0.0 }
 0x1db   : > { %1107 = vst [vmem:[%s4046_s13] sm:$0xff] %v981_v12  ;;  %v984_v20 = vadd.f32 %v4040_v3, %v983_v17 }
 0x1dc   : > { %1110 = vst [vmem:[%s4046_s13 + $0x18] sm:$0xff] %v992_v16  ;;  %v1940_v23 = vpack.c.bf16 %v992_v16, %v989_v9  ;;  %v1530_v16 = vmax.f32 %v1496_v11, 0.0 }
 0x1dd   : > { %1108 = vst [vmem:[%s4046_s13 + $0x8] sm:$0xff] %v984_v20  ;;  %v1939_v27 = vpack.c.bf16 %v984_v20, %v981_v12  ;;  %v1487_v12 = vpop.f32.mrb[63].mxu0 }
 0x1de   : > { %v1488_v15 = vadd.f32 %v3991_v57, %v1487_v12  ;;  %v1546_v21 = vpack.c.bf16 %v1530_v16, %v1529_v10 }
 0x1df   : > { %v3398_v31 = vpop.f32.mrb[4].mxu1  ;;  %3536 = vmatprep.mubr.bf16.mxu0 %v1939_v27 }
 0x1e0   : > { %v1005_v33 = vadd.f32 %v3398_v31, %v4040_v3  ;;  %v996_v34 = vpop.f32.mrb[5].mxu1  ;;  %3537 = vmatmul.mubr.bf16.vlgmr.msra.gmra.mrb[64].mxu0 %v1940_v23  ;;  %v1528_v18 = vmax.f32 %v1488_v15, 0.0 }
 0x1e1   : > { %v997_v36 = vadd.f32 %v4040_v3, %v996_v34  ;;  %v3399_v37 = vpop.f32.mrb[6].mxu1 }
 0x1e2   : > { %1113 = vst [vmem:[%s4046_s13 + $0x30] sm:$0xff] %v1005_v33  ;;  %v1008_v40 = vadd.f32 %v3399_v37, %v4040_v3  ;;  %v999_v41 = vpop.f32.mrb[7].mxu1  ;;  %v1545_v24 = vpack.c.bf16 %v1528_v18, %v1527_v14 }
 0x1e3   : > { %1111 = vst [vmem:[%s4046_s13 + $0x20] sm:$0xff] %v997_v36  ;;  %v1000_v44 = vadd.f32 %v4040_v3, %v999_v41 }
 0x1e4   : > { %1114 = vst [vmem:[%s4046_s13 + $0x38] sm:$0xff] %v1008_v40  ;;  %v1942_v47 = vpack.c.bf16 %v1008_v40, %v1005_v33  ;;  %3516 = vmatprep.mubr.bf16.mxu1 %v1545_v24 }
 0x1e5   : > { %1112 = vst [vmem:[%s4046_s13 + $0x28] sm:$0xff] %v1000_v44  ;;  %v1941_v56 = vpack.c.bf16 %v1000_v44, %v997_v36  ;;  %3517 = vmatmul.mubr.bf16.gmra.mrb[60].mxu1 %v1546_v21 }
 0x1e7   : > { %v3402_v54 = vpop.f32.mrb[8].mxu1  ;;  %3540 = vmatprep.mubr.bf16.mxu0 %v1941_v56 }
 0x1e8   : > { %v1021_v58 = vadd.f32 %v3402_v54, %v4040_v3  ;;  %v1012_v59 = vpop.f32.mrb[9].mxu1  ;;  %3541 = vmatmul.mubr.bf16.gmra.mrb[68].mxu0 %v1942_v47 }
 0x1e9   : > { %v1013_v61 = vadd.f32 %v4040_v3, %v1012_v59  ;;  %v3403_v62 = vpop.f32.mrb[10].mxu1 }
 0x1ea   : > { %1117 = vst [vmem:[%s4046_s13 + $0x50] sm:$0xff] %v1021_v58  ;;  %v1024_v1 = vadd.f32 %v3403_v62, %v4040_v3  ;;  %v1015_v2 = vpop.f32.mrb[11].mxu1 }
 0x1eb   : > { %1115 = vst [vmem:[%s4046_s13 + $0x40] sm:$0xff] %v1013_v61  ;;  %v1016_v6 = vadd.f32 %v4040_v3, %v1015_v2 }
 0x1ec   : > { %1118 = vst [vmem:[%s4046_s13 + $0x58] sm:$0xff] %v1024_v1  ;;  %v1944_v9 = vpack.c.bf16 %v1024_v1, %v1021_v58 }
 0x1ed   : > { %1116 = vst [vmem:[%s4046_s13 + $0x48] sm:$0xff] %v1016_v6  ;;  %v1943_v13 = vpack.c.bf16 %v1016_v6, %v1013_v61 }
 0x1ef   : > { %v3406_v17 = vpop.f32.mrb[12].mxu1  ;;  %3544 = vmatprep.mubr.bf16.mxu0 %v1943_v13 }
 0x1f0   : > { %v1037_v19 = vadd.f32 %v3406_v17, %v4040_v3  ;;  %v1028_v20 = vpop.f32.mrb[13].mxu1  ;;  %3545 = vmatmul.mubr.bf16.gmra.mrb[72].mxu0 %v1944_v9  ;;  %v4130_v9 = vld [vmem:[%s4284_s9] ss:$0 sm:$0xff] }
 0x1f1   : > { %v1029_v22 = vadd.f32 %v4040_v3, %v1028_v20  ;;  %v3407_v23 = vpop.f32.mrb[14].mxu1 }
 0x1f2   : > { %1121 = vst [vmem:[%s4046_s13 + $0x70] sm:$0xff] %v1037_v19  ;;  %v1040_v25 = vadd.f32 %v3407_v23, %v4040_v3  ;;  %v1031_v26 = vpop.f32.mrb[15].mxu1 }
 0x1f3   : > { %1119 = vst [vmem:[%s4046_s13 + $0x60] sm:$0xff] %v1029_v22  ;;  %v1032_v27 = vadd.f32 %v4040_v3, %v1031_v26 }
 0x1f4   : > { %1122 = vst [vmem:[%s4046_s13 + $0x78] sm:$0xff] %v1040_v25  ;;  %v1946_v28 = vpack.c.bf16 %v1040_v25, %v1037_v19 }
 0x1f5   : > { %1120 = vst [vmem:[%s4046_s13 + $0x68] sm:$0xff] %v1032_v27  ;;  %v1945_v29 = vpack.c.bf16 %v1032_v27, %v1029_v22 }
 0x1f7   : > { %v3410_v30 = vpop.f32.mrb[16].mxu1  ;;  %3548 = vmatprep.mubr.bf16.mxu0 %v1945_v29 }
 0x1f8   : > { %v1053_v31 = vadd.f32 %v3410_v30, %v4040_v3  ;;  %v1044_v32 = vpop.f32.mrb[17].mxu1  ;;  %3549 = vmatmul.mubr.bf16.gmra.mrb[76].mxu0 %v1946_v28 }
 0x1f9   : > { %v1045_v33 = vadd.f32 %v4040_v3, %v1044_v32  ;;  %v3411_v34 = vpop.f32.mrb[18].mxu1 }
 0x1fa   : > { %1125 = vst [vmem:[%s4046_s13 + $0x90] sm:$0xff] %v1053_v31  ;;  %v1056_v35 = vadd.f32 %v3411_v34, %v4040_v3  ;;  %v1047_v36 = vpop.f32.mrb[19].mxu1 }
 0x1fb   : > { %1123 = vst [vmem:[%s4046_s13 + $0x80] sm:$0xff] %v1045_v33  ;;  %v1048_v37 = vadd.f32 %v4040_v3, %v1047_v36 }
 0x1fc   : > { %1126 = vst [vmem:[%s4046_s13 + $0x98] sm:$0xff] %v1056_v35  ;;  %v1948_v38 = vpack.c.bf16 %v1056_v35, %v1053_v31 }
 0x1fd   : > { %1124 = vst [vmem:[%s4046_s13 + $0x88] sm:$0xff] %v1048_v37  ;;  %v1947_v39 = vpack.c.bf16 %v1048_v37, %v1045_v33 }
 0x1ff   : > { %v3414_v40 = vpop.f32.mrb[20].mxu1  ;;  %3552 = vmatprep.mubr.bf16.mxu0 %v1947_v39 }
 0x200   : > { %v1069_v41 = vadd.f32 %v3414_v40, %v4040_v3  ;;  %v1060_v42 = vpop.f32.mrb[21].mxu1  ;;  %3553 = vmatmul.mubr.bf16.gmra.mrb[80].mxu0 %v1948_v38 }
 0x201   : > { %v1061_v43 = vadd.f32 %v4040_v3, %v1060_v42  ;;  %v3415_v44 = vpop.f32.mrb[22].mxu1 }
 0x202   : > { %1129 = vst [vmem:[%s4046_s13 + $0xb0] sm:$0xff] %v1069_v41  ;;  %v1072_v45 = vadd.f32 %v3415_v44, %v4040_v3  ;;  %v1063_v46 = vpop.f32.mrb[23].mxu1 }
 0x203   : > { %1127 = vst [vmem:[%s4046_s13 + $0xa0] sm:$0xff] %v1061_v43  ;;  %v1064_v47 = vadd.f32 %v4040_v3, %v1063_v46 }
 0x204   : > { %1130 = vst [vmem:[%s4046_s13 + $0xb8] sm:$0xff] %v1072_v45  ;;  %v1950_v48 = vpack.c.bf16 %v1072_v45, %v1069_v41 }
 0x205   : > { %1128 = vst [vmem:[%s4046_s13 + $0xa8] sm:$0xff] %v1064_v47  ;;  %v1949_v49 = vpack.c.bf16 %v1064_v47, %v1061_v43 }
 0x207   : > { %v3418_v50 = vpop.f32.mrb[24].mxu1  ;;  %3556 = vmatprep.mubr.bf16.mxu0 %v1949_v49 }
 0x208   : > { %v1085_v56 = vadd.f32 %v3418_v50, %v4040_v3  ;;  %v1076_v51 = vpop.f32.mrb[25].mxu1  ;;  %3557 = vmatmul.mubr.bf16.gmra.mrb[84].mxu0 %v1950_v48 }
 0x209   : > { %v1077_v52 = vadd.f32 %v4040_v3, %v1076_v51  ;;  %v3419_v53 = vpop.f32.mrb[26].mxu1 }
 0x20a   : > { %1133 = vst [vmem:[%s4046_s13 + $0xd0] sm:$0xff] %v1085_v56  ;;  %v1088_v54 = vadd.f32 %v3419_v53, %v4040_v3  ;;  %v1079_v55 = vpop.f32.mrb[27].mxu1 }
 0x20b   : > { %1131 = vst [vmem:[%s4046_s13 + $0xc0] sm:$0xff] %v1077_v52  ;;  %v1080_v58 = vadd.f32 %v4040_v3, %v1079_v55 }
 0x20c   : > { %1134 = vst [vmem:[%s4046_s13 + $0xd8] sm:$0xff] %v1088_v54  ;;  %v1952_v59 = vpack.c.bf16 %v1088_v54, %v1085_v56 }
 0x20d   : > { %1132 = vst [vmem:[%s4046_s13 + $0xc8] sm:$0xff] %v1080_v58  ;;  %v1951_v60 = vpack.c.bf16 %v1080_v58, %v1077_v52 }
 0x20f   : > { %v3422_v61 = vpop.f32.mrb[28].mxu1  ;;  %3560 = vmatprep.mubr.bf16.mxu0 %v1951_v60 }
 0x210   : > { %v1101_v62 = vadd.f32 %v3422_v61, %v4040_v3  ;;  %v1092_v63 = vpop.f32.mrb[29].mxu1  ;;  %3561 = vmatmul.mubr.bf16.gmra.mrb[88].mxu0 %v1952_v59 }
 0x211   : > { %v1093_v0 = vadd.f32 %v4040_v3, %v1092_v63  ;;  %v3423_v1 = vpop.f32.mrb[30].mxu1 }
 0x212   : > { %1137 = vst [vmem:[%s4046_s13 + $0xf0] sm:$0xff] %v1101_v62  ;;  %v1104_v2 = vadd.f32 %v3423_v1, %v4040_v3  ;;  %v1095_v4 = vpop.f32.mrb[31].mxu1 }
 0x213   : > { %1135 = vst [vmem:[%s4046_s13 + $0xe0] sm:$0xff] %v1093_v0  ;;  %v1096_v5 = vadd.f32 %v4040_v3, %v1095_v4 }
 0x214   : > { %1138 = vst [vmem:[%s4046_s13 + $0xf8] sm:$0xff] %v1104_v2  ;;  %v1954_v6 = vpack.c.bf16 %v1104_v2, %v1101_v62 }
 0x215   : > { %1136 = vst [vmem:[%s4046_s13 + $0xe8] sm:$0xff] %v1096_v5  ;;  %v1953_v7 = vpack.c.bf16 %v1096_v5, %v1093_v0 }
 0x217   : > { %3564 = vmatprep.mubr.bf16.mxu0 %v1953_v7 }
 0x218   : > { %3565 = vmatmul.mubr.bf16.gmra.mrb[92].mxu0 %v1954_v6 }
 0x225   : > { %v3490_v10 = vpop.f32.mrb[32].mxu1 }
 0x226   : > { %v1661_v3 = vadd.f32 %v3490_v10, %v4130_v9  ;;  %v1652_v11 = vpop.f32.mrb[33].mxu1 }
 0x227   : > { %v1653_v12 = vadd.f32 %v4130_v9, %v1652_v11  ;;  %v3491_v13 = vpop.f32.mrb[34].mxu1 }
 0x228   : > { %v1664_v14 = vadd.f32 %v3491_v13, %v4130_v9  ;;  %v1655_v15 = vpop.f32.mrb[35].mxu1 }
 0x229   : > { %v1656_v16 = vadd.f32 %v4130_v9, %v1655_v15 }
 0x22a   : > { %v3002_v17 = vpack.c.bf16 %v1664_v14, %v1661_v3 }
 0x22b   : > { %v2997_v18 = vpack.c.bf16 %v1656_v16, %v1653_v12 }
 0x22c   : > { %3154 = vst [vmem:[%s4139_s19 + $0x8] sm:$0xff] %v3002_v17  }
 0x22d   : > { %2998 = vst [vmem:[%s4139_s19] sm:$0xff] %v2997_v18   ;;  %v3494_v19 = vpop.f32.mrb[36].mxu1 }
 0x22e   : > { %v1677_v20 = vadd.f32 %v3494_v19, %v4130_v9  ;;  %v1668_v21 = vpop.f32.mrb[37].mxu1 }
 0x22f   : > { %v1669_v22 = vadd.f32 %v4130_v9, %v1668_v21  ;;  %v3495_v23 = vpop.f32.mrb[38].mxu1 }
 0x230   : > { %v1680_v24 = vadd.f32 %v3495_v23, %v4130_v9  ;;  %v1671_v25 = vpop.f32.mrb[39].mxu1 }
 0x231   : > { %v1672_v26 = vadd.f32 %v4130_v9, %v1671_v25 }
 0x232   : > { %v3012_v27 = vpack.c.bf16 %v1680_v24, %v1677_v20 }
 0x233   : > { %v3007_v28 = vpack.c.bf16 %v1672_v26, %v1669_v22 }
 0x234   : > { %3156 = vst [vmem:[%s4139_s19 + $0x18] sm:$0xff] %v3012_v27  }
 0x235   : > { %3155 = vst [vmem:[%s4139_s19 + $0x10] sm:$0xff] %v3007_v28   ;;  %v3498_v29 = vpop.f32.mrb[40].mxu1 }
 0x236   : > { %v1693_v30 = vadd.f32 %v3498_v29, %v4130_v9  ;;  %v1684_v31 = vpop.f32.mrb[41].mxu1 }
 0x237   : > { %v1685_v32 = vadd.f32 %v4130_v9, %v1684_v31  ;;  %v3499_v33 = vpop.f32.mrb[42].mxu1 }
 0x238   : > { %v1696_v34 = vadd.f32 %v3499_v33, %v4130_v9  ;;  %v1687_v35 = vpop.f32.mrb[43].mxu1 }
 0x239   : > { %v1688_v36 = vadd.f32 %v4130_v9, %v1687_v35 }
 0x23a   : > { %v3022_v37 = vpack.c.bf16 %v1696_v34, %v1693_v30 }
 0x23b   : > { %v3017_v38 = vpack.c.bf16 %v1688_v36, %v1685_v32 }
 0x23c   : > { %3158 = vst [vmem:[%s4139_s19 + $0x28] sm:$0xff] %v3022_v37  }
 0x23d   : > { %3157 = vst [vmem:[%s4139_s19 + $0x20] sm:$0xff] %v3017_v38   ;;  %v3502_v39 = vpop.f32.mrb[44].mxu1 }
 0x23e   : > { %v1709_v40 = vadd.f32 %v3502_v39, %v4130_v9  ;;  %v1700_v41 = vpop.f32.mrb[45].mxu1 }
 0x23f   : > { %v1701_v42 = vadd.f32 %v4130_v9, %v1700_v41  ;;  %v3503_v43 = vpop.f32.mrb[46].mxu1 }
 0x240   : > { %v1712_v44 = vadd.f32 %v3503_v43, %v4130_v9  ;;  %v1703_v45 = vpop.f32.mrb[47].mxu1 }
 0x241   : > { %v1704_v46 = vadd.f32 %v4130_v9, %v1703_v45 }
 0x242   : > { %v3032_v47 = vpack.c.bf16 %v1712_v44, %v1709_v40 }
 0x243   : > { %v3027_v48 = vpack.c.bf16 %v1704_v46, %v1701_v42 }
 0x244   : > { %3160 = vst [vmem:[%s4139_s19 + $0x38] sm:$0xff] %v3032_v47  }
 0x245   : > { %3159 = vst [vmem:[%s4139_s19 + $0x30] sm:$0xff] %v3027_v48   ;;  %v3506_v49 = vpop.f32.mrb[48].mxu1 }
 0x246   : > { %v1725_v50 = vadd.f32 %v3506_v49, %v4130_v9  ;;  %v1716_v56 = vpop.f32.mrb[49].mxu1 }
 0x247   : > { %v1717_v51 = vadd.f32 %v4130_v9, %v1716_v56  ;;  %v3507_v52 = vpop.f32.mrb[50].mxu1 }
 0x248   : > { %v1728_v53 = vadd.f32 %v3507_v52, %v4130_v9  ;;  %v1719_v54 = vpop.f32.mrb[51].mxu1 }
 0x249   : > { %v1720_v58 = vadd.f32 %v4130_v9, %v1719_v54 }
 0x24a   : > { %v3042_v61 = vpack.c.bf16 %v1728_v53, %v1725_v50 }
 0x24b   : > { %v3037_v0 = vpack.c.bf16 %v1720_v58, %v1717_v51 }
 0x24c   : > { %3162 = vst [vmem:[%s4139_s19 + $0x48] sm:$0xff] %v3042_v61  }
 0x24d   : > { %3161 = vst [vmem:[%s4139_s19 + $0x40] sm:$0xff] %v3037_v0   ;;  %v3510_v5 = vpop.f32.mrb[52].mxu1 }
 0x24e   : > { %v1741_v8 = vadd.f32 %v3510_v5, %v4130_v9  ;;  %v1732_v10 = vpop.f32.mrb[53].mxu1 }
 0x24f   : > { %v1733_v12 = vadd.f32 %v4130_v9, %v1732_v10  ;;  %v3511_v13 = vpop.f32.mrb[54].mxu1 }
 0x250   : > { %v1744_v15 = vadd.f32 %v3511_v13, %v4130_v9  ;;  %v1735_v16 = vpop.f32.mrb[55].mxu1 }
 0x251   : > { %v1736_v19 = vadd.f32 %v4130_v9, %v1735_v16 }
 0x252   : > { %v3052_v22 = vpack.c.bf16 %v1744_v15, %v1741_v8 }
 0x253   : > { %v3047_v25 = vpack.c.bf16 %v1736_v19, %v1733_v12 }
 0x254   : > { %3164 = vst [vmem:[%s4139_s19 + $0x58] sm:$0xff] %v3052_v22  }
 0x255   : > { %3163 = vst [vmem:[%s4139_s19 + $0x50] sm:$0xff] %v3047_v25   ;;  %v3514_v29 = vpop.f32.mrb[56].mxu1 }
 0x256   : > { %v1757_v32 = vadd.f32 %v3514_v29, %v4130_v9  ;;  %v1748_v33 = vpop.f32.mrb[57].mxu1 }
 0x257   : > { %v1749_v36 = vadd.f32 %v4130_v9, %v1748_v33  ;;  %v3515_v37 = vpop.f32.mrb[58].mxu1 }
 0x258   : > { %v1760_v39 = vadd.f32 %v3515_v37, %v4130_v9  ;;  %v1751_v40 = vpop.f32.mrb[59].mxu1 }
 0x259   : > { %v1752_v43 = vadd.f32 %v4130_v9, %v1751_v40 }
 0x25a   : > { %v3062_v46 = vpack.c.bf16 %v1760_v39, %v1757_v32 }
 0x25b   : > { %v3057_v49 = vpack.c.bf16 %v1752_v43, %v1749_v36 }
 0x25c   : > { %3166 = vst [vmem:[%s4139_s19 + $0x68] sm:$0xff] %v3062_v46  }
 0x25d   : > { %3165 = vst [vmem:[%s4139_s19 + $0x60] sm:$0xff] %v3057_v49  }
 0x2b3   : > { %v3538_v55 = vpop.f32.mrb[64].mxu0 }
 0x2b4   : > { %v2069_v59 = vadd.f32 %v3538_v55, %v3991_v57  ;;  %v2060_v60 = vpop.f32.mrb[65].mxu0 }
 0x2b5   : > { %v2061_v62 = vadd.f32 %v3991_v57, %v2060_v60  ;;  %v3539_v63 = vpop.f32.mrb[66].mxu0 }
 0x2b6   : > { %v2072_v1 = vadd.f32 %v3539_v63, %v3991_v57  ;;  %v2063_v2 = vpop.f32.mrb[67].mxu0  ;;  %v2189_v6 = vmax.f32 %v2069_v59, 0.0 }
 0x2b7   : > { %v2064_v4 = vadd.f32 %v3991_v57, %v2063_v2  ;;  %v2187_v3 = vmax.f32 %v2061_v62, 0.0 }
 0x2b8   : > { %v2190_v7 = vmax.f32 %v2072_v1, 0.0  ;;  %v3518_v52 = vpop.f32.mrb[60].mxu1 }
 0x2b9   : > { %v2188_v11 = vmax.f32 %v2064_v4, 0.0  ;;  %v1773_v55 = vadd.f32 %v3518_v52, %v4130_v9  ;;  %v1764_v58 = vpop.f32.mrb[61].mxu1 }
 0x2ba   : > { %v2220_v14 = vpack.c.bf16 %v2190_v7, %v2189_v6  ;;  %v1765_v61 = vadd.f32 %v4130_v9, %v1764_v58  ;;  %v3519_v62 = vpop.f32.mrb[62].mxu1 }
 0x2bb   : > { %v2219_v17 = vpack.c.bf16 %v2188_v11, %v2187_v3  ;;  %v3542_v18 = vpop.f32.mrb[68].mxu0  ;;  %v1776_v0 = vadd.f32 %v3519_v62, %v4130_v9  ;;  %v1767_v1 = vpop.f32.mrb[63].mxu1 }
 0x2bc   : > { %v2085_v20 = vadd.f32 %v3542_v18, %v3991_v57  ;;  %v2076_v21 = vpop.f32.mrb[69].mxu0  ;;  %v1768_v5 = vadd.f32 %v4130_v9, %v1767_v1 }
 0x2bd   : > { %v2077_v23 = vadd.f32 %v3991_v57, %v2076_v21  ;;  %v3543_v24 = vpop.f32.mrb[70].mxu0  ;;  %3584 = vmatprep.mubr.bf16.mxu1 %v2219_v17  ;;  %v3072_v8 = vpack.c.bf16 %v1776_v0, %v1773_v55 }
 0x2be   : > { %v2088_v26 = vadd.f32 %v3543_v24, %v3991_v57  ;;  %v2079_v27 = vpop.f32.mrb[71].mxu0  ;;  %3585 = vmatmul.mubr.bf16.vlgmr.msra.gmra.mrb[64].mxu1 %v2220_v14  ;;  %v2193_v30 = vmax.f32 %v2085_v20, 0.0  ;;  %v3067_v11 = vpack.c.bf16 %v1768_v5, %v1765_v61 }
 0x2bf   : > { %v2080_v28 = vadd.f32 %v3991_v57, %v2079_v27  ;;  %v2191_v34 = vmax.f32 %v2077_v23, 0.0  ;;  %3168 = vst [vmem:[%s4139_s19 + $0x78] sm:$0xff] %v3072_v8  }
 0x2c0   : > { %v2194_v31 = vmax.f32 %v2088_v26, 0.0  ;;  %3167 = vst [vmem:[%s4139_s19 + $0x70] sm:$0xff] %v3067_v11  }
 0x2c1   : > { %v2192_v35 = vmax.f32 %v2080_v28, 0.0 }
 0x2c2   : > { %v2222_v38 = vpack.c.bf16 %v2194_v31, %v2193_v30 }
 0x2c3   : > { %v2221_v41 = vpack.c.bf16 %v2192_v35, %v2191_v34  ;;  %v3546_v42 = vpop.f32.mrb[72].mxu0 }
 0x2c4   : > { %v2101_v44 = vadd.f32 %v3546_v42, %v3991_v57  ;;  %v2092_v45 = vpop.f32.mrb[73].mxu0 }
 0x2c5   : > { %v2093_v47 = vadd.f32 %v3991_v57, %v2092_v45  ;;  %v3547_v48 = vpop.f32.mrb[74].mxu0  ;;  %3588 = vmatprep.mubr.bf16.mxu1 %v2221_v41 }
 0x2c6   : > { %v2104_v50 = vadd.f32 %v3547_v48, %v3991_v57  ;;  %v2095_v56 = vpop.f32.mrb[75].mxu0  ;;  %3589 = vmatmul.mubr.bf16.gmra.mrb[68].mxu1 %v2222_v38  ;;  %v2197_v53 = vmax.f32 %v2101_v44, 0.0 }
 0x2c7   : > { %v2096_v51 = vadd.f32 %v3991_v57, %v2095_v56  ;;  %v2195_v59 = vmax.f32 %v2093_v47, 0.0 }
 0x2c8   : > { %v2198_v54 = vmax.f32 %v2104_v50, 0.0 }
 0x2c9   : > { %v2196_v60 = vmax.f32 %v2096_v51, 0.0 }
 0x2ca   : > { %v2224_v63 = vpack.c.bf16 %v2198_v54, %v2197_v53 }
 0x2cb   : > { %v2223_v2 = vpack.c.bf16 %v2196_v60, %v2195_v59  ;;  %v3550_v4 = vpop.f32.mrb[76].mxu0 }
 0x2cc   : > { %v2117_v6 = vadd.f32 %v3550_v4, %v3991_v57  ;;  %v2108_v7 = vpop.f32.mrb[77].mxu0 }
 0x2cd   : > { %v2109_v10 = vadd.f32 %v3991_v57, %v2108_v7  ;;  %v3551_v3 = vpop.f32.mrb[78].mxu0  ;;  %3592 = vmatprep.mubr.bf16.mxu1 %v2223_v2 }
 0x2ce   : > { %v2120_v12 = vadd.f32 %v3551_v3, %v3991_v57  ;;  %v2111_v13 = vpop.f32.mrb[79].mxu0  ;;  %3593 = vmatmul.mubr.bf16.gmra.mrb[72].mxu1 %v2224_v63  ;;  %v2201_v15 = vmax.f32 %v2117_v6, 0.0 }
 0x2cf   : > { %v2112_v14 = vadd.f32 %v3991_v57, %v2111_v13  ;;  %v2199_v17 = vmax.f32 %v2109_v10, 0.0 }
 0x2d0   : > { %v2202_v16 = vmax.f32 %v2120_v12, 0.0 }
 0x2d1   : > { %v2200_v18 = vmax.f32 %v2112_v14, 0.0 }
 0x2d2   : > { %v2226_v19 = vpack.c.bf16 %v2202_v16, %v2201_v15 }
 0x2d3   : > { %v2225_v20 = vpack.c.bf16 %v2200_v18, %v2199_v17  ;;  %v3554_v21 = vpop.f32.mrb[80].mxu0 }
 0x2d4   : > { %v2133_v22 = vadd.f32 %v3554_v21, %v3991_v57  ;;  %v2124_v23 = vpop.f32.mrb[81].mxu0 }
 0x2d5   : > { %v2125_v24 = vadd.f32 %v3991_v57, %v2124_v23  ;;  %v3555_v25 = vpop.f32.mrb[82].mxu0  ;;  %3596 = vmatprep.mubr.bf16.mxu1 %v2225_v20 }
 0x2d6   : > { %v2136_v26 = vadd.f32 %v3555_v25, %v3991_v57  ;;  %v2127_v27 = vpop.f32.mrb[83].mxu0  ;;  %3597 = vmatmul.mubr.bf16.gmra.mrb[76].mxu1 %v2226_v19  ;;  %v2205_v29 = vmax.f32 %v2133_v22, 0.0 }
 0x2d7   : > { %v2128_v28 = vadd.f32 %v3991_v57, %v2127_v27  ;;  %v2203_v31 = vmax.f32 %v2125_v24, 0.0 }
 0x2d8   : > { %v2206_v30 = vmax.f32 %v2136_v26, 0.0 }
 0x2d9   : > { %v2204_v32 = vmax.f32 %v2128_v28, 0.0 }
 0x2da   : > { %v2228_v33 = vpack.c.bf16 %v2206_v30, %v2205_v29 }
 0x2db   : > { %v2227_v34 = vpack.c.bf16 %v2204_v32, %v2203_v31  ;;  %v3558_v35 = vpop.f32.mrb[84].mxu0 }
 0x2dc   : > { %v2149_v36 = vadd.f32 %v3558_v35, %v3991_v57  ;;  %v2140_v37 = vpop.f32.mrb[85].mxu0 }
 0x2dd   : > { %v2141_v38 = vadd.f32 %v3991_v57, %v2140_v37  ;;  %v3559_v39 = vpop.f32.mrb[86].mxu0  ;;  %3600 = vmatprep.mubr.bf16.mxu1 %v2227_v34 }
 0x2de   : > { %v2152_v40 = vadd.f32 %v3559_v39, %v3991_v57  ;;  %v2143_v41 = vpop.f32.mrb[87].mxu0  ;;  %3601 = vmatmul.mubr.bf16.gmra.mrb[80].mxu1 %v2228_v33  ;;  %v2209_v43 = vmax.f32 %v2149_v36, 0.0 }
 0x2df   : > { %v2144_v42 = vadd.f32 %v3991_v57, %v2143_v41  ;;  %v2207_v45 = vmax.f32 %v2141_v38, 0.0 }
 0x2e0   : > { %v2210_v44 = vmax.f32 %v2152_v40, 0.0 }
 0x2e1   : > { %v2208_v46 = vmax.f32 %v2144_v42, 0.0 }
 0x2e2   : > { %v2230_v47 = vpack.c.bf16 %v2210_v44, %v2209_v43 }
 0x2e3   : > { %v2229_v48 = vpack.c.bf16 %v2208_v46, %v2207_v45  ;;  %v3562_v49 = vpop.f32.mrb[88].mxu0 }
 0x2e4   : > { %v2165_v50 = vadd.f32 %v3562_v49, %v3991_v57  ;;  %v2156_v56 = vpop.f32.mrb[89].mxu0 }
 0x2e5   : > { %v2157_v51 = vadd.f32 %v3991_v57, %v2156_v56  ;;  %v3563_v52 = vpop.f32.mrb[90].mxu0  ;;  %3604 = vmatprep.mubr.bf16.mxu1 %v2229_v48 }
 0x2e6   : > { %v2168_v53 = vadd.f32 %v3563_v52, %v3991_v57  ;;  %v2159_v54 = vpop.f32.mrb[91].mxu0  ;;  %3605 = vmatmul.mubr.bf16.gmra.mrb[84].mxu1 %v2230_v47  ;;  %v2213_v58 = vmax.f32 %v2165_v50, 0.0 }
 0x2e7   : > { %v2160_v55 = vadd.f32 %v3991_v57, %v2159_v54  ;;  %v2211_v60 = vmax.f32 %v2157_v51, 0.0 }
 0x2e8   : > { %v2214_v59 = vmax.f32 %v2168_v53, 0.0 }
 0x2e9   : > { %v2212_v61 = vmax.f32 %v2160_v55, 0.0 }
 0x2ea   : > { %v2232_v62 = vpack.c.bf16 %v2214_v59, %v2213_v58 }
 0x2eb   : > { %v2231_v63 = vpack.c.bf16 %v2212_v61, %v2211_v60  ;;  %v3566_v0 = vpop.f32.mrb[92].mxu0 }
 0x2ec   : > { %v2181_v1 = vadd.f32 %v3566_v0, %v3991_v57  ;;  %v2172_v2 = vpop.f32.mrb[93].mxu0 }
 0x2ed   : > { %v2173_v4 = vadd.f32 %v3991_v57, %v2172_v2  ;;  %v3567_v5 = vpop.f32.mrb[94].mxu0  ;;  %3608 = vmatprep.mubr.bf16.mxu1 %v2231_v63 }
 0x2ee   : > { %v2184_v6 = vadd.f32 %v3567_v5, %v3991_v57  ;;  %v2175_v7 = vpop.f32.mrb[95].mxu0  ;;  %3609 = vmatmul.mubr.bf16.gmra.mrb[88].mxu1 %v2232_v62  ;;  %v2217_v10 = vmax.f32 %v2181_v1, 0.0 }
 0x2ef   : > { %v2176_v8 = vadd.f32 %v3991_v57, %v2175_v7  ;;  %v2215_v11 = vmax.f32 %v2173_v4, 0.0 }
 0x2f0   : > { %v2218_v3 = vmax.f32 %v2184_v6, 0.0 }
 0x2f1   : > { %v2216_v12 = vmax.f32 %v2176_v8, 0.0 }
 0x2f2   : > { %v2234_v13 = vpack.c.bf16 %v2218_v3, %v2217_v10 }
 0x2f3   : > { %v2233_v14 = vpack.c.bf16 %v2216_v12, %v2215_v11 }
 0x2f5   : > { %3612 = vmatprep.mubr.bf16.mxu1 %v2233_v14 }
 0x2f6   : > { %3613 = vmatmul.mubr.bf16.gmra.mrb[92].mxu1 %v2234_v13 }
 0x391   : > { %v3586_v15 = vpop.f32.mrb[64].mxu1 }
 0x392   : > { %v2340_v16 = vpop.f32.mrb[65].mxu1  ;;  %v2349_v18 = vadd.f32 %v3586_v15, %v4130_v9 }
 0x393   : > { %v3587_v17 = vpop.f32.mrb[66].mxu1  ;;  %v2341_v21 = vadd.f32 %v4130_v9, %v2340_v16 }
 0x394   : > { %v2352_v19 = vadd.f32 %v3587_v17, %v4130_v9  ;;  %v2343_v20 = vpop.f32.mrb[67].mxu1 }
 0x395   : > { %v2344_v57 = vadd.f32 %v4130_v9, %v2343_v20 }
 0x396   : > { %v3082_v22 = vpack.c.bf16 %v2352_v19, %v2349_v18 }
 0x397   : > { %v3077_v23 = vpack.c.bf16 %v2344_v57, %v2341_v21 }
 0x398   : > { %3169 = vst [vmem:[%s4225_s23 + $0x8] sm:$0xff] %v3082_v22  }
 0x399   : > { %3078 = vst [vmem:[%s4225_s23] sm:$0xff] %v3077_v23   ;;  %v3590_v24 = vpop.f32.mrb[68].mxu1 }
 0x39a   : > { %v2356_v25 = vpop.f32.mrb[69].mxu1  ;;  %v2365_v27 = vadd.f32 %v3590_v24, %v4130_v9 }
 0x39b   : > { %v3591_v26 = vpop.f32.mrb[70].mxu1  ;;  %v2357_v30 = vadd.f32 %v4130_v9, %v2356_v25 }
 0x39c   : > { %v2368_v28 = vadd.f32 %v3591_v26, %v4130_v9  ;;  %v2359_v29 = vpop.f32.mrb[71].mxu1 }
 0x39d   : > { %v2360_v31 = vadd.f32 %v4130_v9, %v2359_v29 }
 0x39e   : > { %v3092_v32 = vpack.c.bf16 %v2368_v28, %v2365_v27 }
 0x39f   : > { %v3087_v33 = vpack.c.bf16 %v2360_v31, %v2357_v30 }
 0x3a0   : > { %3171 = vst [vmem:[%s4225_s23 + $0x18] sm:$0xff] %v3092_v32  }
 0x3a1   : > { %3170 = vst [vmem:[%s4225_s23 + $0x10] sm:$0xff] %v3087_v33   ;;  %v3594_v34 = vpop.f32.mrb[72].mxu1 }
 0x3a2   : > { %v2372_v35 = vpop.f32.mrb[73].mxu1  ;;  %v2381_v37 = vadd.f32 %v3594_v34, %v4130_v9 }
 0x3a3   : > { %v3595_v36 = vpop.f32.mrb[74].mxu1  ;;  %v2373_v40 = vadd.f32 %v4130_v9, %v2372_v35 }
 0x3a4   : > { %v2384_v38 = vadd.f32 %v3595_v36, %v4130_v9  ;;  %v2375_v39 = vpop.f32.mrb[75].mxu1 }
 0x3a5   : > { %v2376_v41 = vadd.f32 %v4130_v9, %v2375_v39 }
 0x3a6   : > { %v3102_v42 = vpack.c.bf16 %v2384_v38, %v2381_v37 }
 0x3a7   : > { %v3097_v43 = vpack.c.bf16 %v2376_v41, %v2373_v40 }
 0x3a8   : > { %3173 = vst [vmem:[%s4225_s23 + $0x28] sm:$0xff] %v3102_v42  }
 0x3a9   : > { %3172 = vst [vmem:[%s4225_s23 + $0x20] sm:$0xff] %v3097_v43   ;;  %v3598_v44 = vpop.f32.mrb[76].mxu1 }
 0x3aa   : > { %v2388_v45 = vpop.f32.mrb[77].mxu1  ;;  %v2397_v47 = vadd.f32 %v3598_v44, %v4130_v9 }
 0x3ab   : > { %v3599_v46 = vpop.f32.mrb[78].mxu1  ;;  %v2389_v50 = vadd.f32 %v4130_v9, %v2388_v45 }
 0x3ac   : > { %v2400_v48 = vadd.f32 %v3599_v46, %v4130_v9  ;;  %v2391_v49 = vpop.f32.mrb[79].mxu1 }
 0x3ad   : > { %v2392_v56 = vadd.f32 %v4130_v9, %v2391_v49 }
 0x3ae   : > { %v3112_v51 = vpack.c.bf16 %v2400_v48, %v2397_v47 }
 0x3af   : > { %v3107_v52 = vpack.c.bf16 %v2392_v56, %v2389_v50 }
 0x3b0   : > { %3175 = vst [vmem:[%s4225_s23 + $0x38] sm:$0xff] %v3112_v51  }
 0x3b1   : > { %3174 = vst [vmem:[%s4225_s23 + $0x30] sm:$0xff] %v3107_v52   ;;  %v3602_v53 = vpop.f32.mrb[80].mxu1 }
 0x3b2   : > { %v2404_v54 = vpop.f32.mrb[81].mxu1  ;;  %v2413_v58 = vadd.f32 %v3602_v53, %v4130_v9 }
 0x3b3   : > { %v3603_v55 = vpop.f32.mrb[82].mxu1  ;;  %v2405_v61 = vadd.f32 %v4130_v9, %v2404_v54 }
 0x3b4   : > { %v2416_v59 = vadd.f32 %v3603_v55, %v4130_v9  ;;  %v2407_v60 = vpop.f32.mrb[83].mxu1 }
 0x3b5   : > { %v2408_v62 = vadd.f32 %v4130_v9, %v2407_v60 }
 0x3b6   : > { %v3122_v63 = vpack.c.bf16 %v2416_v59, %v2413_v58 }
 0x3b7   : > { %v3117_v0 = vpack.c.bf16 %v2408_v62, %v2405_v61 }
 0x3b8   : > { %3177 = vst [vmem:[%s4225_s23 + $0x48] sm:$0xff] %v3122_v63  }
 0x3b9   : > { %3176 = vst [vmem:[%s4225_s23 + $0x40] sm:$0xff] %v3117_v0   ;;  %v3606_v1 = vpop.f32.mrb[84].mxu1 }
 0x3ba   : > { %v2420_v2 = vpop.f32.mrb[85].mxu1  ;;  %v2429_v5 = vadd.f32 %v3606_v1, %v4130_v9 }
 0x3bb   : > { %v3607_v4 = vpop.f32.mrb[86].mxu1  ;;  %v2421_v8 = vadd.f32 %v4130_v9, %v2420_v2 }
 0x3bc   : > { %v2432_v6 = vadd.f32 %v3607_v4, %v4130_v9  ;;  %v2423_v7 = vpop.f32.mrb[87].mxu1 }
 0x3bd   : > { %v2424_v10 = vadd.f32 %v4130_v9, %v2423_v7 }
 0x3be   : > { %v3132_v3 = vpack.c.bf16 %v2432_v6, %v2429_v5 }
 0x3bf   : > { %v3127_v11 = vpack.c.bf16 %v2424_v10, %v2421_v8 }
 0x3c0   : > { %3179 = vst [vmem:[%s4225_s23 + $0x58] sm:$0xff] %v3132_v3  }
 0x3c1   : > { %3178 = vst [vmem:[%s4225_s23 + $0x50] sm:$0xff] %v3127_v11   ;;  %v3610_v12 = vpop.f32.mrb[88].mxu1 }
 0x3c2   : > { %v2436_v13 = vpop.f32.mrb[89].mxu1  ;;  %v2445_v15 = vadd.f32 %v3610_v12, %v4130_v9 }
 0x3c3   : > { %v3611_v14 = vpop.f32.mrb[90].mxu1  ;;  %v2437_v18 = vadd.f32 %v4130_v9, %v2436_v13 }
 0x3c4   : > { %v2448_v16 = vadd.f32 %v3611_v14, %v4130_v9  ;;  %v2439_v17 = vpop.f32.mrb[91].mxu1 }
 0x3c5   : > { %v2440_v19 = vadd.f32 %v4130_v9, %v2439_v17 }
 0x3c6   : > { %v3142_v20 = vpack.c.bf16 %v2448_v16, %v2445_v15 }
 0x3c7   : > { %v3137_v21 = vpack.c.bf16 %v2440_v19, %v2437_v18 }
 0x3c8   : > { %3181 = vst [vmem:[%s4225_s23 + $0x68] sm:$0xff] %v3142_v20  }
 0x3c9   : > { %3180 = vst [vmem:[%s4225_s23 + $0x60] sm:$0xff] %v3137_v21   ;;  %v3614_v57 = vpop.f32.mrb[92].mxu1 }
 0x3ca   : > { %v2452_v22 = vpop.f32.mrb[93].mxu1  ;;  %v2461_v24 = vadd.f32 %v3614_v57, %v4130_v9 }
 0x3cb   : > { %v3615_v23 = vpop.f32.mrb[94].mxu1  ;;  %v2453_v27 = vadd.f32 %v4130_v9, %v2452_v22 }
 0x3cc   : > { %v2464_v25 = vadd.f32 %v3615_v23, %v4130_v9  ;;  %v2455_v26 = vpop.f32.mrb[95].mxu1 }
 0x3cd   : > { %v2456_v28 = vadd.f32 %v4130_v9, %v2455_v26 }
 0x3ce   : > { %v3152_v29 = vpack.c.bf16 %v2464_v25, %v2461_v24 }
 0x3cf   : > { %v3147_v30 = vpack.c.bf16 %v2456_v28, %v2453_v27 }
 0x3d0   : > { %3183 = vst [vmem:[%s4225_s23 + $0x78] sm:$0xff] %v3152_v29  }
 0x3d1   : > { %3182 = vst [vmem:[%s4225_s23 + $0x70] sm:$0xff] %v3147_v30  }
 0x3d2 PF: > { %s23_s21 = sadd.s32 1, %s3710_s21  }
 0x3d3   : > { %p20_p4 = scmp.ge.s32.totalorder %s23_s21, 4  }
 0x3d5   :  { %22 = sbr.rel (!%p20_p4) target bundleno = 1 (0x1), region = 117 }

</bundles_post_ra>
